<compile_context>
chip_gen: v7x
topology: tpu7x:2x2x1
jax: 0.10.0
libtpu: 0.0.40
codegen_flags: <defaults>
</compile_context>

<pallas_src>
import functools

import jax
import jax.numpy as jnp
from jax.experimental import pallas as pl
from jax.experimental.pallas import tpu as pltpu


# --------------------------- in-kernel building blocks ---------------------------
def _layer_norm(x, g_ref, b_ref, eps=1e-5):
    mu = jnp.mean(x, axis=-1, keepdims=True)
    var = jnp.mean((x - mu) ** 2, axis=-1, keepdims=True)
    return (x - mu) * jax.lax.rsqrt(var + eps) * g_ref[...] + b_ref[...]


def _att_ffn_block(x, refs, mask, *, head_num, D):
    """Pre-LN MHA (over all tokens, mask-restricted) + residual + FFN + LN."""
    (ln1g, ln1b, wqkv, bqkv, wo, bo, w1, b1, w2, b2, ln2g, ln2b) = refs

    h = _layer_norm(x, ln1g, ln1b)
    qkv = jnp.dot(h, wqkv[...], preferred_element_type=jnp.float32) + bqkv[...]

    hd = D // head_num
    scale = 1.0 / float(hd) ** 0.5
    heads = []
    for i in range(head_num):                       # static unroll, H is tiny
        q_h = qkv[:, i * hd:(i + 1) * hd]
        k_h = qkv[:, D + i * hd:D + (i + 1) * hd]
        v_h = qkv[:, 2 * D + i * hd:2 * D + (i + 1) * hd]
        # q @ k^T via dot_general (contract minor dims) -- no explicit transpose.
        s = jax.lax.dot_general(q_h, k_h, (((1,), (1,)), ((), ())),
                                preferred_element_type=jnp.float32) * scale
        s = jnp.where(mask > 0.5, s, jnp.float32(-1e9))   # keep masking in f32
        m = jnp.max(s, axis=-1, keepdims=True)
        p = jnp.exp(s - m)
        p = p / jnp.sum(p, axis=-1, keepdims=True)
        heads.append(jnp.dot(p, v_h, preferred_element_type=jnp.float32))
    attn = jnp.concatenate(heads, axis=-1)
    attn = jnp.dot(attn, wo[...], preferred_element_type=jnp.float32) + bo[...]

    x = x + attn
    f = jnp.maximum(jnp.dot(x, w1[...], preferred_element_type=jnp.float32) + b1[...], 0.0)
    f = jnp.dot(f, w2[...], preferred_element_type=jnp.float32) + b2[...]
    return _layer_norm(x + f, ln2g, ln2b)


# ----------------------- fused per-future decoder core kernel -----------------------
def _decoder_core_kernel(*refs, head_num, D):
    sf_ref, twm_ref, toh_ref, tb_ref, mt_ref, ma_ref = refs[:6]
    u_refs = refs[6:18]       # layer_U params (across time)
    x_refs = refs[18:30]      # layer_X params (across agents)
    yg_ref, yb_ref = refs[30], refs[31]
    out_ref = refs[32]

    # layer_T: concat(state, onehot_f) @ W + b == state @ W[:D] + W[D + f] + b, ReLU.
    x = jnp.dot(sf_ref[...], twm_ref[...], preferred_element_type=jnp.float32)
    x = jnp.maximum(x + toh_ref[0] + tb_ref[...], 0.0)          # (A*T, D)

    # layer_U: attention across time; layer_X: attention across agents.
    x = _att_ffn_block(x, u_refs, mt_ref[...], head_num=head_num, D=D)
    x = _att_ffn_block(x, x_refs, ma_ref[...], head_num=head_num, D=D)

    # layer_Y: LayerNorm(D)
    out_ref[0] = _layer_norm(x, yg_ref, yb_ref)


# ------------------- fused tail: Z1 -> BatchNorm2d(6) -> Z2 -------------------
def _tail_kernel(xy_ref, z1w_ref, z1b_ref, bng_ref, bnb_ref, z2w_ref, z2b_ref,
                 o_ref, *, eps):
    z = jnp.dot(xy_ref[...], z1w_ref[...], preferred_element_type=jnp.float32) + z1b_ref[...]
    z = jnp.maximum(z, 0.0)                                     # (M, 6)
    # BatchNorm2d(6): per-channel batch statistics over all (F, A, T) positions
    # (the two Permute4Batchnorm ops cancel out under this flattening).
    mu = jnp.mean(z, axis=0, keepdims=True)
    var = jnp.mean((z - mu) ** 2, axis=0, keepdims=True)
    z = (z - mu) * jax.lax.rsqrt(var + eps) * bng_ref[...] + bnb_ref[...]
    o_ref[...] = jnp.dot(z, z2w_ref[...], preferred_element_type=jnp.float32) + z2b_ref[...]


# ---------------------------------- wrapper ----------------------------------
def _att_param_arrays(p):
    r = lambda v: v.astype(jnp.float32).reshape(1, -1)
    wqkv = jnp.concatenate([p["wq"], p["wk"], p["wv"]], axis=1).astype(jnp.float32)
    bqkv = jnp.concatenate([p["bq"], p["bk"], p["bv"]]).astype(jnp.float32).reshape(1, -1)
    return [r(p["ln1_g"]), r(p["ln1_b"]),
            wqkv, bqkv,
            p["wo"].astype(jnp.float32), r(p["bo"]),
            p["w1"].astype(jnp.float32), r(p["b1"]),
            p["w2"].astype(jnp.float32), r(p["b2"]),
            r(p["ln2_g"]), r(p["ln2_b"])]


def decoder_forward(params, state_feat, batch_mask, padding_mask, *, F_, head_num):
    A, T, D = state_feat.shape
    M0 = A * T

    sf2 = state_feat.reshape(M0, D).astype(jnp.float32)

    # Split layer_T weight: main (D, D) part and per-future one-hot rows (F, 1, D).
    T_w = params["T_w"].astype(jnp.float32)
    tw_main = T_w[:D]
    tw_oh = T_w[D:].reshape(F_, 1, D)
    tb = params["T_b"].astype(jnp.float32).reshape(1, D)

    # Build the two (A*T, A*T) attention masks once (True/1.0 == key allowed).
    pad = padding_mask.astype(jnp.float32)                      # (A, T)
    bm = batch_mask.astype(jnp.float32)                         # (A, A)
    key_pad = jnp.broadcast_to(pad.reshape(1, M0), (M0, M0))    # key-position validity
    agent_id = jnp.arange(M0, dtype=jnp.int32) // T
    time_id = jnp.arange(M0, dtype=jnp.int32) % T
    same_agent = (agent_id[:, None] == agent_id[None, :]).astype(jnp.float32)
    same_time = (time_id[:, None] == time_id[None, :]).astype(jnp.float32)
    bm_big = jnp.repeat(jnp.repeat(bm, T, axis=0), T, axis=1)   # batch_mask[q_agent, k_agent]
    mask_time = same_agent * key_pad                            # across-time layer
    mask_agent = same_time * bm_big * key_pad                   # across-agents layer

    y_g = params["Y_g"].astype(jnp.float32).reshape(1, D)
    y_b = params["Y_b"].astype(jnp.float32).reshape(1, D)

    inputs = ([sf2, tw_main, tw_oh, tb, mask_time, mask_agent]
              + _att_param_arrays(params["U"])
              + _att_param_arrays(params["X"])
              + [y_g, y_b])

    def _const_spec(a):
        nd = a.ndim
        return pl.BlockSpec(a.shape, lambda f, nd=nd: (0,) * nd)

    in_specs = [_const_spec(a) for a in inputs]
    in_specs[2] = pl.BlockSpec((1, 1, D), lambda f: (f, 0, 0))  # per-future one-hot row

    # One fused call for layer_T -> layer_U -> layer_X -> layer_Y, gridded over futures.
    xy = pl.pallas_call(
        functools.partial(_decoder_core_kernel, head_num=head_num, D=D),
        out_shape=jax.ShapeDtypeStruct((F_, M0, D), jnp.float32),
        grid=(F_,),
        in_specs=in_specs,
        out_specs=pl.BlockSpec((1, M0, D), lambda f: (f, 0, 0)),
        compiler_params=pltpu.CompilerParams(dimension_semantics=("parallel",)),
    )(*inputs)

    # Fused tail (needs statistics across all futures, hence a second small call).
    r6 = lambda v: v.astype(jnp.float32).reshape(1, -1)
    z = pl.pallas_call(
        functools.partial(_tail_kernel, eps=1e-5),
        out_shape=jax.ShapeDtypeStruct((F_ * M0, 6), jnp.float32),
    )(xy.reshape(F_ * M0, D),
      params["Z1_w"].astype(jnp.float32), r6(params["Z1_b"]),
      r6(params["BN_g"]), r6(params["BN_b"]),
      params["Z2_w"].astype(jnp.float32), r6(params["Z2_b"]))

    return z.reshape(F_, A, T, 6)


# -------------------------------- parameter init --------------------------------
def init_params(key, D, F_, k_ff):
    keys = iter(jax.random.split(key, 32))

    def dense(fan_in, fan_out):
        return jax.random.normal(next(keys), (fan_in, fan_out), jnp.float32) * 0.05

    def att_params():
        return dict(
            ln1_g=jnp.ones((D,), jnp.float32), ln1_b=jnp.zeros((D,), jnp.float32),
            wq=dense(D, D), bq=jnp.zeros((D,), jnp.float32),
            wk=dense(D, D), bk=jnp.zeros((D,), jnp.float32),
            wv=dense(D, D), bv=jnp.zeros((D,), jnp.float32),
            wo=dense(D, D), bo=jnp.zeros((D,), jnp.float32),
            w1=dense(D, k_ff * D), b1=jnp.zeros((k_ff * D,), jnp.float32),
            w2=dense(k_ff * D, D), b2=jnp.zeros((D,), jnp.float32),
            ln2_g=jnp.ones((D,), jnp.float32), ln2_b=jnp.zeros((D,), jnp.float32),
        )

    return dict(
        T_w=dense(D + F_, D), T_b=jnp.zeros((D,), jnp.float32),
        U=att_params(), X=att_params(),
        Y_g=jnp.ones((D,), jnp.float32), Y_b=jnp.zeros((D,), jnp.float32),
        Z1_w=dense(D, 6), Z1_b=jnp.zeros((6,), jnp.float32),
        BN_g=jnp.ones((6,), jnp.float32), BN_b=jnp.zeros((6,), jnp.float32),
        Z2_w=dense(6, 6), Z2_b=jnp.zeros((6,), jnp.float32),
    )


if __name__ == "__main__":
    # Small config consistent with the module (defaults shrunk): A agents, T steps,
    # D features, H heads, FFN expansion k, F futures (fixed by the one-hot).
    A, T, D, H, K_FF, F_ = 4, 8, 32, 4, 2, 6

    key = jax.random.PRNGKey(0)
    k_x, k_p = jax.random.split(key)
    state_feat = jax.random.normal(k_x, (A, T, D), jnp.float32)

    # True == valid / allowed (same convention the PyTorch Decoder receives).
    padding_mask = jnp.ones((A, T), dtype=bool).at[A - 1, T - 2:].set(False)
    batch_mask = jnp.ones((A, A), dtype=bool)

    params = init_params(k_p, D, F_, K_FF)

    out = decoder_forward(params, state_feat, batch_mask, padding_mask,
                          F_=F_, head_num=H)
    out = jax.block_until_ready(out)
    assert out.shape == (F_, A, T, 6), out.shape
    assert bool(jnp.all(jnp.isfinite(out)))
    print("KERNEL_OK")
</pallas_src>

<mosaic_0001>
module attributes {stable_mosaic.version = 11 : i64} {
  func.func @_decoder_core_kernel(%arg0: i32, %arg1: memref<32x32xf32, #tpu.memory_space<vmem>>, %arg2: memref<32x32xf32, #tpu.memory_space<vmem>>, %arg3: memref<1x1x32xf32, #tpu.memory_space<vmem>>, %arg4: memref<1x32xf32, #tpu.memory_space<vmem>>, %arg5: memref<32x32xf32, #tpu.memory_space<vmem>>, %arg6: memref<32x32xf32, #tpu.memory_space<vmem>>, %arg7: memref<1x32xf32, #tpu.memory_space<vmem>>, %arg8: memref<1x32xf32, #tpu.memory_space<vmem>>, %arg9: memref<32x96xf32, #tpu.memory_space<vmem>>, %arg10: memref<1x96xf32, #tpu.memory_space<vmem>>, %arg11: memref<32x32xf32, #tpu.memory_space<vmem>>, %arg12: memref<1x32xf32, #tpu.memory_space<vmem>>, %arg13: memref<32x64xf32, #tpu.memory_space<vmem>>, %arg14: memref<1x64xf32, #tpu.memory_space<vmem>>, %arg15: memref<64x32xf32, #tpu.memory_space<vmem>>, %arg16: memref<1x32xf32, #tpu.memory_space<vmem>>, %arg17: memref<1x32xf32, #tpu.memory_space<vmem>>, %arg18: memref<1x32xf32, #tpu.memory_space<vmem>>, %arg19: memref<1x32xf32, #tpu.memory_space<vmem>>, %arg20: memref<1x32xf32, #tpu.memory_space<vmem>>, %arg21: memref<32x96xf32, #tpu.memory_space<vmem>>, %arg22: memref<1x96xf32, #tpu.memory_space<vmem>>, %arg23: memref<32x32xf32, #tpu.memory_space<vmem>>, %arg24: memref<1x32xf32, #tpu.memory_space<vmem>>, %arg25: memref<32x64xf32, #tpu.memory_space<vmem>>, %arg26: memref<1x64xf32, #tpu.memory_space<vmem>>, %arg27: memref<64x32xf32, #tpu.memory_space<vmem>>, %arg28: memref<1x32xf32, #tpu.memory_space<vmem>>, %arg29: memref<1x32xf32, #tpu.memory_space<vmem>>, %arg30: memref<1x32xf32, #tpu.memory_space<vmem>>, %arg31: memref<1x32xf32, #tpu.memory_space<vmem>>, %arg32: memref<1x32xf32, #tpu.memory_space<vmem>>, %arg33: memref<1x32x32xf32, #tpu.memory_space<vmem>>) attributes {dimension_semantics = [#tpu.dimension_semantics<parallel>], iteration_bounds = array<i64: 6>, scalar_prefetch = 0 : i64, scratch_operands = 0 : i64, tpu.core_type = #tpu.core_type<tc>, window_params = [{pipeline_mode = #tpu.pipeline_mode<synchronous>, transform_indices = @transform_0, window_bounds = array<i64: 32, 32>}, {pipeline_mode = #tpu.pipeline_mode<synchronous>, transform_indices = @transform_1, window_bounds = array<i64: 32, 32>}, {transform_indices = @transform_2, window_bounds = array<i64: 1, 1, 32>}, {pipeline_mode = #tpu.pipeline_mode<synchronous>, transform_indices = @transform_3, window_bounds = array<i64: 1, 32>}, {pipeline_mode = #tpu.pipeline_mode<synchronous>, transform_indices = @transform_4, window_bounds = array<i64: 32, 32>}, {pipeline_mode = #tpu.pipeline_mode<synchronous>, transform_indices = @transform_5, window_bounds = array<i64: 32, 32>}, {pipeline_mode = #tpu.pipeline_mode<synchronous>, transform_indices = @transform_6, window_bounds = array<i64: 1, 32>}, {pipeline_mode = #tpu.pipeline_mode<synchronous>, transform_indices = @transform_7, window_bounds = array<i64: 1, 32>}, {pipeline_mode = #tpu.pipeline_mode<synchronous>, transform_indices = @transform_8, window_bounds = array<i64: 32, 96>}, {pipeline_mode = #tpu.pipeline_mode<synchronous>, transform_indices = @transform_9, window_bounds = array<i64: 1, 96>}, {pipeline_mode = #tpu.pipeline_mode<synchronous>, transform_indices = @transform_10, window_bounds = array<i64: 32, 32>}, {pipeline_mode = #tpu.pipeline_mode<synchronous>, transform_indices = @transform_11, window_bounds = array<i64: 1, 32>}, {pipeline_mode = #tpu.pipeline_mode<synchronous>, transform_indices = @transform_12, window_bounds = array<i64: 32, 64>}, {pipeline_mode = #tpu.pipeline_mode<synchronous>, transform_indices = @transform_13, window_bounds = array<i64: 1, 64>}, {pipeline_mode = #tpu.pipeline_mode<synchronous>, transform_indices = @transform_14, window_bounds = array<i64: 64, 32>}, {pipeline_mode = #tpu.pipeline_mode<synchronous>, transform_indices = @transform_15, window_bounds = array<i64: 1, 32>}, {pipeline_mode = #tpu.pipeline_mode<synchronous>, transform_indices = @transform_16, window_bounds = array<i64: 1, 32>}, {pipeline_mode = #tpu.pipeline_mode<synchronous>, transform_indices = @transform_17, window_bounds = array<i64: 1, 32>}, {pipeline_mode = #tpu.pipeline_mode<synchronous>, transform_indices = @transform_18, window_bounds = array<i64: 1, 32>}, {pipeline_mode = #tpu.pipeline_mode<synchronous>, transform_indices = @transform_19, window_bounds = array<i64: 1, 32>}, {pipeline_mode = #tpu.pipeline_mode<synchronous>, transform_indices = @transform_20, window_bounds = array<i64: 32, 96>}, {pipeline_mode = #tpu.pipeline_mode<synchronous>, transform_indices = @transform_21, window_bounds = array<i64: 1, 96>}, {pipeline_mode = #tpu.pipeline_mode<synchronous>, transform_indices = @transform_22, window_bounds = array<i64: 32, 32>}, {pipeline_mode = #tpu.pipeline_mode<synchronous>, transform_indices = @transform_23, window_bounds = array<i64: 1, 32>}, {pipeline_mode = #tpu.pipeline_mode<synchronous>, transform_indices = @transform_24, window_bounds = array<i64: 32, 64>}, {pipeline_mode = #tpu.pipeline_mode<synchronous>, transform_indices = @transform_25, window_bounds = array<i64: 1, 64>}, {pipeline_mode = #tpu.pipeline_mode<synchronous>, transform_indices = @transform_26, window_bounds = array<i64: 64, 32>}, {pipeline_mode = #tpu.pipeline_mode<synchronous>, transform_indices = @transform_27, window_bounds = array<i64: 1, 32>}, {pipeline_mode = #tpu.pipeline_mode<synchronous>, transform_indices = @transform_28, window_bounds = array<i64: 1, 32>}, {pipeline_mode = #tpu.pipeline_mode<synchronous>, transform_indices = @transform_29, window_bounds = array<i64: 1, 32>}, {pipeline_mode = #tpu.pipeline_mode<synchronous>, transform_indices = @transform_30, window_bounds = array<i64: 1, 32>}, {pipeline_mode = #tpu.pipeline_mode<synchronous>, transform_indices = @transform_31, window_bounds = array<i64: 1, 32>}, {transform_indices = @transform_32, window_bounds = array<i64: 1, 32, 32>}]} {
    %c0 = arith.constant 0 : index
    %c0_0 = arith.constant 0 : index
    %0 = vector.load %arg1[%c0, %c0_0] : memref<32x32xf32, #tpu.memory_space<vmem>>, vector<32x32xf32>
    %c0_1 = arith.constant 0 : index
    %c0_2 = arith.constant 0 : index
    %1 = vector.load %arg2[%c0_1, %c0_2] : memref<32x32xf32, #tpu.memory_space<vmem>>, vector<32x32xf32>
    %cst = arith.constant dense<0.000000e+00> : vector<32x32xf32>
    %2 = tpu.matmul %0, %1, %cst {dimension_numbers = #tpu.dot_dimension_numbers<[1], [0], [0], [1], [0, 0, 1, 1], [], []>} : vector<32x32xf32>, vector<32x32xf32>, vector<32x32xf32> -> vector<32x32xf32>
    %c0_3 = arith.constant 0 : index
    %c0_4 = arith.constant 0 : index
    %c0_5 = arith.constant 0 : index
    %3 = vector.load %arg3[%c0_3, %c0_4, %c0_5] : memref<1x1x32xf32, #tpu.memory_space<vmem>>, vector<1x1x32xf32>
    %4 = vector.shape_cast %3 : vector<1x1x32xf32> to vector<1x32xf32>
    %5 = vector.broadcast %4 : vector<1x32xf32> to vector<32x32xf32>
    %6 = arith.addf %2, %5 : vector<32x32xf32>
    %c0_6 = arith.constant 0 : index
    %c0_7 = arith.constant 0 : index
    %7 = vector.load %arg4[%c0_6, %c0_7] : memref<1x32xf32, #tpu.memory_space<vmem>>, vector<1x32xf32>
    %8 = vector.broadcast %7 : vector<1x32xf32> to vector<32x32xf32>
    %9 = arith.addf %6, %8 : vector<32x32xf32>
    %cst_8 = arith.constant 0.000000e+00 : f32
    %10 = vector.broadcast %cst_8 : f32 to vector<32x32xf32>
    %11 = arith.maximumf %9, %10 : vector<32x32xf32>
    %c0_9 = arith.constant 0 : index
    %c0_10 = arith.constant 0 : index
    %12 = vector.load %arg5[%c0_9, %c0_10] : memref<32x32xf32, #tpu.memory_space<vmem>>, vector<32x32xf32>
    %cst_11 = arith.constant dense<0.000000e+00> : vector<32xf32>
    %13 = vector.multi_reduction <add>, %11, %cst_11 [1] : vector<32x32xf32> to vector<32xf32>
    %14 = vector.shape_cast %13 : vector<32xf32> to vector<32x1xf32>
    %cst_12 = arith.constant 3.200000e+01 : f32
    %15 = vector.broadcast %cst_12 : f32 to vector<32x1xf32>
    %16 = arith.divf %14, %15 : vector<32x1xf32>
    %17 = vector.broadcast %16 : vector<32x1xf32> to vector<32x32xf32>
    %18 = arith.subf %11, %17 : vector<32x32xf32>
    %19 = arith.mulf %18, %18 : vector<32x32xf32>
    %cst_13 = arith.constant dense<0.000000e+00> : vector<32xf32>
    %20 = vector.multi_reduction <add>, %19, %cst_13 [1] : vector<32x32xf32> to vector<32xf32>
    %21 = vector.shape_cast %20 : vector<32xf32> to vector<32x1xf32>
    %cst_14 = arith.constant 3.200000e+01 : f32
    %22 = vector.broadcast %cst_14 : f32 to vector<32x1xf32>
    %23 = arith.divf %21, %22 : vector<32x1xf32>
    %24 = vector.broadcast %16 : vector<32x1xf32> to vector<32x32xf32>
    %25 = arith.subf %11, %24 : vector<32x32xf32>
    %cst_15 = arith.constant 9.99999974E-6 : f32
    %26 = vector.broadcast %cst_15 : f32 to vector<32x1xf32>
    %27 = arith.addf %23, %26 : vector<32x1xf32>
    %28 = math.rsqrt %27 : vector<32x1xf32>
    %29 = vector.broadcast %28 : vector<32x1xf32> to vector<32x32xf32>
    %30 = arith.mulf %25, %29 : vector<32x32xf32>
    %c0_16 = arith.constant 0 : index
    %c0_17 = arith.constant 0 : index
    %31 = vector.load %arg7[%c0_16, %c0_17] : memref<1x32xf32, #tpu.memory_space<vmem>>, vector<1x32xf32>
    %32 = vector.broadcast %31 : vector<1x32xf32> to vector<32x32xf32>
    %33 = arith.mulf %30, %32 : vector<32x32xf32>
    %c0_18 = arith.constant 0 : index
    %c0_19 = arith.constant 0 : index
    %34 = vector.load %arg8[%c0_18, %c0_19] : memref<1x32xf32, #tpu.memory_space<vmem>>, vector<1x32xf32>
    %35 = vector.broadcast %34 : vector<1x32xf32> to vector<32x32xf32>
    %36 = arith.addf %33, %35 : vector<32x32xf32>
    %c0_20 = arith.constant 0 : index
    %c0_21 = arith.constant 0 : index
    %37 = vector.load %arg9[%c0_20, %c0_21] : memref<32x96xf32, #tpu.memory_space<vmem>>, vector<32x96xf32>
    %cst_22 = arith.constant dense<0.000000e+00> : vector<32x96xf32>
    %38 = tpu.matmul %36, %37, %cst_22 {dimension_numbers = #tpu.dot_dimension_numbers<[1], [0], [0], [1], [0, 0, 1, 1], [], []>} : vector<32x32xf32>, vector<32x96xf32>, vector<32x96xf32> -> vector<32x96xf32>
    %c0_23 = arith.constant 0 : index
    %c0_24 = arith.constant 0 : index
    %39 = vector.load %arg10[%c0_23, %c0_24] : memref<1x96xf32, #tpu.memory_space<vmem>>, vector<1x96xf32>
    %40 = vector.broadcast %39 : vector<1x96xf32> to vector<32x96xf32>
    %41 = arith.addf %38, %40 : vector<32x96xf32>
    %42 = vector.extract_strided_slice %41 {offsets = [0, 0], sizes = [32, 8], strides = [1, 1]} : vector<32x96xf32> to vector<32x8xf32>
    %43 = vector.extract_strided_slice %41 {offsets = [0, 32], sizes = [32, 8], strides = [1, 1]} : vector<32x96xf32> to vector<32x8xf32>
    %44 = vector.extract_strided_slice %41 {offsets = [0, 64], sizes = [32, 8], strides = [1, 1]} : vector<32x96xf32> to vector<32x8xf32>
    %cst_25 = arith.constant dense<0.000000e+00> : vector<32x32xf32>
    %45 = tpu.matmul %42, %43, %cst_25 {dimension_numbers = #tpu.dot_dimension_numbers<[1], [1], [0], [0], [0, 0, 1, 0], [], []>} : vector<32x8xf32>, vector<32x8xf32>, vector<32x32xf32> -> vector<32x32xf32>
    %cst_26 = arith.constant 0.353553385 : f32
    %46 = vector.broadcast %cst_26 : f32 to vector<32x32xf32>
    %47 = arith.mulf %45, %46 : vector<32x32xf32>
    %cst_27 = arith.constant 5.000000e-01 : f32
    %48 = vector.broadcast %cst_27 : f32 to vector<32x32xf32>
    %49 = arith.cmpf ogt, %12, %48 : vector<32x32xf32>
    %cst_28 = arith.constant -1.000000e+09 : f32
    %50 = vector.broadcast %cst_28 : f32 to vector<32x32xf32>
    %51 = arith.select %49, %47, %50 : vector<32x32xi1>, vector<32x32xf32>
    %cst_29 = arith.constant dense<0xFF800000> : vector<32xf32>
    %52 = vector.multi_reduction <maximumf>, %51, %cst_29 [1] : vector<32x32xf32> to vector<32xf32>
    %53 = vector.shape_cast %52 : vector<32xf32> to vector<32x1xf32>
    %54 = vector.broadcast %53 : vector<32x1xf32> to vector<32x32xf32>
    %55 = arith.subf %51, %54 : vector<32x32xf32>
    %56 = math.exp %55 : vector<32x32xf32>
    %cst_30 = arith.constant dense<0.000000e+00> : vector<32xf32>
    %57 = vector.multi_reduction <add>, %56, %cst_30 [1] : vector<32x32xf32> to vector<32xf32>
    %58 = vector.shape_cast %57 : vector<32xf32> to vector<32x1xf32>
    %59 = vector.broadcast %58 : vector<32x1xf32> to vector<32x32xf32>
    %60 = arith.divf %56, %59 : vector<32x32xf32>
    %cst_31 = arith.constant dense<0.000000e+00> : vector<32x8xf32>
    %61 = tpu.matmul %60, %44, %cst_31 {dimension_numbers = #tpu.dot_dimension_numbers<[1], [0], [0], [1], [0, 0, 1, 1], [], []>} : vector<32x32xf32>, vector<32x8xf32>, vector<32x8xf32> -> vector<32x8xf32>
    %62 = vector.extract_strided_slice %41 {offsets = [0, 8], sizes = [32, 8], strides = [1, 1]} : vector<32x96xf32> to vector<32x8xf32>
    %63 = vector.extract_strided_slice %41 {offsets = [0, 40], sizes = [32, 8], strides = [1, 1]} : vector<32x96xf32> to vector<32x8xf32>
    %64 = vector.extract_strided_slice %41 {offsets = [0, 72], sizes = [32, 8], strides = [1, 1]} : vector<32x96xf32> to vector<32x8xf32>
    %cst_32 = arith.constant dense<0.000000e+00> : vector<32x32xf32>
    %65 = tpu.matmul %62, %63, %cst_32 {dimension_numbers = #tpu.dot_dimension_numbers<[1], [1], [0], [0], [0, 0, 1, 0], [], []>} : vector<32x8xf32>, vector<32x8xf32>, vector<32x32xf32> -> vector<32x32xf32>
    %cst_33 = arith.constant 0.353553385 : f32
    %66 = vector.broadcast %cst_33 : f32 to vector<32x32xf32>
    %67 = arith.mulf %65, %66 : vector<32x32xf32>
    %cst_34 = arith.constant 5.000000e-01 : f32
    %68 = vector.broadcast %cst_34 : f32 to vector<32x32xf32>
    %69 = arith.cmpf ogt, %12, %68 : vector<32x32xf32>
    %cst_35 = arith.constant -1.000000e+09 : f32
    %70 = vector.broadcast %cst_35 : f32 to vector<32x32xf32>
    %71 = arith.select %69, %67, %70 : vector<32x32xi1>, vector<32x32xf32>
    %cst_36 = arith.constant dense<0xFF800000> : vector<32xf32>
    %72 = vector.multi_reduction <maximumf>, %71, %cst_36 [1] : vector<32x32xf32> to vector<32xf32>
    %73 = vector.shape_cast %72 : vector<32xf32> to vector<32x1xf32>
    %74 = vector.broadcast %73 : vector<32x1xf32> to vector<32x32xf32>
    %75 = arith.subf %71, %74 : vector<32x32xf32>
    %76 = math.exp %75 : vector<32x32xf32>
    %cst_37 = arith.constant dense<0.000000e+00> : vector<32xf32>
    %77 = vector.multi_reduction <add>, %76, %cst_37 [1] : vector<32x32xf32> to vector<32xf32>
    %78 = vector.shape_cast %77 : vector<32xf32> to vector<32x1xf32>
    %79 = vector.broadcast %78 : vector<32x1xf32> to vector<32x32xf32>
    %80 = arith.divf %76, %79 : vector<32x32xf32>
    %cst_38 = arith.constant dense<0.000000e+00> : vector<32x8xf32>
    %81 = tpu.matmul %80, %64, %cst_38 {dimension_numbers = #tpu.dot_dimension_numbers<[1], [0], [0], [1], [0, 0, 1, 1], [], []>} : vector<32x32xf32>, vector<32x8xf32>, vector<32x8xf32> -> vector<32x8xf32>
    %82 = vector.extract_strided_slice %41 {offsets = [0, 16], sizes = [32, 8], strides = [1, 1]} : vector<32x96xf32> to vector<32x8xf32>
    %83 = vector.extract_strided_slice %41 {offsets = [0, 48], sizes = [32, 8], strides = [1, 1]} : vector<32x96xf32> to vector<32x8xf32>
    %84 = vector.extract_strided_slice %41 {offsets = [0, 80], sizes = [32, 8], strides = [1, 1]} : vector<32x96xf32> to vector<32x8xf32>
    %cst_39 = arith.constant dense<0.000000e+00> : vector<32x32xf32>
    %85 = tpu.matmul %82, %83, %cst_39 {dimension_numbers = #tpu.dot_dimension_numbers<[1], [1], [0], [0], [0, 0, 1, 0], [], []>} : vector<32x8xf32>, vector<32x8xf32>, vector<32x32xf32> -> vector<32x32xf32>
    %cst_40 = arith.constant 0.353553385 : f32
    %86 = vector.broadcast %cst_40 : f32 to vector<32x32xf32>
    %87 = arith.mulf %85, %86 : vector<32x32xf32>
    %cst_41 = arith.constant 5.000000e-01 : f32
    %88 = vector.broadcast %cst_41 : f32 to vector<32x32xf32>
    %89 = arith.cmpf ogt, %12, %88 : vector<32x32xf32>
    %cst_42 = arith.constant -1.000000e+09 : f32
    %90 = vector.broadcast %cst_42 : f32 to vector<32x32xf32>
    %91 = arith.select %89, %87, %90 : vector<32x32xi1>, vector<32x32xf32>
    %cst_43 = arith.constant dense<0xFF800000> : vector<32xf32>
    %92 = vector.multi_reduction <maximumf>, %91, %cst_43 [1] : vector<32x32xf32> to vector<32xf32>
    %93 = vector.shape_cast %92 : vector<32xf32> to vector<32x1xf32>
    %94 = vector.broadcast %93 : vector<32x1xf32> to vector<32x32xf32>
    %95 = arith.subf %91, %94 : vector<32x32xf32>
    %96 = math.exp %95 : vector<32x32xf32>
    %cst_44 = arith.constant dense<0.000000e+00> : vector<32xf32>
    %97 = vector.multi_reduction <add>, %96, %cst_44 [1] : vector<32x32xf32> to vector<32xf32>
    %98 = vector.shape_cast %97 : vector<32xf32> to vector<32x1xf32>
    %99 = vector.broadcast %98 : vector<32x1xf32> to vector<32x32xf32>
    %100 = arith.divf %96, %99 : vector<32x32xf32>
    %cst_45 = arith.constant dense<0.000000e+00> : vector<32x8xf32>
    %101 = tpu.matmul %100, %84, %cst_45 {dimension_numbers = #tpu.dot_dimension_numbers<[1], [0], [0], [1], [0, 0, 1, 1], [], []>} : vector<32x32xf32>, vector<32x8xf32>, vector<32x8xf32> -> vector<32x8xf32>
    %102 = vector.extract_strided_slice %41 {offsets = [0, 24], sizes = [32, 8], strides = [1, 1]} : vector<32x96xf32> to vector<32x8xf32>
    %103 = vector.extract_strided_slice %41 {offsets = [0, 56], sizes = [32, 8], strides = [1, 1]} : vector<32x96xf32> to vector<32x8xf32>
    %104 = vector.extract_strided_slice %41 {offsets = [0, 88], sizes = [32, 8], strides = [1, 1]} : vector<32x96xf32> to vector<32x8xf32>
    %cst_46 = arith.constant dense<0.000000e+00> : vector<32x32xf32>
    %105 = tpu.matmul %102, %103, %cst_46 {dimension_numbers = #tpu.dot_dimension_numbers<[1], [1], [0], [0], [0, 0, 1, 0], [], []>} : vector<32x8xf32>, vector<32x8xf32>, vector<32x32xf32> -> vector<32x32xf32>
    %cst_47 = arith.constant 0.353553385 : f32
    %106 = vector.broadcast %cst_47 : f32 to vector<32x32xf32>
    %107 = arith.mulf %105, %106 : vector<32x32xf32>
    %cst_48 = arith.constant 5.000000e-01 : f32
    %108 = vector.broadcast %cst_48 : f32 to vector<32x32xf32>
    %109 = arith.cmpf ogt, %12, %108 : vector<32x32xf32>
    %cst_49 = arith.constant -1.000000e+09 : f32
    %110 = vector.broadcast %cst_49 : f32 to vector<32x32xf32>
    %111 = arith.select %109, %107, %110 : vector<32x32xi1>, vector<32x32xf32>
    %cst_50 = arith.constant dense<0xFF800000> : vector<32xf32>
    %112 = vector.multi_reduction <maximumf>, %111, %cst_50 [1] : vector<32x32xf32> to vector<32xf32>
    %113 = vector.shape_cast %112 : vector<32xf32> to vector<32x1xf32>
    %114 = vector.broadcast %113 : vector<32x1xf32> to vector<32x32xf32>
    %115 = arith.subf %111, %114 : vector<32x32xf32>
    %116 = math.exp %115 : vector<32x32xf32>
    %cst_51 = arith.constant dense<0.000000e+00> : vector<32xf32>
    %117 = vector.multi_reduction <add>, %116, %cst_51 [1] : vector<32x32xf32> to vector<32xf32>
    %118 = vector.shape_cast %117 : vector<32xf32> to vector<32x1xf32>
    %119 = vector.broadcast %118 : vector<32x1xf32> to vector<32x32xf32>
    %120 = arith.divf %116, %119 : vector<32x32xf32>
    %cst_52 = arith.constant dense<0.000000e+00> : vector<32x8xf32>
    %121 = tpu.matmul %120, %104, %cst_52 {dimension_numbers = #tpu.dot_dimension_numbers<[1], [0], [0], [1], [0, 0, 1, 1], [], []>} : vector<32x32xf32>, vector<32x8xf32>, vector<32x8xf32> -> vector<32x8xf32>
    %122 = tpu.concatenate %61, %81, %101, %121 in 1 : vector<32x8xf32>, vector<32x8xf32>, vector<32x8xf32>, vector<32x8xf32> -> vector<32x32xf32>
    %c0_53 = arith.constant 0 : index
    %c0_54 = arith.constant 0 : index
    %123 = vector.load %arg11[%c0_53, %c0_54] : memref<32x32xf32, #tpu.memory_space<vmem>>, vector<32x32xf32>
    %cst_55 = arith.constant dense<0.000000e+00> : vector<32x32xf32>
    %124 = tpu.matmul %122, %123, %cst_55 {dimension_numbers = #tpu.dot_dimension_numbers<[1], [0], [0], [1], [0, 0, 1, 1], [], []>} : vector<32x32xf32>, vector<32x32xf32>, vector<32x32xf32> -> vector<32x32xf32>
    %c0_56 = arith.constant 0 : index
    %c0_57 = arith.constant 0 : index
    %125 = vector.load %arg12[%c0_56, %c0_57] : memref<1x32xf32, #tpu.memory_space<vmem>>, vector<1x32xf32>
    %126 = vector.broadcast %125 : vector<1x32xf32> to vector<32x32xf32>
    %127 = arith.addf %124, %126 : vector<32x32xf32>
    %128 = arith.addf %11, %127 : vector<32x32xf32>
    %c0_58 = arith.constant 0 : index
    %c0_59 = arith.constant 0 : index
    %129 = vector.load %arg13[%c0_58, %c0_59] : memref<32x64xf32, #tpu.memory_space<vmem>>, vector<32x64xf32>
    %cst_60 = arith.constant dense<0.000000e+00> : vector<32x64xf32>
    %130 = tpu.matmul %128, %129, %cst_60 {dimension_numbers = #tpu.dot_dimension_numbers<[1], [0], [0], [1], [0, 0, 1, 1], [], []>} : vector<32x32xf32>, vector<32x64xf32>, vector<32x64xf32> -> vector<32x64xf32>
    %c0_61 = arith.constant 0 : index
    %c0_62 = arith.constant 0 : index
    %131 = vector.load %arg14[%c0_61, %c0_62] : memref<1x64xf32, #tpu.memory_space<vmem>>, vector<1x64xf32>
    %132 = vector.broadcast %131 : vector<1x64xf32> to vector<32x64xf32>
    %133 = arith.addf %130, %132 : vector<32x64xf32>
    %cst_63 = arith.constant 0.000000e+00 : f32
    %134 = vector.broadcast %cst_63 : f32 to vector<32x64xf32>
    %135 = arith.maximumf %133, %134 : vector<32x64xf32>
    %c0_64 = arith.constant 0 : index
    %c0_65 = arith.constant 0 : index
    %136 = vector.load %arg15[%c0_64, %c0_65] : memref<64x32xf32, #tpu.memory_space<vmem>>, vector<64x32xf32>
    %cst_66 = arith.constant dense<0.000000e+00> : vector<32x32xf32>
    %137 = tpu.matmul %135, %136, %cst_66 {dimension_numbers = #tpu.dot_dimension_numbers<[1], [0], [0], [1], [0, 0, 1, 1], [], []>} : vector<32x64xf32>, vector<64x32xf32>, vector<32x32xf32> -> vector<32x32xf32>
    %c0_67 = arith.constant 0 : index
    %c0_68 = arith.constant 0 : index
    %138 = vector.load %arg16[%c0_67, %c0_68] : memref<1x32xf32, #tpu.memory_space<vmem>>, vector<1x32xf32>
    %139 = vector.broadcast %138 : vector<1x32xf32> to vector<32x32xf32>
    %140 = arith.addf %137, %139 : vector<32x32xf32>
    %141 = arith.addf %128, %140 : vector<32x32xf32>
    %cst_69 = arith.constant dense<0.000000e+00> : vector<32xf32>
    %142 = vector.multi_reduction <add>, %141, %cst_69 [1] : vector<32x32xf32> to vector<32xf32>
    %143 = vector.shape_cast %142 : vector<32xf32> to vector<32x1xf32>
    %cst_70 = arith.constant 3.200000e+01 : f32
    %144 = vector.broadcast %cst_70 : f32 to vector<32x1xf32>
    %145 = arith.divf %143, %144 : vector<32x1xf32>
    %146 = vector.broadcast %145 : vector<32x1xf32> to vector<32x32xf32>
    %147 = arith.subf %141, %146 : vector<32x32xf32>
    %148 = arith.mulf %147, %147 : vector<32x32xf32>
    %cst_71 = arith.constant dense<0.000000e+00> : vector<32xf32>
    %149 = vector.multi_reduction <add>, %148, %cst_71 [1] : vector<32x32xf32> to vector<32xf32>
    %150 = vector.shape_cast %149 : vector<32xf32> to vector<32x1xf32>
    %cst_72 = arith.constant 3.200000e+01 : f32
    %151 = vector.broadcast %cst_72 : f32 to vector<32x1xf32>
    %152 = arith.divf %150, %151 : vector<32x1xf32>
    %153 = vector.broadcast %145 : vector<32x1xf32> to vector<32x32xf32>
    %154 = arith.subf %141, %153 : vector<32x32xf32>
    %cst_73 = arith.constant 9.99999974E-6 : f32
    %155 = vector.broadcast %cst_73 : f32 to vector<32x1xf32>
    %156 = arith.addf %152, %155 : vector<32x1xf32>
    %157 = math.rsqrt %156 : vector<32x1xf32>
    %158 = vector.broadcast %157 : vector<32x1xf32> to vector<32x32xf32>
    %159 = arith.mulf %154, %158 : vector<32x32xf32>
    %c0_74 = arith.constant 0 : index
    %c0_75 = arith.constant 0 : index
    %160 = vector.load %arg17[%c0_74, %c0_75] : memref<1x32xf32, #tpu.memory_space<vmem>>, vector<1x32xf32>
    %161 = vector.broadcast %160 : vector<1x32xf32> to vector<32x32xf32>
    %162 = arith.mulf %159, %161 : vector<32x32xf32>
    %c0_76 = arith.constant 0 : index
    %c0_77 = arith.constant 0 : index
    %163 = vector.load %arg18[%c0_76, %c0_77] : memref<1x32xf32, #tpu.memory_space<vmem>>, vector<1x32xf32>
    %164 = vector.broadcast %163 : vector<1x32xf32> to vector<32x32xf32>
    %165 = arith.addf %162, %164 : vector<32x32xf32>
    %c0_78 = arith.constant 0 : index
    %c0_79 = arith.constant 0 : index
    %166 = vector.load %arg6[%c0_78, %c0_79] : memref<32x32xf32, #tpu.memory_space<vmem>>, vector<32x32xf32>
    %cst_80 = arith.constant dense<0.000000e+00> : vector<32xf32>
    %167 = vector.multi_reduction <add>, %165, %cst_80 [1] : vector<32x32xf32> to vector<32xf32>
    %168 = vector.shape_cast %167 : vector<32xf32> to vector<32x1xf32>
    %cst_81 = arith.constant 3.200000e+01 : f32
    %169 = vector.broadcast %cst_81 : f32 to vector<32x1xf32>
    %170 = arith.divf %168, %169 : vector<32x1xf32>
    %171 = vector.broadcast %170 : vector<32x1xf32> to vector<32x32xf32>
    %172 = arith.subf %165, %171 : vector<32x32xf32>
    %173 = arith.mulf %172, %172 : vector<32x32xf32>
    %cst_82 = arith.constant dense<0.000000e+00> : vector<32xf32>
    %174 = vector.multi_reduction <add>, %173, %cst_82 [1] : vector<32x32xf32> to vector<32xf32>
    %175 = vector.shape_cast %174 : vector<32xf32> to vector<32x1xf32>
    %cst_83 = arith.constant 3.200000e+01 : f32
    %176 = vector.broadcast %cst_83 : f32 to vector<32x1xf32>
    %177 = arith.divf %175, %176 : vector<32x1xf32>
    %178 = vector.broadcast %170 : vector<32x1xf32> to vector<32x32xf32>
    %179 = arith.subf %165, %178 : vector<32x32xf32>
    %cst_84 = arith.constant 9.99999974E-6 : f32
    %180 = vector.broadcast %cst_84 : f32 to vector<32x1xf32>
    %181 = arith.addf %177, %180 : vector<32x1xf32>
    %182 = math.rsqrt %181 : vector<32x1xf32>
    %183 = vector.broadcast %182 : vector<32x1xf32> to vector<32x32xf32>
    %184 = arith.mulf %179, %183 : vector<32x32xf32>
    %c0_85 = arith.constant 0 : index
    %c0_86 = arith.constant 0 : index
    %185 = vector.load %arg19[%c0_85, %c0_86] : memref<1x32xf32, #tpu.memory_space<vmem>>, vector<1x32xf32>
    %186 = vector.broadcast %185 : vector<1x32xf32> to vector<32x32xf32>
    %187 = arith.mulf %184, %186 : vector<32x32xf32>
    %c0_87 = arith.constant 0 : index
    %c0_88 = arith.constant 0 : index
    %188 = vector.load %arg20[%c0_87, %c0_88] : memref<1x32xf32, #tpu.memory_space<vmem>>, vector<1x32xf32>
    %189 = vector.broadcast %188 : vector<1x32xf32> to vector<32x32xf32>
    %190 = arith.addf %187, %189 : vector<32x32xf32>
    %c0_89 = arith.constant 0 : index
    %c0_90 = arith.constant 0 : index
    %191 = vector.load %arg21[%c0_89, %c0_90] : memref<32x96xf32, #tpu.memory_space<vmem>>, vector<32x96xf32>
    %cst_91 = arith.constant dense<0.000000e+00> : vector<32x96xf32>
    %192 = tpu.matmul %190, %191, %cst_91 {dimension_numbers = #tpu.dot_dimension_numbers<[1], [0], [0], [1], [0, 0, 1, 1], [], []>} : vector<32x32xf32>, vector<32x96xf32>, vector<32x96xf32> -> vector<32x96xf32>
    %c0_92 = arith.constant 0 : index
    %c0_93 = arith.constant 0 : index
    %193 = vector.load %arg22[%c0_92, %c0_93] : memref<1x96xf32, #tpu.memory_space<vmem>>, vector<1x96xf32>
    %194 = vector.broadcast %193 : vector<1x96xf32> to vector<32x96xf32>
    %195 = arith.addf %192, %194 : vector<32x96xf32>
    %196 = vector.extract_strided_slice %195 {offsets = [0, 0], sizes = [32, 8], strides = [1, 1]} : vector<32x96xf32> to vector<32x8xf32>
    %197 = vector.extract_strided_slice %195 {offsets = [0, 32], sizes = [32, 8], strides = [1, 1]} : vector<32x96xf32> to vector<32x8xf32>
    %198 = vector.extract_strided_slice %195 {offsets = [0, 64], sizes = [32, 8], strides = [1, 1]} : vector<32x96xf32> to vector<32x8xf32>
    %cst_94 = arith.constant dense<0.000000e+00> : vector<32x32xf32>
    %199 = tpu.matmul %196, %197, %cst_94 {dimension_numbers = #tpu.dot_dimension_numbers<[1], [1], [0], [0], [0, 0, 1, 0], [], []>} : vector<32x8xf32>, vector<32x8xf32>, vector<32x32xf32> -> vector<32x32xf32>
    %cst_95 = arith.constant 0.353553385 : f32
    %200 = vector.broadcast %cst_95 : f32 to vector<32x32xf32>
    %201 = arith.mulf %199, %200 : vector<32x32xf32>
    %cst_96 = arith.constant 5.000000e-01 : f32
    %202 = vector.broadcast %cst_96 : f32 to vector<32x32xf32>
    %203 = arith.cmpf ogt, %166, %202 : vector<32x32xf32>
    %cst_97 = arith.constant -1.000000e+09 : f32
    %204 = vector.broadcast %cst_97 : f32 to vector<32x32xf32>
    %205 = arith.select %203, %201, %204 : vector<32x32xi1>, vector<32x32xf32>
    %cst_98 = arith.constant dense<0xFF800000> : vector<32xf32>
    %206 = vector.multi_reduction <maximumf>, %205, %cst_98 [1] : vector<32x32xf32> to vector<32xf32>
    %207 = vector.shape_cast %206 : vector<32xf32> to vector<32x1xf32>
    %208 = vector.broadcast %207 : vector<32x1xf32> to vector<32x32xf32>
    %209 = arith.subf %205, %208 : vector<32x32xf32>
    %210 = math.exp %209 : vector<32x32xf32>
    %cst_99 = arith.constant dense<0.000000e+00> : vector<32xf32>
    %211 = vector.multi_reduction <add>, %210, %cst_99 [1] : vector<32x32xf32> to vector<32xf32>
    %212 = vector.shape_cast %211 : vector<32xf32> to vector<32x1xf32>
    %213 = vector.broadcast %212 : vector<32x1xf32> to vector<32x32xf32>
    %214 = arith.divf %210, %213 : vector<32x32xf32>
    %cst_100 = arith.constant dense<0.000000e+00> : vector<32x8xf32>
    %215 = tpu.matmul %214, %198, %cst_100 {dimension_numbers = #tpu.dot_dimension_numbers<[1], [0], [0], [1], [0, 0, 1, 1], [], []>} : vector<32x32xf32>, vector<32x8xf32>, vector<32x8xf32> -> vector<32x8xf32>
    %216 = vector.extract_strided_slice %195 {offsets = [0, 8], sizes = [32, 8], strides = [1, 1]} : vector<32x96xf32> to vector<32x8xf32>
    %217 = vector.extract_strided_slice %195 {offsets = [0, 40], sizes = [32, 8], strides = [1, 1]} : vector<32x96xf32> to vector<32x8xf32>
    %218 = vector.extract_strided_slice %195 {offsets = [0, 72], sizes = [32, 8], strides = [1, 1]} : vector<32x96xf32> to vector<32x8xf32>
    %cst_101 = arith.constant dense<0.000000e+00> : vector<32x32xf32>
    %219 = tpu.matmul %216, %217, %cst_101 {dimension_numbers = #tpu.dot_dimension_numbers<[1], [1], [0], [0], [0, 0, 1, 0], [], []>} : vector<32x8xf32>, vector<32x8xf32>, vector<32x32xf32> -> vector<32x32xf32>
    %cst_102 = arith.constant 0.353553385 : f32
    %220 = vector.broadcast %cst_102 : f32 to vector<32x32xf32>
    %221 = arith.mulf %219, %220 : vector<32x32xf32>
    %cst_103 = arith.constant 5.000000e-01 : f32
    %222 = vector.broadcast %cst_103 : f32 to vector<32x32xf32>
    %223 = arith.cmpf ogt, %166, %222 : vector<32x32xf32>
    %cst_104 = arith.constant -1.000000e+09 : f32
    %224 = vector.broadcast %cst_104 : f32 to vector<32x32xf32>
    %225 = arith.select %223, %221, %224 : vector<32x32xi1>, vector<32x32xf32>
    %cst_105 = arith.constant dense<0xFF800000> : vector<32xf32>
    %226 = vector.multi_reduction <maximumf>, %225, %cst_105 [1] : vector<32x32xf32> to vector<32xf32>
    %227 = vector.shape_cast %226 : vector<32xf32> to vector<32x1xf32>
    %228 = vector.broadcast %227 : vector<32x1xf32> to vector<32x32xf32>
    %229 = arith.subf %225, %228 : vector<32x32xf32>
    %230 = math.exp %229 : vector<32x32xf32>
    %cst_106 = arith.constant dense<0.000000e+00> : vector<32xf32>
    %231 = vector.multi_reduction <add>, %230, %cst_106 [1] : vector<32x32xf32> to vector<32xf32>
    %232 = vector.shape_cast %231 : vector<32xf32> to vector<32x1xf32>
    %233 = vector.broadcast %232 : vector<32x1xf32> to vector<32x32xf32>
    %234 = arith.divf %230, %233 : vector<32x32xf32>
    %cst_107 = arith.constant dense<0.000000e+00> : vector<32x8xf32>
    %235 = tpu.matmul %234, %218, %cst_107 {dimension_numbers = #tpu.dot_dimension_numbers<[1], [0], [0], [1], [0, 0, 1, 1], [], []>} : vector<32x32xf32>, vector<32x8xf32>, vector<32x8xf32> -> vector<32x8xf32>
    %236 = vector.extract_strided_slice %195 {offsets = [0, 16], sizes = [32, 8], strides = [1, 1]} : vector<32x96xf32> to vector<32x8xf32>
    %237 = vector.extract_strided_slice %195 {offsets = [0, 48], sizes = [32, 8], strides = [1, 1]} : vector<32x96xf32> to vector<32x8xf32>
    %238 = vector.extract_strided_slice %195 {offsets = [0, 80], sizes = [32, 8], strides = [1, 1]} : vector<32x96xf32> to vector<32x8xf32>
    %cst_108 = arith.constant dense<0.000000e+00> : vector<32x32xf32>
    %239 = tpu.matmul %236, %237, %cst_108 {dimension_numbers = #tpu.dot_dimension_numbers<[1], [1], [0], [0], [0, 0, 1, 0], [], []>} : vector<32x8xf32>, vector<32x8xf32>, vector<32x32xf32> -> vector<32x32xf32>
    %cst_109 = arith.constant 0.353553385 : f32
    %240 = vector.broadcast %cst_109 : f32 to vector<32x32xf32>
    %241 = arith.mulf %239, %240 : vector<32x32xf32>
    %cst_110 = arith.constant 5.000000e-01 : f32
    %242 = vector.broadcast %cst_110 : f32 to vector<32x32xf32>
    %243 = arith.cmpf ogt, %166, %242 : vector<32x32xf32>
    %cst_111 = arith.constant -1.000000e+09 : f32
    %244 = vector.broadcast %cst_111 : f32 to vector<32x32xf32>
    %245 = arith.select %243, %241, %244 : vector<32x32xi1>, vector<32x32xf32>
    %cst_112 = arith.constant dense<0xFF800000> : vector<32xf32>
    %246 = vector.multi_reduction <maximumf>, %245, %cst_112 [1] : vector<32x32xf32> to vector<32xf32>
    %247 = vector.shape_cast %246 : vector<32xf32> to vector<32x1xf32>
    %248 = vector.broadcast %247 : vector<32x1xf32> to vector<32x32xf32>
    %249 = arith.subf %245, %248 : vector<32x32xf32>
    %250 = math.exp %249 : vector<32x32xf32>
    %cst_113 = arith.constant dense<0.000000e+00> : vector<32xf32>
    %251 = vector.multi_reduction <add>, %250, %cst_113 [1] : vector<32x32xf32> to vector<32xf32>
    %252 = vector.shape_cast %251 : vector<32xf32> to vector<32x1xf32>
    %253 = vector.broadcast %252 : vector<32x1xf32> to vector<32x32xf32>
    %254 = arith.divf %250, %253 : vector<32x32xf32>
    %cst_114 = arith.constant dense<0.000000e+00> : vector<32x8xf32>
    %255 = tpu.matmul %254, %238, %cst_114 {dimension_numbers = #tpu.dot_dimension_numbers<[1], [0], [0], [1], [0, 0, 1, 1], [], []>} : vector<32x32xf32>, vector<32x8xf32>, vector<32x8xf32> -> vector<32x8xf32>
    %256 = vector.extract_strided_slice %195 {offsets = [0, 24], sizes = [32, 8], strides = [1, 1]} : vector<32x96xf32> to vector<32x8xf32>
    %257 = vector.extract_strided_slice %195 {offsets = [0, 56], sizes = [32, 8], strides = [1, 1]} : vector<32x96xf32> to vector<32x8xf32>
    %258 = vector.extract_strided_slice %195 {offsets = [0, 88], sizes = [32, 8], strides = [1, 1]} : vector<32x96xf32> to vector<32x8xf32>
    %cst_115 = arith.constant dense<0.000000e+00> : vector<32x32xf32>
    %259 = tpu.matmul %256, %257, %cst_115 {dimension_numbers = #tpu.dot_dimension_numbers<[1], [1], [0], [0], [0, 0, 1, 0], [], []>} : vector<32x8xf32>, vector<32x8xf32>, vector<32x32xf32> -> vector<32x32xf32>
    %cst_116 = arith.constant 0.353553385 : f32
    %260 = vector.broadcast %cst_116 : f32 to vector<32x32xf32>
    %261 = arith.mulf %259, %260 : vector<32x32xf32>
    %cst_117 = arith.constant 5.000000e-01 : f32
    %262 = vector.broadcast %cst_117 : f32 to vector<32x32xf32>
    %263 = arith.cmpf ogt, %166, %262 : vector<32x32xf32>
    %cst_118 = arith.constant -1.000000e+09 : f32
    %264 = vector.broadcast %cst_118 : f32 to vector<32x32xf32>
    %265 = arith.select %263, %261, %264 : vector<32x32xi1>, vector<32x32xf32>
    %cst_119 = arith.constant dense<0xFF800000> : vector<32xf32>
    %266 = vector.multi_reduction <maximumf>, %265, %cst_119 [1] : vector<32x32xf32> to vector<32xf32>
    %267 = vector.shape_cast %266 : vector<32xf32> to vector<32x1xf32>
    %268 = vector.broadcast %267 : vector<32x1xf32> to vector<32x32xf32>
    %269 = arith.subf %265, %268 : vector<32x32xf32>
    %270 = math.exp %269 : vector<32x32xf32>
    %cst_120 = arith.constant dense<0.000000e+00> : vector<32xf32>
    %271 = vector.multi_reduction <add>, %270, %cst_120 [1] : vector<32x32xf32> to vector<32xf32>
    %272 = vector.shape_cast %271 : vector<32xf32> to vector<32x1xf32>
    %273 = vector.broadcast %272 : vector<32x1xf32> to vector<32x32xf32>
    %274 = arith.divf %270, %273 : vector<32x32xf32>
    %cst_121 = arith.constant dense<0.000000e+00> : vector<32x8xf32>
    %275 = tpu.matmul %274, %258, %cst_121 {dimension_numbers = #tpu.dot_dimension_numbers<[1], [0], [0], [1], [0, 0, 1, 1], [], []>} : vector<32x32xf32>, vector<32x8xf32>, vector<32x8xf32> -> vector<32x8xf32>
    %276 = tpu.concatenate %215, %235, %255, %275 in 1 : vector<32x8xf32>, vector<32x8xf32>, vector<32x8xf32>, vector<32x8xf32> -> vector<32x32xf32>
    %c0_122 = arith.constant 0 : index
    %c0_123 = arith.constant 0 : index
    %277 = vector.load %arg23[%c0_122, %c0_123] : memref<32x32xf32, #tpu.memory_space<vmem>>, vector<32x32xf32>
    %cst_124 = arith.constant dense<0.000000e+00> : vector<32x32xf32>
    %278 = tpu.matmul %276, %277, %cst_124 {dimension_numbers = #tpu.dot_dimension_numbers<[1], [0], [0], [1], [0, 0, 1, 1], [], []>} : vector<32x32xf32>, vector<32x32xf32>, vector<32x32xf32> -> vector<32x32xf32>
    %c0_125 = arith.constant 0 : index
    %c0_126 = arith.constant 0 : index
    %279 = vector.load %arg24[%c0_125, %c0_126] : memref<1x32xf32, #tpu.memory_space<vmem>>, vector<1x32xf32>
    %280 = vector.broadcast %279 : vector<1x32xf32> to vector<32x32xf32>
    %281 = arith.addf %278, %280 : vector<32x32xf32>
    %282 = arith.addf %165, %281 : vector<32x32xf32>
    %c0_127 = arith.constant 0 : index
    %c0_128 = arith.constant 0 : index
    %283 = vector.load %arg25[%c0_127, %c0_128] : memref<32x64xf32, #tpu.memory_space<vmem>>, vector<32x64xf32>
    %cst_129 = arith.constant dense<0.000000e+00> : vector<32x64xf32>
    %284 = tpu.matmul %282, %283, %cst_129 {dimension_numbers = #tpu.dot_dimension_numbers<[1], [0], [0], [1], [0, 0, 1, 1], [], []>} : vector<32x32xf32>, vector<32x64xf32>, vector<32x64xf32> -> vector<32x64xf32>
    %c0_130 = arith.constant 0 : index
    %c0_131 = arith.constant 0 : index
    %285 = vector.load %arg26[%c0_130, %c0_131] : memref<1x64xf32, #tpu.memory_space<vmem>>, vector<1x64xf32>
    %286 = vector.broadcast %285 : vector<1x64xf32> to vector<32x64xf32>
    %287 = arith.addf %284, %286 : vector<32x64xf32>
    %cst_132 = arith.constant 0.000000e+00 : f32
    %288 = vector.broadcast %cst_132 : f32 to vector<32x64xf32>
    %289 = arith.maximumf %287, %288 : vector<32x64xf32>
    %c0_133 = arith.constant 0 : index
    %c0_134 = arith.constant 0 : index
    %290 = vector.load %arg27[%c0_133, %c0_134] : memref<64x32xf32, #tpu.memory_space<vmem>>, vector<64x32xf32>
    %cst_135 = arith.constant dense<0.000000e+00> : vector<32x32xf32>
    %291 = tpu.matmul %289, %290, %cst_135 {dimension_numbers = #tpu.dot_dimension_numbers<[1], [0], [0], [1], [0, 0, 1, 1], [], []>} : vector<32x64xf32>, vector<64x32xf32>, vector<32x32xf32> -> vector<32x32xf32>
    %c0_136 = arith.constant 0 : index
    %c0_137 = arith.constant 0 : index
    %292 = vector.load %arg28[%c0_136, %c0_137] : memref<1x32xf32, #tpu.memory_space<vmem>>, vector<1x32xf32>
    %293 = vector.broadcast %292 : vector<1x32xf32> to vector<32x32xf32>
    %294 = arith.addf %291, %293 : vector<32x32xf32>
    %295 = arith.addf %282, %294 : vector<32x32xf32>
    %cst_138 = arith.constant dense<0.000000e+00> : vector<32xf32>
    %296 = vector.multi_reduction <add>, %295, %cst_138 [1] : vector<32x32xf32> to vector<32xf32>
    %297 = vector.shape_cast %296 : vector<32xf32> to vector<32x1xf32>
    %cst_139 = arith.constant 3.200000e+01 : f32
    %298 = vector.broadcast %cst_139 : f32 to vector<32x1xf32>
    %299 = arith.divf %297, %298 : vector<32x1xf32>
    %300 = vector.broadcast %299 : vector<32x1xf32> to vector<32x32xf32>
    %301 = arith.subf %295, %300 : vector<32x32xf32>
    %302 = arith.mulf %301, %301 : vector<32x32xf32>
    %cst_140 = arith.constant dense<0.000000e+00> : vector<32xf32>
    %303 = vector.multi_reduction <add>, %302, %cst_140 [1] : vector<32x32xf32> to vector<32xf32>
    %304 = vector.shape_cast %303 : vector<32xf32> to vector<32x1xf32>
    %cst_141 = arith.constant 3.200000e+01 : f32
    %305 = vector.broadcast %cst_141 : f32 to vector<32x1xf32>
    %306 = arith.divf %304, %305 : vector<32x1xf32>
    %307 = vector.broadcast %299 : vector<32x1xf32> to vector<32x32xf32>
    %308 = arith.subf %295, %307 : vector<32x32xf32>
    %cst_142 = arith.constant 9.99999974E-6 : f32
    %309 = vector.broadcast %cst_142 : f32 to vector<32x1xf32>
    %310 = arith.addf %306, %309 : vector<32x1xf32>
    %311 = math.rsqrt %310 : vector<32x1xf32>
    %312 = vector.broadcast %311 : vector<32x1xf32> to vector<32x32xf32>
    %313 = arith.mulf %308, %312 : vector<32x32xf32>
    %c0_143 = arith.constant 0 : index
    %c0_144 = arith.constant 0 : index
    %314 = vector.load %arg29[%c0_143, %c0_144] : memref<1x32xf32, #tpu.memory_space<vmem>>, vector<1x32xf32>
    %315 = vector.broadcast %314 : vector<1x32xf32> to vector<32x32xf32>
    %316 = arith.mulf %313, %315 : vector<32x32xf32>
    %c0_145 = arith.constant 0 : index
    %c0_146 = arith.constant 0 : index
    %317 = vector.load %arg30[%c0_145, %c0_146] : memref<1x32xf32, #tpu.memory_space<vmem>>, vector<1x32xf32>
    %318 = vector.broadcast %317 : vector<1x32xf32> to vector<32x32xf32>
    %319 = arith.addf %316, %318 : vector<32x32xf32>
    %cst_147 = arith.constant dense<0.000000e+00> : vector<32xf32>
    %320 = vector.multi_reduction <add>, %319, %cst_147 [1] : vector<32x32xf32> to vector<32xf32>
    %321 = vector.shape_cast %320 : vector<32xf32> to vector<32x1xf32>
    %cst_148 = arith.constant 3.200000e+01 : f32
    %322 = vector.broadcast %cst_148 : f32 to vector<32x1xf32>
    %323 = arith.divf %321, %322 : vector<32x1xf32>
    %324 = vector.broadcast %323 : vector<32x1xf32> to vector<32x32xf32>
    %325 = arith.subf %319, %324 : vector<32x32xf32>
    %326 = arith.mulf %325, %325 : vector<32x32xf32>
    %cst_149 = arith.constant dense<0.000000e+00> : vector<32xf32>
    %327 = vector.multi_reduction <add>, %326, %cst_149 [1] : vector<32x32xf32> to vector<32xf32>
    %328 = vector.shape_cast %327 : vector<32xf32> to vector<32x1xf32>
    %cst_150 = arith.constant 3.200000e+01 : f32
    %329 = vector.broadcast %cst_150 : f32 to vector<32x1xf32>
    %330 = arith.divf %328, %329 : vector<32x1xf32>
    %331 = vector.broadcast %323 : vector<32x1xf32> to vector<32x32xf32>
    %332 = arith.subf %319, %331 : vector<32x32xf32>
    %cst_151 = arith.constant 9.99999974E-6 : f32
    %333 = vector.broadcast %cst_151 : f32 to vector<32x1xf32>
    %334 = arith.addf %330, %333 : vector<32x1xf32>
    %335 = math.rsqrt %334 : vector<32x1xf32>
    %336 = vector.broadcast %335 : vector<32x1xf32> to vector<32x32xf32>
    %337 = arith.mulf %332, %336 : vector<32x32xf32>
    %c0_152 = arith.constant 0 : index
    %c0_153 = arith.constant 0 : index
    %338 = vector.load %arg31[%c0_152, %c0_153] : memref<1x32xf32, #tpu.memory_space<vmem>>, vector<1x32xf32>
    %339 = vector.broadcast %338 : vector<1x32xf32> to vector<32x32xf32>
    %340 = arith.mulf %337, %339 : vector<32x32xf32>
    %c0_154 = arith.constant 0 : index
    %c0_155 = arith.constant 0 : index
    %341 = vector.load %arg32[%c0_154, %c0_155] : memref<1x32xf32, #tpu.memory_space<vmem>>, vector<1x32xf32>
    %342 = vector.broadcast %341 : vector<1x32xf32> to vector<32x32xf32>
    %343 = arith.addf %340, %342 : vector<32x32xf32>
    %c0_156 = arith.constant 0 : index
    %c0_157 = arith.constant 0 : index
    %c0_158 = arith.constant 0 : index
    %344 = vector.load %arg33[%c0_156, %c0_157, %c0_158] : memref<1x32x32xf32, #tpu.memory_space<vmem>>, vector<1x32x32xf32>
    %345 = vector.shape_cast %344 : vector<1x32x32xf32> to vector<32x32xf32>
    %346 = vector.shape_cast %343 : vector<32x32xf32> to vector<1x32x32xf32>
    tpu.vector_store %arg33[%c0_156, %c0_157, %c0_158], %346 {strides = array<i32>} : memref<1x32x32xf32, #tpu.memory_space<vmem>>, vector<1x32x32xf32>,
    return
  }
  func.func @transform_0(%arg0: i32) -> (i32, i32) {
    %c0_i32 = arith.constant 0 : i32
    %c0_i32_0 = arith.constant 0 : i32
    %c0_i32_1 = arith.constant 0 : i32
    return %c0_i32, %c0_i32_0 : i32, i32
  }
  func.func @transform_1(%arg0: i32) -> (i32, i32) {
    %c0_i32 = arith.constant 0 : i32
    %c0_i32_0 = arith.constant 0 : i32
    %c0_i32_1 = arith.constant 0 : i32
    return %c0_i32, %c0_i32_0 : i32, i32
  }
  func.func @transform_2(%arg0: i32) -> (i32, i32, i32) {
    %c0_i32 = arith.constant 0 : i32
    %c0_i32_0 = arith.constant 0 : i32
    %c0_i32_1 = arith.constant 0 : i32
    return %arg0, %c0_i32, %c0_i32_0 : i32, i32, i32
  }
  func.func @transform_3(%arg0: i32) -> (i32, i32) {
    %c0_i32 = arith.constant 0 : i32
    %c0_i32_0 = arith.constant 0 : i32
    %c0_i32_1 = arith.constant 0 : i32
    return %c0_i32, %c0_i32_0 : i32, i32
  }
  func.func @transform_4(%arg0: i32) -> (i32, i32) {
    %c0_i32 = arith.constant 0 : i32
    %c0_i32_0 = arith.constant 0 : i32
    %c0_i32_1 = arith.constant 0 : i32
    return %c0_i32, %c0_i32_0 : i32, i32
  }
  func.func @transform_5(%arg0: i32) -> (i32, i32) {
    %c0_i32 = arith.constant 0 : i32
    %c0_i32_0 = arith.constant 0 : i32
    %c0_i32_1 = arith.constant 0 : i32
    return %c0_i32, %c0_i32_0 : i32, i32
  }
  func.func @transform_6(%arg0: i32) -> (i32, i32) {
    %c0_i32 = arith.constant 0 : i32
    %c0_i32_0 = arith.constant 0 : i32
    %c0_i32_1 = arith.constant 0 : i32
    return %c0_i32, %c0_i32_0 : i32, i32
  }
  func.func @transform_7(%arg0: i32) -> (i32, i32) {
    %c0_i32 = arith.constant 0 : i32
    %c0_i32_0 = arith.constant 0 : i32
    %c0_i32_1 = arith.constant 0 : i32
    return %c0_i32, %c0_i32_0 : i32, i32
  }
  func.func @transform_8(%arg0: i32) -> (i32, i32) {
    %c0_i32 = arith.constant 0 : i32
    %c0_i32_0 = arith.constant 0 : i32
    %c0_i32_1 = arith.constant 0 : i32
    return %c0_i32, %c0_i32_0 : i32, i32
  }
  func.func @transform_9(%arg0: i32) -> (i32, i32) {
    %c0_i32 = arith.constant 0 : i32
    %c0_i32_0 = arith.constant 0 : i32
    %c0_i32_1 = arith.constant 0 : i32
    return %c0_i32, %c0_i32_0 : i32, i32
  }
  func.func @transform_10(%arg0: i32) -> (i32, i32) {
    %c0_i32 = arith.constant 0 : i32
    %c0_i32_0 = arith.constant 0 : i32
    %c0_i32_1 = arith.constant 0 : i32
    return %c0_i32, %c0_i32_0 : i32, i32
  }
  func.func @transform_11(%arg0: i32) -> (i32, i32) {
    %c0_i32 = arith.constant 0 : i32
    %c0_i32_0 = arith.constant 0 : i32
    %c0_i32_1 = arith.constant 0 : i32
    return %c0_i32, %c0_i32_0 : i32, i32
  }
  func.func @transform_12(%arg0: i32) -> (i32, i32) {
    %c0_i32 = arith.constant 0 : i32
    %c0_i32_0 = arith.constant 0 : i32
    %c0_i32_1 = arith.constant 0 : i32
    return %c0_i32, %c0_i32_0 : i32, i32
  }
  func.func @transform_13(%arg0: i32) -> (i32, i32) {
    %c0_i32 = arith.constant 0 : i32
    %c0_i32_0 = arith.constant 0 : i32
    %c0_i32_1 = arith.constant 0 : i32
    return %c0_i32, %c0_i32_0 : i32, i32
  }
  func.func @transform_14(%arg0: i32) -> (i32, i32) {
    %c0_i32 = arith.constant 0 : i32
    %c0_i32_0 = arith.constant 0 : i32
    %c0_i32_1 = arith.constant 0 : i32
    return %c0_i32, %c0_i32_0 : i32, i32
  }
  func.func @transform_15(%arg0: i32) -> (i32, i32) {
    %c0_i32 = arith.constant 0 : i32
    %c0_i32_0 = arith.constant 0 : i32
    %c0_i32_1 = arith.constant 0 : i32
    return %c0_i32, %c0_i32_0 : i32, i32
  }
  func.func @transform_16(%arg0: i32) -> (i32, i32) {
    %c0_i32 = arith.constant 0 : i32
    %c0_i32_0 = arith.constant 0 : i32
    %c0_i32_1 = arith.constant 0 : i32
    return %c0_i32, %c0_i32_0 : i32, i32
  }
  func.func @transform_17(%arg0: i32) -> (i32, i32) {
    %c0_i32 = arith.constant 0 : i32
    %c0_i32_0 = arith.constant 0 : i32
    %c0_i32_1 = arith.constant 0 : i32
    return %c0_i32, %c0_i32_0 : i32, i32
  }
  func.func @transform_18(%arg0: i32) -> (i32, i32) {
    %c0_i32 = arith.constant 0 : i32
    %c0_i32_0 = arith.constant 0 : i32
    %c0_i32_1 = arith.constant 0 : i32
    return %c0_i32, %c0_i32_0 : i32, i32
  }
  func.func @transform_19(%arg0: i32) -> (i32, i32) {
    %c0_i32 = arith.constant 0 : i32
    %c0_i32_0 = arith.constant 0 : i32
    %c0_i32_1 = arith.constant 0 : i32
    return %c0_i32, %c0_i32_0 : i32, i32
  }
  func.func @transform_20(%arg0: i32) -> (i32, i32) {
    %c0_i32 = arith.constant 0 : i32
    %c0_i32_0 = arith.constant 0 : i32
    %c0_i32_1 = arith.constant 0 : i32
    return %c0_i32, %c0_i32_0 : i32, i32
  }
  func.func @transform_21(%arg0: i32) -> (i32, i32) {
    %c0_i32 = arith.constant 0 : i32
    %c0_i32_0 = arith.constant 0 : i32
    %c0_i32_1 = arith.constant 0 : i32
    return %c0_i32, %c0_i32_0 : i32, i32
  }
  func.func @transform_22(%arg0: i32) -> (i32, i32) {
    %c0_i32 = arith.constant 0 : i32
    %c0_i32_0 = arith.constant 0 : i32
    %c0_i32_1 = arith.constant 0 : i32
    return %c0_i32, %c0_i32_0 : i32, i32
  }
  func.func @transform_23(%arg0: i32) -> (i32, i32) {
    %c0_i32 = arith.constant 0 : i32
    %c0_i32_0 = arith.constant 0 : i32
    %c0_i32_1 = arith.constant 0 : i32
    return %c0_i32, %c0_i32_0 : i32, i32
  }
  func.func @transform_24(%arg0: i32) -> (i32, i32) {
    %c0_i32 = arith.constant 0 : i32
    %c0_i32_0 = arith.constant 0 : i32
    %c0_i32_1 = arith.constant 0 : i32
    return %c0_i32, %c0_i32_0 : i32, i32
  }
  func.func @transform_25(%arg0: i32) -> (i32, i32) {
    %c0_i32 = arith.constant 0 : i32
    %c0_i32_0 = arith.constant 0 : i32
    %c0_i32_1 = arith.constant 0 : i32
    return %c0_i32, %c0_i32_0 : i32, i32
  }
  func.func @transform_26(%arg0: i32) -> (i32, i32) {
    %c0_i32 = arith.constant 0 : i32
    %c0_i32_0 = arith.constant 0 : i32
    %c0_i32_1 = arith.constant 0 : i32
    return %c0_i32, %c0_i32_0 : i32, i32
  }
  func.func @transform_27(%arg0: i32) -> (i32, i32) {
    %c0_i32 = arith.constant 0 : i32
    %c0_i32_0 = arith.constant 0 : i32
    %c0_i32_1 = arith.constant 0 : i32
    return %c0_i32, %c0_i32_0 : i32, i32
  }
  func.func @transform_28(%arg0: i32) -> (i32, i32) {
    %c0_i32 = arith.constant 0 : i32
    %c0_i32_0 = arith.constant 0 : i32
    %c0_i32_1 = arith.constant 0 : i32
    return %c0_i32, %c0_i32_0 : i32, i32
  }
  func.func @transform_29(%arg0: i32) -> (i32, i32) {
    %c0_i32 = arith.constant 0 : i32
    %c0_i32_0 = arith.constant 0 : i32
    %c0_i32_1 = arith.constant 0 : i32
    return %c0_i32, %c0_i32_0 : i32, i32
  }
  func.func @transform_30(%arg0: i32) -> (i32, i32) {
    %c0_i32 = arith.constant 0 : i32
    %c0_i32_0 = arith.constant 0 : i32
    %c0_i32_1 = arith.constant 0 : i32
    return %c0_i32, %c0_i32_0 : i32, i32
  }
  func.func @transform_31(%arg0: i32) -> (i32, i32) {
    %c0_i32 = arith.constant 0 : i32
    %c0_i32_0 = arith.constant 0 : i32
    %c0_i32_1 = arith.constant 0 : i32
    return %c0_i32, %c0_i32_0 : i32, i32
  }
  func.func @transform_32(%arg0: i32) -> (i32, i32, i32) {
    %c0_i32 = arith.constant 0 : i32
    %c0_i32_0 = arith.constant 0 : i32
    %c0_i32_1 = arith.constant 0 : i32
    return %arg0, %c0_i32, %c0_i32_0 : i32, i32, i32
  }
}

</mosaic_0001>

<bundles_post_ra>
// kernel: tpu_custom_call.1
= control target key start
LH: loop header
LB: loop body
LE: loop exit
PB: predicated region body
PF: predicated region fallthrough
CT: control target
= control target key end

     0   :  { %s7221_s6 = smov 1   ;;  %s7222_s10 = smov 2   ;;  %s8515_s0 = inlined_call_operand.smem [shape: u32[33], index: -1, kind: input, shape index: {}] }
   0x1   :  { %s7293_s5 = sld [smem:[%s8515_s0]]   ;;  %s7223_s14 = smov 3  }
   0x2   :  { %s7298_s9 = sld [smem:[%s8515_s0 + %s7221_s6]]   ;;  %s7224_s18 = smov 4  }
   0x3   :  { %s7303_s13 = sld [smem:[%s8515_s0 + %s7222_s10]]   ;;  %s7225_s22 = smov 5  }
   0x4   :  { %s7308_s17 = sld [smem:[%s8515_s0 + %s7223_s14]]   ;;  %s7226_s26 = smov 6  }
   0x5   :  { %s7313_s21 = sld [smem:[%s8515_s0 + %s7224_s18]]   ;;  %s7227_s30 = smov 7  }
   0x6   :  { %s7318_s25 = sld [smem:[%s8515_s0 + %s7225_s22]]   ;;  %s7228_s4 = smov 8  }
   0x7   :  { %8566 = sst [smem:[#allocation35_spill]] %s7293_s5  ;;  %s7229_s10 = smov 9  }
   0x8   :  { %8567 = sst [smem:[#allocation36_spill]] %s7298_s9  ;;  %s7230_s15 = smov 10  }
   0x9   :  { %8568 = sst [smem:[#allocation37_spill]] %s7303_s13  ;;  %s7231_s20 = smov 11  }
   0xa   :  { %8569 = sst [smem:[#allocation38_spill]] %s7308_s17  ;;  %s7233_s1 = smov 13  }
   0xb   :  { %8570 = sst [smem:[#allocation39_spill]] %s7313_s21  ;;  %s7234_s7 = smov 14  }
   0xc   :  { %8571 = sst [smem:[#allocation40_spill]] %s7318_s25  ;;  %s7236_s22 = smov 16  }
   0xd   :  { %s7323_s29 = sld [smem:[%s8515_s0 + %s7226_s26]]   ;;  %s7232_s26 = smov 12  }
   0xe   :  { %s7328_s3 = sld [smem:[%s8515_s0 + %s7227_s30]]   ;;  %s7237_s28 = smov 17  }
   0xf   :  { %s7333_s8 = sld [smem:[%s8515_s0 + %s7228_s4]]  }
  0x10   :  { %s7338_s14 = sld [smem:[%s8515_s0 + %s7229_s10]]  }
  0x11   :  { %s7343_s19 = sld [smem:[%s8515_s0 + %s7230_s15]]   ;;  %s7235_s15 = smov 15  }
  0x12   :  { %s7348_s24 = sld [smem:[%s8515_s0 + %s7231_s20]]  }
  0x13   :  { %s7353_s30 = sld [smem:[%s8515_s0 + %s7232_s26]]  }
  0x14   :  { %8572 = sst [smem:[#allocation41_spill]] %s7328_s3 }
  0x15   :  { %8573 = sst [smem:[#allocation42_spill]] %s7333_s8 }
  0x16   :  { %8574 = sst [smem:[#allocation43_spill]] %s7338_s14 }
  0x17   :  { %s7358_s6 = sld [smem:[%s8515_s0 + %s7233_s1]]  }
  0x18   :  { %s7363_s12 = sld [smem:[%s8515_s0 + %s7234_s7]]   ;;  %s7238_s7 = smov 18  }
  0x19   :  { %s7368_s20 = sld [smem:[%s8515_s0 + %s7235_s15]]   ;;  %s7239_s15 = smov 19  }
  0x1a   :  { %s7373_s27 = sld [smem:[%s8515_s0 + %s7236_s22]]   ;;  %s7240_s22 = smov 20  }
  0x1b   :  { %s7378_s4 = sld [smem:[%s8515_s0 + %s7237_s28]]   ;;  %s7241_s28 = smov 21  }
  0x1c   :  { %s7383_s25 = sld [smem:[%s8515_s0 + %s7238_s7]]   ;;  %s7242_s7 = smov 22  }
  0x1d   :  { %8575 = sst [smem:[#allocation44_spill]] %s7358_s6 }
  0x1e   :  { %8576 = sst [smem:[#allocation45_spill]] %s7363_s12 }
  0x1f   :  { %s7388_s12 = sld [smem:[%s8515_s0 + %s7239_s15]]   ;;  %s7243_s15 = smov 23  }
  0x20   :  { %s7393_s21 = sld [smem:[%s8515_s0 + %s7240_s22]]   ;;  %s7244_s22 = smov 24  }
  0x21   :  { %8577 = sst [smem:[#allocation46_spill]] %s7378_s4 }
  0x22   :  { %8578 = sst [smem:[#allocation47_spill]] %s7383_s25 }
  0x23   :  { %s7398_s8 = sld [smem:[%s8515_s0 + %s7241_s28]]   ;;  %s7245_s28 = smov 25  }
  0x24   :  { %s7403_s25 = sld [smem:[%s8515_s0 + %s7242_s7]]   ;;  %s7246_s7 = smov 26  }
  0x25   :  { %8579 = sst [smem:[#allocation48_spill]] %s7388_s12 }
  0x26   :  { %8580 = sst [smem:[#allocation49_spill]] %s7393_s21 }
  0x27   :  { %s7408_s12 = sld [smem:[%s8515_s0 + %s7243_s15]]   ;;  %s7247_s15 = smov 27  }
  0x28   :  { %s7413_s21 = sld [smem:[%s8515_s0 + %s7244_s22]]   ;;  %s7248_s22 = smov 28  }
  0x29   :  { %8581 = sst [smem:[#allocation50_spill]] %s7398_s8 }
  0x2a   :  { %s7418_s8 = sld [smem:[%s8515_s0 + %s7245_s28]]   ;;  %s7249_s28 = smov 29  }
  0x2b   :  { %s7423_s5 = sld [smem:[%s8515_s0 + %s7246_s7]]   ;;  %s7250_s7 = smov 30  }
  0x2c   :  { %s7433_s9 = sld [smem:[%s8515_s0 + %s7248_s22]]   ;;  %s7252_s22 = smov 32  }
  0x2d   :  { %8582 = sst [smem:[#allocation51_spill]] %s7408_s12 }
  0x2e   :  { %s7428_s12 = sld [smem:[%s8515_s0 + %s7247_s15]]   ;;  %s7251_s15 = smov 31  }
  0x30   :  { %8583 = sst [smem:[#allocation52_spill]] %s7418_s8 }
  0x31   :  { %8584 = sst [smem:[#allocation53_spill]] %s7423_s5 }
  0x32   :  { %8586 = sst [smem:[#allocation55_spill]] %s7433_s9 }
  0x33   :  { %s7438_s8 = sld [smem:[%s8515_s0 + %s7249_s28]]  }
  0x34   :  { %8585 = sst [smem:[#allocation54_spill]] %s7428_s12 }
  0x35   :  { %s7443_s5 = sld [smem:[%s8515_s0 + %s7250_s7]]  }
  0x36   :  { %s7448_s12 = sld [smem:[%s8515_s0 + %s7251_s15]]  }
  0x37   :  { %s7453_s9 = sld [smem:[%s8515_s0 + %s7252_s22]]  }
  0x39   :  { %8587 = sst [smem:[#allocation56_spill]] %s7438_s8 }
  0x3b   :  { %8588 = sst [smem:[#allocation57_spill]] %s7443_s5 }
  0x3c   :  { %8589 = sst [smem:[#allocation58_spill]] %s7448_s12 }
  0x3d   :  { %8590 = sst [smem:[#allocation59_spill]] %s7453_s9 }
  0x3e   :  { %70 = vsyncpa [#allocation3], 0 }
  0x3f   :  { %72 = vsyncpa [#allocation3 + $0x1], 0 }
  0x40   :  { %73 = vsyncpa [#allocation6], 0 }
  0x41   :  { %74 = vsyncpa [#allocation9], 0 }
  0x42   :  { %75 = vsyncpa [#allocation12], 0 }
  0x43   :  { %76 = vsyncpa [#allocation15], 0 }
  0x44   :  { %77 = vsyncpa [#allocation18], 0 }
  0x45   :  { %78 = vsyncpa [#allocation21], 0 }
  0x46   :  { %79 = vsyncpa [#allocation24], 0 }
  0x47   :  { %80 = vsyncpa [#allocation4], 0 }
  0x48   :  { %82 = vsyncpa [#allocation4 + $0x1], 0  ;;  %s7455_s28 = smov 0   ;;  %s7457_s1 = smov 0  }
  0x49   :  { %s7459_s2 = smov 0   ;;  %s7461_s7 = smov 0  }
  0x4a LB: > { %s8591_s13 = sld [smem:[#allocation37_spill]]  ;;  %s8592_s14 = sld [smem:[#allocation43_spill]]  ;;  %s7211_s1 = sphi %s7457_s1, %s8658_s1   ;;  %s7207_s28 = sphi %s7455_s28, %s8657_s28   ;;  %s7219_s7 = sphi %s7461_s7, %s8660_s7   ;;  %s7215_s2 = sphi %s7459_s2, %s8659_s2  }
  0x4b   : > { %s8593_s6 = sld [smem:[#allocation44_spill]]  ;;  %s8594_s4 = sld [smem:[#allocation46_spill]] }
  0x4c   : > { %s8595_s17 = sld [smem:[#allocation38_spill]]  ;;  %s8596_s3 = sld [smem:[#allocation41_spill]] }
  0x4d   : > { %s7253_s0 = smov [#allocation5]   ;;  %s7476_s11 = sadd.s32 4294967295, %s7219_s7  }
  0x4e   : > { %s815_s10 = sshll.u32 %s7253_s0, 4  ;;  %p5166_p0 = scmp.ge.s32.totalorder %s7219_s7, 1  ;;  %s816_s10 = int_to_ptr.vmem [resolvable:$true] %s815_s10 }
  0x4f   : > { %p8525_p1 = scmp.eq.s32.totalorder %s7476_s11, 0  ;;  %p796_p2 = scmp.lt.s32.totalorder %s7219_s7, 7 }
  0x50   : > { %s7254_s16 = smov [#allocation8]   ;;  %s7255_s22 = smov [#allocation11]  }
  0x51   : > { %p7481_p3 = pnand %p5166_p0, %p796_p2  ;;  %s843_s18 = sshll.u32 %s7254_s16, 4  ;;  %s7487_s18 = int_to_ptr.vmem [resolvable:$true] %s843_s18 }
  0x52   : > { %s867_s23 = sshll.u32 %s7255_s22, 4  ;;  %s6731_s0 = scalar_lea.hbm %s8595_s17, 16  ;;  %s7495_s23 = int_to_ptr.vmem [resolvable:$true] %s867_s23 }
  0x53   : > { %s8597_s15 = scalar_select %p7481_p3, 1, 0 }
  0x54   : > { %p6233_p4 = pneg %p7481_p3  ;;  %p6732_p6 = scmp.ne.s32.totalorder %s8595_s17, %s6731_s0 }
  0x55   : > { %p6738_p10 = scmp.lt.u32.totalorder %s6731_s0, %s8595_s17 }
  0x56   : > { %p7491_p5 = pnand %p6233_p4, %p8525_p1 }
  0x58   : > { %p7501_p7 = pneg %p7491_p5 }
  0x5a   : > { %p6734_p8 = pnand %p7501_p7, %p6732_p6 }
  0x5c   : > { %p6735_p9 = pneg %p6734_p8 }
  0x5e   : > { %p6740_p11 = pnand %p6738_p10, %p6735_p9 }
  0x60   : > { %6743 = shalt.err (!%p6740_p11)
}
  0x61   : > { %s6744_s16 = scalar_lea.vmem %s816_s10, 16  ;;  %s6751_s22 = scalar_lea.vmem %s816_s10, 32 }
  0x62   : > { %p6745_p12 = scmp.ne.s32.totalorder %s816_s10, %s6744_s16  ;;  %p6752_p2 = scmp.lt.s32.totalorder %s816_s10, %s816_s10 }
  0x63   : > { %p6753_p4 = scmp.lt.s32.totalorder %s6751_s22, %s6744_s16 }
  0x64   : > { %p6747_p13 = pnand %p6745_p12, %p7501_p7 }
  0x65   : > { %p6754_p1 = por %p6753_p4, %p6752_p2 }
  0x66   : > { %p6748_p0 = pneg %p6747_p13 }
  0x68   : > { %p6755_p3 = pnand %p6754_p1, %p6748_p0 }
  0x6a   : > { %6758 = shalt.err (!%p6755_p3)
}
  0x6b   : > { %6236 = dma.hbm_to_vmem [thread:$0]  (!%p7491_p5), %s8595_s17, 16, %s816_s10, [#allocation6]  }
  0x6c   : > { %s6759_s0 = scalar_lea.hbm %s8596_s3, 16 }
  0x6d   : > { %p6760_p6 = scmp.ne.s32.totalorder %s8596_s3, %s6759_s0  ;;  %p6766_p10 = scmp.lt.u32.totalorder %s6759_s0, %s8596_s3 }
  0x6f   : > { %p6762_p8 = pnand %p6760_p6, %p7501_p7 }
  0x71   : > { %p6763_p9 = pneg %p6762_p8 }
  0x73   : > { %p6768_p11 = pnand %p6766_p10, %p6763_p9 }
  0x75   : > { %6771 = shalt.err (!%p6768_p11)
}
  0x76   : > { %s6772_s16 = scalar_lea.vmem %s7487_s18, 16  ;;  %s6779_s22 = scalar_lea.vmem %s7487_s18, 32 }
  0x77   : > { %p6773_p1 = scmp.ne.s32.totalorder %s7487_s18, %s6772_s16  ;;  %p6780_p13 = scmp.lt.s32.totalorder %s7487_s18, %s7487_s18 }
  0x78   : > { %p6781_p0 = scmp.lt.s32.totalorder %s6779_s22, %s6772_s16 }
  0x79   : > { %p6775_p3 = pnand %p6773_p1, %p7501_p7 }
  0x7a   : > { %p6782_p2 = por %p6781_p0, %p6780_p13 }
  0x7b   : > { %p6776_p12 = pneg %p6775_p3 }
  0x7d   : > { %p6783_p4 = pnand %p6782_p2, %p6776_p12 }
  0x7f   : > { %6786 = shalt.err (!%p6783_p4)
}
  0x80   : > { %6242 = dma.hbm_to_vmem [thread:$0]  (!%p7491_p5), %s8596_s3, 16, %s7487_s18, [#allocation9]  }
  0x81   : > { %s6787_s10 = scalar_lea.hbm %s7343_s19, 512 }
  0x82   : > { %p6788_p6 = scmp.ne.s32.totalorder %s7343_s19, %s6787_s10  ;;  %p6794_p10 = scmp.lt.u32.totalorder %s6787_s10, %s7343_s19 }
  0x84   : > { %p6790_p8 = pnand %p6788_p6, %p7501_p7 }
  0x86   : > { %p6791_p9 = pneg %p6790_p8 }
  0x88   : > { %p6796_p11 = pnand %p6794_p10, %p6791_p9 }
  0x8a   : > { %6799 = shalt.err (!%p6796_p11)
}
  0x8b   : > { %s6800_s0 = scalar_lea.vmem %s7495_s23, 512  ;;  %p6808_p13 = scmp.lt.s32.totalorder %s7495_s23, %s7495_s23 }
  0x8c   : > { %p6801_p1 = scmp.ne.s32.totalorder %s7495_s23, %s6800_s0  ;;  %p6809_p0 = scmp.lt.s32.totalorder %s6800_s0, %s6800_s0 }
  0x8e   : > { %p6803_p3 = pnand %p6801_p1, %p7501_p7  ;;  %p6810_p2 = por %p6809_p0, %p6808_p13 }
  0x90   : > { %p6804_p12 = pneg %p6803_p3 }
  0x92   : > { %p6811_p4 = pnand %p6810_p2, %p6804_p12 }
  0x94   : > { %6814 = shalt.err (!%p6811_p4)
}
  0x95   : > { %s8529_s18 = smov 128   ;;  %s7257_s16 = smov 8  }
  0x96   : > { %6248 = dma.hbm_to_vmem [thread:$0]  (!%p7491_p5), %s7343_s19, 512, %s7495_s23, [#allocation12], %s8529_s18, %s8529_s18, %s7257_s16  }
  0x97   : > { %s7258_s22 = smov [#allocation14]   ;;  %s7259_s0 = smov [#allocation17]  }
  0x98   : > { %s891_s10 = sshll.u32 %s7258_s22, 4  ;;  %s919_s3 = sshll.u32 %s7259_s0, 4  ;;  %s892_s10 = int_to_ptr.vmem [resolvable:$true] %s891_s10  ;;  %s920_s3 = int_to_ptr.vmem [resolvable:$true] %s919_s3 }
  0x99   : > { %s6815_s17 = scalar_lea.hbm %s7353_s30, 512 }
  0x9a   : > { %p6816_p6 = scmp.ne.s32.totalorder %s7353_s30, %s6815_s17  ;;  %p6822_p10 = scmp.lt.u32.totalorder %s6815_s17, %s7353_s30 }
  0x9c   : > { %p6818_p8 = pnand %p6816_p6, %p7501_p7 }
  0x9e   : > { %p6819_p9 = pneg %p6818_p8 }
  0xa0   : > { %p6824_p11 = pnand %p6822_p10, %p6819_p9 }
  0xa2   : > { %6827 = shalt.err (!%p6824_p11)
}
  0xa3   : > { %s6828_s12 = scalar_lea.vmem %s892_s10, 512  ;;  %p6836_p13 = scmp.lt.s32.totalorder %s892_s10, %s892_s10 }
  0xa4   : > { %p6829_p1 = scmp.ne.s32.totalorder %s892_s10, %s6828_s12  ;;  %p6837_p0 = scmp.lt.s32.totalorder %s6828_s12, %s6828_s12 }
  0xa6   : > { %p6831_p3 = pnand %p6829_p1, %p7501_p7  ;;  %p6838_p2 = por %p6837_p0, %p6836_p13 }
  0xa8   : > { %p6832_p12 = pneg %p6831_p3 }
  0xaa   : > { %p6839_p4 = pnand %p6838_p2, %p6832_p12 }
  0xac   : > { %6842 = shalt.err (!%p6839_p4)
}
  0xad   : > { %6254 = dma.hbm_to_vmem [thread:$0]  (!%p7491_p5), %s7353_s30, 512, %s892_s10, [#allocation15], %s8529_s18, %s8529_s18, %s7257_s16  }
  0xae   : > { %s6843_s17 = scalar_lea.hbm %s7368_s20, 16 }
  0xaf   : > { %p6844_p6 = scmp.ne.s32.totalorder %s7368_s20, %s6843_s17  ;;  %p6850_p10 = scmp.lt.u32.totalorder %s6843_s17, %s7368_s20 }
  0xb1   : > { %p6846_p8 = pnand %p6844_p6, %p7501_p7 }
  0xb3   : > { %p6847_p9 = pneg %p6846_p8 }
  0xb5   : > { %p6852_p11 = pnand %p6850_p10, %p6847_p9 }
  0xb7   : > { %6855 = shalt.err (!%p6852_p11)
}
  0xb8   : > { %s6856_s12 = scalar_lea.vmem %s920_s3, 16  ;;  %s6863_s23 = scalar_lea.vmem %s920_s3, 32 }
  0xb9   : > { %p6857_p1 = scmp.ne.s32.totalorder %s920_s3, %s6856_s12  ;;  %p6864_p13 = scmp.lt.s32.totalorder %s920_s3, %s920_s3 }
  0xba   : > { %p6865_p0 = scmp.lt.s32.totalorder %s6863_s23, %s6856_s12 }
  0xbb   : > { %p6859_p3 = pnand %p6857_p1, %p7501_p7 }
  0xbc   : > { %p6866_p2 = por %p6865_p0, %p6864_p13 }
  0xbd   : > { %p6860_p12 = pneg %p6859_p3 }
  0xbf   : > { %p6867_p4 = pnand %p6866_p2, %p6860_p12 }
  0xc1   : > { %6870 = shalt.err (!%p6867_p4)
}
  0xc2   : > { %6260 = dma.hbm_to_vmem [thread:$0]  (!%p7491_p5), %s7368_s20, 16, %s920_s3, [#allocation18]  }
  0xc3   : > { %s7260_s22 = smov [#allocation20]   ;;  %s7261_s0 = smov [#allocation7]  }
  0xc4   : > { %s941_s10 = sshll.u32 %s7260_s22, 4  ;;  %s832_s17 = sshll.u32 %s7261_s0, 4  ;;  %s942_s10 = int_to_ptr.vmem [resolvable:$true] %s941_s10  ;;  %s833_s17 = int_to_ptr.vmem [resolvable:$true] %s832_s17 }
  0xc5   : > { %s6871_s18 = scalar_lea.hbm %s8594_s4, 16 }
  0xc6   : > { %p6872_p6 = scmp.ne.s32.totalorder %s8594_s4, %s6871_s18  ;;  %p6878_p10 = scmp.lt.u32.totalorder %s6871_s18, %s8594_s4 }
  0xc8   : > { %p6874_p8 = pnand %p6872_p6, %p7501_p7 }
  0xca   : > { %p6875_p9 = pneg %p6874_p8 }
  0xcc   : > { %p6880_p11 = pnand %p6878_p10, %p6875_p9 }
  0xce   : > { %6883 = shalt.err (!%p6880_p11)
}
  0xcf   : > { %s6884_s12 = scalar_lea.vmem %s942_s10, 16  ;;  %s6891_s3 = scalar_lea.vmem %s942_s10, 32 }
  0xd0   : > { %p6885_p1 = scmp.ne.s32.totalorder %s942_s10, %s6884_s12  ;;  %p6892_p13 = scmp.lt.s32.totalorder %s942_s10, %s942_s10 }
  0xd1   : > { %p6893_p0 = scmp.lt.s32.totalorder %s6891_s3, %s6884_s12 }
  0xd2   : > { %p6887_p3 = pnand %p6885_p1, %p7501_p7 }
  0xd3   : > { %p6894_p2 = por %p6893_p0, %p6892_p13 }
  0xd4   : > { %p6888_p12 = pneg %p6887_p3 }
  0xd6   : > { %p6895_p4 = pnand %p6894_p2, %p6888_p12 }
  0xd8   : > { %6898 = shalt.err (!%p6895_p4)
}
  0xd9   : > { %6266 = dma.hbm_to_vmem [thread:$0]  (!%p7491_p5), %s8594_s4, 16, %s942_s10, [#allocation21]  }
  0xda   : > { %s6899_s18 = scalar_lea.hbm %s7323_s29, 16 }
  0xdb   : > { %p6900_p6 = scmp.ne.s32.totalorder %s7323_s29, %s6899_s18  ;;  %p6906_p10 = scmp.lt.u32.totalorder %s6899_s18, %s7323_s29 }
  0xdd   : > { %p6902_p8 = pnand %p6900_p6, %p7501_p7 }
  0xdf   : > { %p6903_p9 = pneg %p6902_p8 }
  0xe1   : > { %p6908_p11 = pnand %p6906_p10, %p6903_p9 }
  0xe3   : > { %6911 = shalt.err (!%p6908_p11)
}
  0xe4   : > { %s6912_s23 = scalar_lea.vmem %s833_s17, 16  ;;  %s6919_s22 = scalar_lea.vmem %s833_s17, 32 }
  0xe5   : > { %p6913_p1 = scmp.ne.s32.totalorder %s833_s17, %s6912_s23  ;;  %p6920_p13 = scmp.lt.s32.totalorder %s833_s17, %s833_s17 }
  0xe6   : > { %p6921_p0 = scmp.lt.s32.totalorder %s6919_s22, %s6912_s23 }
  0xe7   : > { %p6915_p3 = pnand %p6913_p1, %p7501_p7 }
  0xe8   : > { %p6922_p2 = por %p6921_p0, %p6920_p13 }
  0xe9   : > { %p6916_p12 = pneg %p6915_p3 }
  0xeb   : > { %p6923_p4 = pnand %p6922_p2, %p6916_p12 }
  0xed   : > { %6926 = shalt.err (!%p6923_p4)
}
  0xee   : > { %6239 = dma.hbm_to_vmem [thread:$0]  (!%p7491_p5), %s7323_s29, 16, %s833_s17, [#allocation6]  }
  0xef   : > { %s7262_s10 = smov [#allocation10]   ;;  %s7263_s12 = smov [#allocation13]  }
  0xf0   : > { %s857_s0 = sshll.u32 %s7262_s10, 4  ;;  %s881_s3 = sshll.u32 %s7263_s12, 4  ;;  %s858_s0 = int_to_ptr.vmem [resolvable:$true] %s857_s0  ;;  %s882_s3 = int_to_ptr.vmem [resolvable:$true] %s881_s3 }
  0xf1   : > { %s6927_s18 = scalar_lea.hbm %s8592_s14, 16 }
  0xf2   : > { %p6928_p6 = scmp.ne.s32.totalorder %s8592_s14, %s6927_s18  ;;  %p6934_p10 = scmp.lt.u32.totalorder %s6927_s18, %s8592_s14 }
  0xf4   : > { %p6930_p8 = pnand %p6928_p6, %p7501_p7 }
  0xf6   : > { %p6931_p9 = pneg %p6930_p8 }
  0xf8   : > { %p6936_p11 = pnand %p6934_p10, %p6931_p9 }
  0xfa   : > { %6939 = shalt.err (!%p6936_p11)
}
  0xfb   : > { %s6940_s23 = scalar_lea.vmem %s858_s0, 16  ;;  %s6947_s17 = scalar_lea.vmem %s858_s0, 32 }
  0xfc   : > { %p6941_p1 = scmp.ne.s32.totalorder %s858_s0, %s6940_s23  ;;  %p6948_p13 = scmp.lt.s32.totalorder %s858_s0, %s858_s0 }
  0xfd   : > { %p6949_p0 = scmp.lt.s32.totalorder %s6947_s17, %s6940_s23 }
  0xfe   : > { %p6943_p3 = pnand %p6941_p1, %p7501_p7 }
  0xff   : > { %p6950_p2 = por %p6949_p0, %p6948_p13 }
 0x100   : > { %p6944_p12 = pneg %p6943_p3 }
 0x102   : > { %p6951_p4 = pnand %p6950_p2, %p6944_p12 }
 0x104   : > { %6954 = shalt.err (!%p6951_p4)
}
 0x105   : > { %6245 = dma.hbm_to_vmem [thread:$0]  (!%p7491_p5), %s8592_s14, 16, %s858_s0, [#allocation9]  }
 0x106   : > { %s6955_s22 = scalar_lea.hbm %s7348_s24, 16 }
 0x107   : > { %p6956_p6 = scmp.ne.s32.totalorder %s7348_s24, %s6955_s22  ;;  %p6962_p10 = scmp.lt.u32.totalorder %s6955_s22, %s7348_s24 }
 0x109   : > { %p6958_p8 = pnand %p6956_p6, %p7501_p7 }
 0x10b   : > { %p6959_p9 = pneg %p6958_p8 }
 0x10d   : > { %p6964_p11 = pnand %p6962_p10, %p6959_p9 }
 0x10f   : > { %6967 = shalt.err (!%p6964_p11)
}
 0x110   : > { %s6968_s10 = scalar_lea.vmem %s882_s3, 16  ;;  %s6975_s12 = scalar_lea.vmem %s882_s3, 32 }
 0x111   : > { %p6969_p1 = scmp.ne.s32.totalorder %s882_s3, %s6968_s10  ;;  %p6976_p13 = scmp.lt.s32.totalorder %s882_s3, %s882_s3 }
 0x112   : > { %p6977_p0 = scmp.lt.s32.totalorder %s6975_s12, %s6968_s10 }
 0x113   : > { %p6971_p3 = pnand %p6969_p1, %p7501_p7 }
 0x114   : > { %p6978_p2 = por %p6977_p0, %p6976_p13 }
 0x115   : > { %p6972_p12 = pneg %p6971_p3 }
 0x117   : > { %p6979_p4 = pnand %p6978_p2, %p6972_p12 }
 0x119   : > { %6982 = shalt.err (!%p6979_p4)
}
 0x11a   : > { %6251 = dma.hbm_to_vmem [thread:$0]  (!%p7491_p5), %s7348_s24, 16, %s882_s3, [#allocation12]  }
 0x11b   : > { %s7264_s0 = smov [#allocation16]   ;;  %s7265_s23 = smov [#allocation19]  }
 0x11c   : > { %s905_s18 = sshll.u32 %s7264_s0, 4  ;;  %s930_s17 = sshll.u32 %s7265_s23, 4  ;;  %s906_s18 = int_to_ptr.vmem [resolvable:$true] %s905_s18  ;;  %s931_s17 = int_to_ptr.vmem [resolvable:$true] %s930_s17 }
 0x11d   : > { %s6983_s22 = scalar_lea.hbm %s8593_s6, 16 }
 0x11e   : > { %p6984_p6 = scmp.ne.s32.totalorder %s8593_s6, %s6983_s22  ;;  %p6990_p10 = scmp.lt.u32.totalorder %s6983_s22, %s8593_s6 }
 0x120   : > { %p6986_p8 = pnand %p6984_p6, %p7501_p7 }
 0x122   : > { %p6987_p9 = pneg %p6986_p8 }
 0x124   : > { %p6992_p11 = pnand %p6990_p10, %p6987_p9 }
 0x126   : > { %6995 = shalt.err (!%p6992_p11)
}
 0x127   : > { %s6996_s10 = scalar_lea.vmem %s906_s18, 16  ;;  %s7003_s3 = scalar_lea.vmem %s906_s18, 32 }
 0x128   : > { %p6997_p1 = scmp.ne.s32.totalorder %s906_s18, %s6996_s10  ;;  %p7004_p13 = scmp.lt.s32.totalorder %s906_s18, %s906_s18 }
 0x129   : > { %p7005_p0 = scmp.lt.s32.totalorder %s7003_s3, %s6996_s10 }
 0x12a   : > { %p6999_p3 = pnand %p6997_p1, %p7501_p7 }
 0x12b   : > { %p7006_p2 = por %p7005_p0, %p7004_p13 }
 0x12c   : > { %p7000_p12 = pneg %p6999_p3 }
 0x12e   : > { %p7007_p4 = pnand %p7006_p2, %p7000_p12 }
 0x130   : > { %7010 = shalt.err (!%p7007_p4)
}
 0x131   : > { %6257 = dma.hbm_to_vmem [thread:$0]  (!%p7491_p5), %s8593_s6, 16, %s906_s18, [#allocation15]  }
 0x132   : > { %s7011_s12 = scalar_lea.hbm %s7373_s27, 16 }
 0x133   : > { %p7012_p6 = scmp.ne.s32.totalorder %s7373_s27, %s7011_s12  ;;  %p7018_p10 = scmp.lt.u32.totalorder %s7011_s12, %s7373_s27 }
 0x135   : > { %p7014_p8 = pnand %p7012_p6, %p7501_p7 }
 0x137   : > { %p7015_p9 = pneg %p7014_p8 }
 0x139   : > { %p7020_p11 = pnand %p7018_p10, %p7015_p9 }
 0x13b   : > { %7023 = shalt.err (!%p7020_p11)
}
 0x13c   : > { %s7024_s0 = scalar_lea.vmem %s931_s17, 16  ;;  %s7031_s23 = scalar_lea.vmem %s931_s17, 32 }
 0x13d   : > { %p7025_p1 = scmp.ne.s32.totalorder %s931_s17, %s7024_s0  ;;  %p7032_p13 = scmp.lt.s32.totalorder %s931_s17, %s931_s17 }
 0x13e   : > { %p7033_p0 = scmp.lt.s32.totalorder %s7031_s23, %s7024_s0 }
 0x13f   : > { %p7027_p3 = pnand %p7025_p1, %p7501_p7 }
 0x140   : > { %p7034_p2 = por %p7033_p0, %p7032_p13 }
 0x141   : > { %p7028_p12 = pneg %p7027_p3 }
 0x143   : > { %p7035_p4 = pnand %p7034_p2, %p7028_p12 }
 0x145   : > { %7038 = shalt.err (!%p7035_p4)
}
 0x146   : > { %6263 = dma.hbm_to_vmem [thread:$0]  (!%p7491_p5), %s7373_s27, 16, %s931_s17, [#allocation18]  }
 0x147   : > { %s7266_s18 = smov [#allocation22]   ;;  %s7267_s10 = smov [#allocation23]  }
 0x148   : > { %s963_s22 = sshll.u32 %s7266_s18, 4  ;;  %s979_s3 = sshll.u32 %s7267_s10, 4  ;;  %s964_s22 = int_to_ptr.vmem [resolvable:$true] %s963_s22  ;;  %s980_s3 = int_to_ptr.vmem [resolvable:$true] %s979_s3 }
 0x149   : > { %s7039_s12 = scalar_lea.hbm %s7403_s25, 512 }
 0x14a   : > { %p7040_p6 = scmp.ne.s32.totalorder %s7403_s25, %s7039_s12  ;;  %p7046_p10 = scmp.lt.u32.totalorder %s7039_s12, %s7403_s25 }
 0x14c   : > { %p7042_p8 = pnand %p7040_p6, %p7501_p7 }
 0x14e   : > { %p7043_p9 = pneg %p7042_p8 }
 0x150   : > { %p7048_p11 = pnand %p7046_p10, %p7043_p9 }
 0x152   : > { %7051 = shalt.err (!%p7048_p11)
}
 0x153   : > { %s7052_s0 = scalar_lea.vmem %s964_s22, 512  ;;  %p7060_p13 = scmp.lt.s32.totalorder %s964_s22, %s964_s22 }
 0x154   : > { %p7053_p1 = scmp.ne.s32.totalorder %s964_s22, %s7052_s0  ;;  %p7061_p0 = scmp.lt.s32.totalorder %s7052_s0, %s7052_s0 }
 0x156   : > { %p7055_p3 = pnand %p7053_p1, %p7501_p7  ;;  %p7062_p2 = por %p7061_p0, %p7060_p13 }
 0x158   : > { %p7056_p12 = pneg %p7055_p3 }
 0x15a   : > { %p7063_p4 = pnand %p7062_p2, %p7056_p12 }
 0x15c   : > { %7066 = shalt.err (!%p7063_p4)
}
 0x15d   : > { %s8600_s17 = smov 128   ;;  %s7067_s23 = scalar_lea.hbm %s7413_s21, 512 }
 0x15e   : > { %6269 = dma.hbm_to_vmem [thread:$0]  (!%p7491_p5), %s7403_s25, 512, %s964_s22, [#allocation21], %s8600_s17, %s8600_s17, %s7257_s16  }
 0x15f   : > { %p7068_p6 = scmp.ne.s32.totalorder %s7413_s21, %s7067_s23  ;;  %p7074_p10 = scmp.lt.u32.totalorder %s7067_s23, %s7413_s21 }
 0x161   : > { %p7070_p8 = pnand %p7068_p6, %p7501_p7 }
 0x163   : > { %p7071_p9 = pneg %p7070_p8 }
 0x165   : > { %p7076_p11 = pnand %p7074_p10, %p7071_p9 }
 0x167   : > { %7079 = shalt.err (!%p7076_p11)
}
 0x168   : > { %s7080_s18 = scalar_lea.vmem %s980_s3, 512  ;;  %p7088_p13 = scmp.lt.s32.totalorder %s980_s3, %s980_s3 }
 0x169   : > { %p7081_p1 = scmp.ne.s32.totalorder %s980_s3, %s7080_s18  ;;  %p7089_p0 = scmp.lt.s32.totalorder %s7080_s18, %s7080_s18 }
 0x16b   : > { %p7083_p3 = pnand %p7081_p1, %p7501_p7  ;;  %p7090_p2 = por %p7089_p0, %p7088_p13 }
 0x16d   : > { %p7084_p12 = pneg %p7083_p3 }
 0x16f   : > { %p7091_p4 = pnand %p7090_p2, %p7084_p12 }
 0x171   : > { %7094 = shalt.err (!%p7091_p4)
}
 0x172   : > { %6272 = dma.hbm_to_vmem [thread:$0]  (!%p7491_p5), %s7413_s21, 512, %s980_s3, [#allocation24], %s8600_s17, %s8600_s17, %s7257_s16  }
 0x173   : > { %s5165_s9 = sadd.s32 4294967294, %s7219_s7   ;;  %s7658_s26 = sadd.s32 1, %s7219_s7  }
 0x174   : > { %s137_s22 = sadd.s32 1, %s7215_s2  ;;  %s134_s10 = ssub.s32 %s7219_s7, %s7658_s26 }
 0x175   : > { %p144_p7 = scmp.ne.s32.totalorder %s7215_s2, %s7211_s1  ;;  %p135_p6 = scmp.eq.s32.totalorder %s134_s10, 0 }
 0x176   : > { %p145_p8 = scmp.eq.s32.totalorder %s7219_s7, 0  ;;  %p150_p9 = scmp.ne.s32.totalorder %s7211_s1, %s7207_s28 }
 0x177   : > { %p783_p10 = scmp.eq.s32.totalorder %s7476_s11, 5  ;;  %p8601_p1 = scmp.eq.s32.totalorder %s7476_s11, 0 }
 0x178   : > { %s7670_s12 = scalar_select %p135_p6, %s7215_s2, %s137_s22  }
 0x179   : > { %p146_p11 = por %p145_p8, %p144_p7  ;;  %p7674_p3 = por %p8601_p1, %p150_p9 }
 0x17a   : > { %p7678_p5 = por %p783_p10, %p144_p7  ;;  %p789_p12 = scmp.eq.s32.totalorder %s5165_s9, 5 }
 0x17b   : > { %s8602_s16 = scalar_select %p7674_p3, 1, 0 }
 0x17c   : > { %s8603_s3 = scalar_select %p7678_p5, 1, 0 }
 0x17d   : > { %p6294_p13 = scmp.lt.s32.totalorder %s7219_s7, 6  ;;  %s1014_s0 = sand.u32 1, %s7215_s2  }
 0x17e   : > { %p7684_p0 = por %p789_p12, %p150_p9  ;;  %s5181_s23 = sshll.u32 %s7219_s7, 4 }
 0x17f   : > { %s7690_s18 = scalar_lea.hbm %s8591_s13, %s5181_s23  ;;  %s1017_s22 = scalar_lea.vmem [#allocation2], %s1014_s0 }
 0x180   : > { %s8604_s17 = scalar_select %p7684_p0, 1, 0 }
 0x181   : > { %s1024_s10 = sshll.u32 %s1017_s22, 4  ;;  %p7694_p2 = pnand %p6294_p13, %p146_p11  ;;  %s7692_s10 = int_to_ptr.vmem [resolvable:$true] %s1024_s10 }
 0x182   : > { %s1015_s4 = scalar_lea.sflag [#allocation3], %s1014_s0  ;;  %s7095_s6 = scalar_lea.hbm %s7690_s18, 16 }
 0x183   : > { %p7096_p4 = scmp.ne.s32.totalorder %s7690_s18, %s7095_s6  ;;  %p7097_p7 = pneg %p7694_p2 }
 0x184   : > { %s7100_s23 = scalar_lea.hbm %s8591_s13, 96  ;;  %p7101_p9 = scmp.lt.u32.totalorder %s7690_s18, %s8591_s13 }
 0x185   : > { %p7098_p6 = pnand %p7097_p7, %p7096_p4  ;;  %p7102_p10 = scmp.lt.u32.totalorder %s7100_s23, %s7095_s6 }
 0x186   : > { %p7104_p12 = scmp.lt.u32.totalorder %s7095_s6, %s7690_s18 }
 0x187   : > { %p7099_p8 = pneg %p7098_p6  ;;  %p7103_p1 = por %p7102_p10, %p7101_p9 }
 0x189   : > { %p7105_p11 = por %p7104_p12, %p7103_p1 }
 0x18b   : > { %p7106_p13 = pnand %p7105_p11, %p7099_p8 }
 0x18d   : > { %7109 = shalt.err (!%p7106_p13)
}
 0x18e   : > { %s7110_s0 = scalar_lea.vmem %s7692_s10, 16  ;;  %s7268_s22 = smov [#allocation2]  }
 0x18f   : > { %p7111_p0 = scmp.ne.s32.totalorder %s7692_s10, %s7110_s0  ;;  %s7115_s14 = sshll.u32 %s7268_s22, 4  ;;  %s7116_s14 = int_to_ptr.vmem [resolvable:$false] %s7115_s14 }
 0x190   : > { %s7117_s13 = scalar_lea.vmem %s7116_s14, 32  ;;  %p7118_p4 = scmp.lt.s32.totalorder %s7692_s10, %s7116_s14 }
 0x191   : > { %p7113_p5 = pnand %p7111_p0, %p7097_p7  ;;  %p7119_p6 = scmp.lt.s32.totalorder %s7117_s13, %s7110_s0 }
 0x193   : > { %p7114_p3 = pneg %p7113_p5  ;;  %p7120_p9 = por %p7119_p6, %p7118_p4 }
 0x195   : > { %p7121_p10 = pnand %p7120_p9, %p7114_p3 }
 0x197   : > { %7124 = shalt.err (!%p7121_p10)
}
 0x198   : > { %6276 = dma.hbm_to_vmem [thread:$0]  (!%p7694_p2), %s7690_s18, 16, %s7692_s10, %s1015_s4  }
 0x199   : > { %p8606_p8 = scmp.ne.s32.totalorder %s8597_s15, 0 }
 0x19a   : > { %s7722_s6 = sand.u32 (!%p8606_p8), 1, %s7211_s1   ;;  %p8607_p5 = scmp.ne.s32.totalorder (!%p8606_p8), %s8602_s16, 0 }
 0x19b   : > { %1033 = sbr.rel (%p8606_p8) target bundleno = 9581 (0x256d), region = 148  ;;  %s1036_s23 = scalar_lea.sflag (!%p8606_p8), [#allocation3], %s7722_s6 }
 0x19c   : > { %s1038_s14 = scalar_lea.vmem (!%p8606_p8), [#allocation2], %s7722_s6 }
 0x1a2   : > { %7170 = dma.done.wait (%p8607_p5), %s1036_s23, 16  }
 0x1a3   : > { %7172 = vsyncadd (%p8607_p5), %s1036_s23, 4294967280  ;;  %p8608_p3 = scmp.eq.s32.totalorder %s7476_s11, 0 }
 0x1a5   : > { %7174 = dma.done.wait (%p8608_p3), [#allocation6], 32   ;;  %p8609_p0 = pmov %p8608_p3 }
 0x1a7   : > { %7176 = vsyncadd (%p8609_p0), [#allocation6], 4294967264  ;;  %p8610_p2 = pmov %p8609_p0 }
 0x1a8   : > { %p8611_p7 = pmov %p8609_p0 }
 0x1a9   : > { %7178 = dma.done.wait (%p8610_p2), [#allocation9], 32  }
 0x1aa   : > { %7180 = vsyncadd (%p8611_p7), [#allocation9], 4294967264  ;;  %p8612_p1 = pmov %p8609_p0 }
 0x1ab   : > { %p8613_p12 = pmov %p8609_p0 }
 0x1ac   : > { %7182 = dma.done.wait (%p8612_p1), [#allocation12], 528  }
 0x1ad   : > { %7184 = vsyncadd (%p8613_p12), [#allocation12], 4294966768  ;;  %p8614_p11 = pmov %p8609_p0 }
 0x1ae   : > { %p8615_p13 = pmov %p8609_p0 }
 0x1af   : > { %7186 = dma.done.wait (%p8614_p11), [#allocation15], 528  }
 0x1b0   : > { %7188 = vsyncadd (%p8615_p13), [#allocation15], 4294966768  ;;  %p8616_p4 = pmov %p8609_p0 }
 0x1b1   : > { %p8617_p6 = pmov %p8609_p0 }
 0x1b2   : > { %7190 = dma.done.wait (%p8616_p4), [#allocation18], 32  }
 0x1b3   : > { %7192 = vsyncadd (%p8617_p6), [#allocation18], 4294967264  ;;  %p8618_p9 = pmov %p8609_p0 }
 0x1b4   : > { %p8619_p10 = pmov %p8609_p0 }
 0x1b5   : > { %7194 = dma.done.wait (%p8618_p9), [#allocation21], 528  }
 0x1b6   : > { %7196 = vsyncadd (%p8619_p10), [#allocation21], 4294966768  ;;  %p8620_p8 = pmov %p8609_p0 }
 0x1b7   : > { %p8621_p5 = pmov %p8609_p0 }
 0x1b8   : > { %7198 = dma.done.wait (%p8620_p8), [#allocation24], 512  }
 0x1b9   : > { %7200 = vsyncadd (%p8621_p5), [#allocation24], 4294966784  ;;  %s8622_s13 = sld [smem:[#allocation36_spill]]  ;;  %s8623_s4 = sld [smem:[#allocation35_spill]]  ;;  %vm1185_vm0 = vcmask 261120   ;;  %vm1497_vm1 = vcmask 64512  }
 0x1ba   : > { %v5197_v10 = vld [vmem:[%s1038_s14] ss:$0 sm:$0xff]  ;;  %v5202_v13 = vld [vmem:[#allocation5] ss:$0 sm:$0xff]  ;;  %s8624_s15 = sld [smem:[#allocation42_spill]]  ;;  %s7269_s16 = smov 96   ;;  %vm7828_vm2 = vmpackc.low %vm1497_vm1, %vm1497_vm1 }
 0x1bb   : > { %s8625_s18 = sld [smem:[#allocation39_spill]]  ;;  %s7270_s10 = smov 64   ;;  %vm2650_vm7 = vcmask 130048   ;;  %vm2655_vm8 = vcmask 195584   ;;  %vm2899_vm9 = vcmask 523264  }
 0x1bc   : > { %s8559_s9 = smov 88   ;;  %s8557_s0 = smov 120  }
 0x1bd   : > { %s8547_s22 = smov 56   ;;  %s8539_s23 = smov 80  }
 0x1be   : > { %s8537_s14 = smov 112   ;;  %s8651_s8 = sld [smem:[#allocation56_spill]] }
 0x1bf   : > { %v1174_v0 = vld [vmem:[%s8622_s13] sm:$0xff]  ;;  %v1175_v1 = vld [vmem:[%s8622_s13 + $0x8] sm:$0xff]  ;;  %v1176_v2 = vld [vmem:[%s8622_s13 + $0x10] sm:$0xff]  ;;  %s8652_s5 = sld [smem:[#allocation57_spill]]  ;;  %p8655_p0 = scmp.ne.s32.totalorder %s8603_s3, 0 }
 0x1c0   : > { %v5929_v3 = vpack.c.bf16 %v1175_v1, %v1174_v0  ;;  %v1177_v4 = vld [vmem:[%s8622_s13 + $0x18] sm:$0xff]  ;;  %v1170_v5 = vld [vmem:[%s8623_s4] sm:$0xff]  ;;  %v1171_v7 = vld [vmem:[%s8623_s4 + $0x8] sm:$0xff] }
 0x1c1   : > { %v5933_v6 = vpack.c.bf16 %v1177_v4, %v1176_v2  ;;  %5571 = vmatprep.mubr.msk.f32.mxu0 %vm1185_vm0, %v1170_v5  ;;  %v1172_v8 = vld [vmem:[%s8623_s4 + $0x10] sm:$0xff]  ;;  %v1173_v9 = vld [vmem:[%s8623_s4 + $0x18] sm:$0xff]  ;;  %v1377_v52 = vld [vmem:[%s8624_s15] sm:$0xff]  ;;  %s8654_s4 = sld [smem:[#allocation59_spill]] }
 0x1c2   : > { %5930 = vmatprep.subr.bf16.mxu0 %v5929_v3  ;;  %v1378_v53 = vld [vmem:[%s8624_s15 + $0x8] sm:$0xff]  ;;  %v1379_v54 = vld [vmem:[%s8624_s15 + $0x10] sm:$0xff]  ;;  %v1380_v56 = vld [vmem:[%s8624_s15 + $0x18] sm:$0xff] }
 0x1c3   : > { %5932 = vmatpush3.bf16.msra.mxu0 %v5929_v3  ;;  %v5937_v55 = vpack.c.bf16 %v1378_v53, %v1377_v52  ;;  %v5941_v57 = vpack.c.bf16 %v1380_v56, %v1379_v54  ;;  %v7855_v53 = vld [vmem:[%s8625_s18 + $0x18] sm:$0xff] }
 0x1c4   : > { %5934 = vmatprep.subr.bf16.mxu0 %v5933_v6  ;;  %vm1606_vm5 = vcmp.gt.f32.partialorder %v7855_v53, 0.5 }
 0x1c5   : > { %5938 = vmatprep.subr.bf16.mxu1 %v5937_v55 }
 0x1c6   : > { %5940 = vmatpush3.bf16.msra.mxu1 %v5937_v55  ;;  %v7858_v55 = vld [vmem:[%s8625_s18 + $0x10] sm:$0xff] }
 0x1c7   : > { %5936 = vmatpush3.bf16.msra.mxu0 %v5933_v6  ;;  %5942 = vmatprep.subr.bf16.mxu1 %v5941_v57  ;;  %vm1605_vm6 = vcmp.gt.f32.partialorder %v7858_v55, 0.5 }
 0x1ca   : > { %5572 = vmatmul.mubr.msk.f32.vlgmr.msra.gmra.mrb[0].mxu0 %vm1185_vm0, %v1171_v7  ;;  %5944 = vmatpush3.bf16.msra.mxu1 %v5941_v57  ;;  %v5203_v7 = vld [vmem:[#allocation7] ss:$0 sm:$0xff] }
 0x1cb   : > { %5574 = vmatprep.mubr.msk.f32.mxu0 %vm1185_vm0, %v1172_v8 }
 0x1ce   : > { %5575 = vmatmul.mubr.msk.f32.gmra.mrb[2].mxu0 %vm1185_vm0, %v1173_v9  ;;  %v5204_v9 = vld [vmem:[#allocation8] ss:$0 sm:$0xff] }
 0x29d   : > { %v5573_v11 = vpop.f32.mrb[0].mxu0 }
 0x29e   : > { %v1270_v12 = vadd.f32 %v5573_v11, %v5197_v10  ;;  %v1264_v14 = vpop.f32.mrb[1].mxu0 }
 0x29f   : > { %v1265_v15 = vadd.f32 %v5197_v10, %v1264_v14 }
 0x2a0   : > { %v1291_v16 = vadd.f32 %v5202_v13, %v1270_v12 }
 0x2a1   : > { %v1290_v17 = vadd.f32 %v5202_v13, %v1265_v15  ;;  %v5576_v18 = vpop.f32.mrb[2].mxu0 }
 0x2a2   : > { %v1280_v19 = vadd.f32 %v5576_v18, %v5197_v10  ;;  %v1274_v20 = vpop.f32.mrb[3].mxu0  ;;  %v7774_v24 = vmax.f32 %v1291_v16, 0.0 }
 0x2a3   : > { %v7772_v21 = vmax.f32 %v1290_v17, 0.0  ;;  %v1275_v22 = vadd.f32 %v5197_v10, %v1274_v20 }
 0x2a4   : > { %v1293_v23 = vadd.f32 %v5202_v13, %v1280_v19  ;;  %v1305_v30 = vsel %vm1185_vm0, %v7774_v24, 0.0 }
 0x2a5   : > { %v1292_v25 = vadd.f32 %v5202_v13, %v1275_v22  ;;  %v1302_v26 = vsel %vm1185_vm0, %v7772_v21, 0.0 }
 0x2a6   : > { %1303 = vadd.xlane.f32.xlu0 %v1302_v26  ;;  %v7778_v27 = vmax.f32 %v1293_v23, 0.0  ;;  %v5205_v26 = vld [vmem:[#allocation10] ss:$0 sm:$0xff] }
 0x2a7   : > { %v7780_v28 = vmax.f32 %v1292_v25, 0.0 }
 0x2a8   : > { %v1311_v31 = vsel %vm1185_vm0, %v7778_v27, 0.0 }
 0x2a9   : > { %v1308_v29 = vsel %vm1185_vm0, %v7780_v28, 0.0 }
 0x2aa   : > { %1309 = vadd.xlane.f32.xlu1 %v1308_v29  ;;  %1306 = vadd.xlane.f32.xlu0 %v1305_v30 }
 0x2ae   : > { %1312 = vadd.xlane.f32.xlu1 %v1311_v31 }
 0x333   : > { %v1304_v32 = vpop.xlane.xlu0 %1303 }
 0x334   : > { %v1315_v33 = vmul.f32 0.03125, %v1304_v32 }
 0x336   : > { %v1319_v34 = vsub.f32 %v7772_v21, %v1315_v33 }
 0x337   : > { %v1310_v35 = vpop.xlane.xlu1 %1309  ;;  %v1307_v36 = vpop.xlane.xlu0 %1306 }
 0x338   : > { %v1317_v37 = vmul.f32 0.03125, %v1310_v35  ;;  %v1316_v38 = vmul.f32 0.03125, %v1307_v36  ;;  %v1323_v39 = vmul.f32 %v1319_v34, %v1319_v34 }
 0x33a   : > { %v1321_v40 = vsub.f32 %v7780_v28, %v1317_v37  ;;  %v1320_v41 = vsub.f32 %v7774_v24, %v1316_v38  ;;  %v1327_v42 = vsel %vm1185_vm0, %v1323_v39, 0.0 }
 0x33b   : > { %v1313_v43 = vpop.xlane.xlu1 %1312  ;;  %1328 = vadd.xlane.f32.xlu0 %v1327_v42 }
 0x33c   : > { %v1318_v44 = vmul.f32 0.03125, %v1313_v43  ;;  %v1325_v45 = vmul.f32 %v1321_v40, %v1321_v40  ;;  %v1324_v46 = vmul.f32 %v1320_v41, %v1320_v41 }
 0x33e   : > { %v1322_v47 = vsub.f32 %v7778_v27, %v1318_v44  ;;  %v1333_v48 = vsel %vm1185_vm0, %v1325_v45, 0.0  ;;  %v1330_v49 = vsel %vm1185_vm0, %v1324_v46, 0.0 }
 0x33f   : > { %1334 = vadd.xlane.f32.xlu0 %v1333_v48  ;;  %1331 = vadd.xlane.f32.xlu1 %v1330_v49  ;;  %v7847_v48 = vld [vmem:[%s8625_s18 + $0x8] sm:$0xff]  ;;  %v7850_v49 = vld [vmem:[%s8625_s18] sm:$0xff] }
 0x340   : > { %v1326_v50 = vmul.f32 %v1322_v47, %v1322_v47  ;;  %vm1604_vm3 = vcmp.gt.f32.partialorder %v7847_v48, 0.5  ;;  %vm1603_vm4 = vcmp.gt.f32.partialorder %v7850_v49, 0.5 }
 0x342   : > { %v1336_v51 = vsel %vm1185_vm0, %v1326_v50, 0.0 }
 0x343   : > { %1337 = vadd.xlane.f32.xlu1 %v1336_v51 }
 0x3c8   : > { %v1329_v58 = vpop.xlane.xlu0 %1328 }
 0x3c9   : > { %v1339_v59 = vmul.f32 0.03125, %v1329_v58 }
 0x3cb   : > { %v1343_v60 = vadd.f32 1e-05, %v1339_v59 }
 0x3cc   : > { %v1332_v61 = vpop.xlane.xlu1 %1331  ;;  %v1335_v62 = vpop.xlane.xlu0 %1334 }
 0x3cd   : > { %6563 = vrsqrt.f32 %v1343_v60  ;;  %v1340_v63 = vmul.f32 0.03125, %v1332_v61  ;;  %v1341_v0 = vmul.f32 0.03125, %v1335_v62 }
 0x3cf   : > { %v1344_v1 = vadd.f32 1e-05, %v1340_v63  ;;  %v1345_v2 = vadd.f32 1e-05, %v1341_v0 }
 0x3d0   : > { %v1338_v3 = vpop.xlane.xlu1 %1337 }
 0x3d1   : > { %6565 = vrsqrt.f32 %v1344_v1  ;;  %v1342_v4 = vmul.f32 0.03125, %v1338_v3 }
 0x3d2   : > { %6567 = vrsqrt.f32 %v1345_v2 }
 0x3d3   : > { %v1346_v5 = vadd.f32 1e-05, %v1342_v4 }
 0x3d5   : > { %6569 = vrsqrt.f32 %v1346_v5 }
 0x3d7   : > { %v6564_v6 = vpop.eup %6563 }
 0x3d8   : > { %v1351_v8 = vmul.f32 %v6564_v6, %v1319_v34 }
 0x3da   : > { %v1362_v10 = vmul.f32 %v5203_v7, %v1351_v8 }
 0x3db   : > { %v6566_v11 = vpop.eup %6565 }
 0x3dc   : > { %v6568_v12 = vpop.eup %6567  ;;  %v1373_v13 = vadd.f32 %v5204_v9, %v1362_v10  ;;  %v1352_v14 = vmul.f32 %v6566_v11, %v1320_v41 }
 0x3dd   : > { %v1353_v15 = vmul.f32 %v6568_v12, %v1321_v40 }
 0x3de   : > { %5585 = vmatprep.mubr.msk.f32.mxu1 %vm1185_vm0, %v1373_v13  ;;  %v1363_v16 = vmul.f32 %v5203_v7, %v1352_v14 }
 0x3df   : > { %v6570_v17 = vpop.eup %6569  ;;  %v1364_v18 = vmul.f32 %v5203_v7, %v1353_v15 }
 0x3e0   : > { %v1374_v19 = vadd.f32 %v5204_v9, %v1363_v16  ;;  %v1354_v20 = vmul.f32 %v6570_v17, %v1322_v47 }
 0x3e1   : > { %v1375_v22 = vadd.f32 %v5204_v9, %v1364_v18 }
 0x3e2   : > { %5586 = vmatmul.mubr.msk.f32.vlgmr.msra.gmra.mrb[0].mxu1 %vm1185_vm0, %v1374_v19  ;;  %v1365_v23 = vmul.f32 %v5203_v7, %v1354_v20 }
 0x3e3   : > { %5588 = vmatprep.mubr.msk.f32.mxu1 %vm1185_vm0, %v1375_v22 }
 0x3e4   : > { %v1376_v25 = vadd.f32 %v5204_v9, %v1365_v23 }
 0x3e6   : > { %5589 = vmatmul.mubr.msk.f32.gmra.mrb[2].mxu1 %vm1185_vm0, %v1376_v25 }
 0x4b5   : > { %v5587_v29 = vpop.f32.mrb[0].mxu1 }
 0x4b6   : > { %v7804_v30 = vadd.f32 %v5587_v29, %v5205_v26  ;;  %v1466_v31 = vpop.f32.mrb[1].mxu1 }
 0x4b7   : > { %v7806_v32 = vadd.f32 %v5205_v26, %v1466_v31 }
 0x4b9   : > { %v5590_v33 = vpop.f32.mrb[2].mxu1  ;;  %5599 = vmatprep.mubr.msk.f32.mxu0 %vm1497_vm1, %v7806_v32  ;;  %v7812_v34 = vpack.i.bf16 %v7804_v30, %v7806_v32 }
 0x4ba   : > { %v7814_v35 = vadd.f32 %v5590_v33, %v5205_v26  ;;  %v1476_v36 = vpop.f32.mrb[3].mxu1 }
 0x4bb   : > { %v7816_v37 = vadd.f32 %v5205_v26, %v1476_v36  ;;  %6404 = vrot.lane.b32.xlu0 %v7812_v34, %s7269_s16 }
 0x4bd   : > { %v7822_v38 = vpack.i.bf16 %v7814_v35, %v7816_v37 }
 0x4bf   : > { %6409 = vrot.lane.b32.xlu1 %v7822_v38, %s7269_s16 }
 0x52d   : > { %v6405_v39 = vpop.permute.xlu0 %6404 }
 0x52e   : > { %v6407_v40 = vunpack.i.h.bf16 %v6405_v39  ;;  %v6406_v41 = vunpack.i.l.bf16 %v6405_v39 }
 0x530   : > { %v5945_v43 = vpack.c.bf16 %v6407_v40, %v6406_v41 }
 0x531   : > { %v6410_v44 = vpop.permute.xlu1 %6409 }
 0x532   : > { %v6412_v45 = vunpack.i.h.bf16 %v6410_v44  ;;  %v6411_v46 = vunpack.i.l.bf16 %v6410_v44  ;;  %5947 = vmatprep.subr.msk.bf16.mxu0 %vm7828_vm2, %v5945_v43 }
 0x533   : > { %5950 = vmatpush3.bf16.xpose.msk.msra.mxu0 %vm7828_vm2, %v5945_v43 }
 0x534   : > { %v5951_v47 = vpack.c.bf16 %v6412_v45, %v6411_v46 }
 0x536   : > { %5953 = vmatprep.subr.msk.bf16.mxu0 %vm7828_vm2, %v5951_v47 }
 0x53b   : > { %5956 = vmatpush3.bf16.xpose.msk.msra.mxu0 %vm7828_vm2, %v5951_v47 }
 0x542   : > { %5600 = vmatmul.mubr.msk.f32.vlgmr.msra.gmra.mrb[4].mxu0 %vm1497_vm1, %v7804_v30 }
 0x543   : > { %5602 = vmatprep.mubr.msk.f32.mxu0 %vm1497_vm1, %v7816_v37 }
 0x546   : > { %5603 = vmatmul.mubr.msk.f32.gmra.mrb[6].mxu0 %vm1497_vm1, %v7814_v35 }
 0x615   : > { %v5601_v50 = vpop.f32.mrb[4].mxu0 }
 0x616   : > { %v1600_v51 = vmul.f32 0.35355338, %v5601_v50  ;;  %v1580_v52 = vpop.f32.mrb[5].mxu0 }
 0x617   : > { %v1599_v54 = vmul.f32 0.35355338, %v1580_v52 }
 0x618   : > { %v1608_v56 = vsel %vm1604_vm3, %v1600_v51, -1e+09 }
 0x619   : > { %v5604_v57 = vpop.f32.mrb[6].mxu0  ;;  %v1614_v58 = vsel %vm1185_vm0, %v1608_v56, -inf  ;;  %v1607_v59 = vsel %vm1603_vm4, %v1599_v54, -1e+09 }
 0x61a   : > { %v1602_v60 = vmul.f32 0.35355338, %v5604_v57  ;;  %1615 = vmax.xlane.f32.xlu0 %v1614_v58  ;;  %v1590_v61 = vpop.f32.mrb[7].mxu0  ;;  %v1611_v62 = vsel %vm1185_vm0, %v1607_v59, -inf }
 0x61b   : > { %v1601_v63 = vmul.f32 0.35355338, %v1590_v61  ;;  %1612 = vmax.xlane.f32.xlu1 %v1611_v62 }
 0x61c   : > { %v1610_v0 = vsel %vm1606_vm5, %v1602_v60, -1e+09 }
 0x61d   : > { %v1620_v1 = vsel %vm1185_vm0, %v1610_v0, -inf  ;;  %v1609_v2 = vsel %vm1605_vm6, %v1601_v63, -1e+09 }
 0x61e   : > { %v1617_v3 = vsel %vm1185_vm0, %v1609_v2, -inf }
 0x61f   : > { %1621 = vmax.xlane.f32.xlu1 %v1620_v1  ;;  %1618 = vmax.xlane.f32.xlu0 %v1617_v3 }
 0x6a7   : > { %v1616_v4 = vpop.xlane.xlu0 %1615 }
 0x6a8   : > { %v1624_v5 = vsub.f32 %v1608_v56, %v1616_v4  ;;  %v1613_v6 = vpop.xlane.xlu1 %1612 }
 0x6a9   : > { %v1623_v7 = vsub.f32 %v1607_v59, %v1613_v6 }
 0x6aa   : > { %v1629_v8 = vmul.f32 1.442695, %v1624_v5 }
 0x6ab   : > { %v1627_v9 = vmul.f32 1.442695, %v1623_v7 }
 0x6ac   : > { %6571 = vpow2.f32 %v1629_v8  ;;  %v1619_v14 = vpop.xlane.xlu0 %1618  ;;  %v1622_v16 = vpop.xlane.xlu1 %1621 }
 0x6ad   : > { %6573 = vpow2.f32 %v1627_v9  ;;  %v1625_v15 = vsub.f32 %v1609_v2, %v1619_v14  ;;  %v1626_v18 = vsub.f32 %v1610_v0, %v1622_v16 }
 0x6af   : > { %v1631_v17 = vmul.f32 1.442695, %v1625_v15  ;;  %v1633_v19 = vmul.f32 1.442695, %v1626_v18 }
 0x6b1   : > { %6575 = vpow2.f32 %v1631_v17 }
 0x6b2   : > { %6577 = vpow2.f32 %v1633_v19 }
 0x6b6   : > { %v6572_v10 = vpop.eup %6571 }
 0x6b7   : > { %v6574_v11 = vpop.eup %6573  ;;  %v1638_v12 = vsel %vm1185_vm0, %v6572_v10, 0.0 }
 0x6b8   : > { %1639 = vadd.xlane.f32.xlu1 %v1638_v12  ;;  %v1635_v13 = vsel %vm1185_vm0, %v6574_v11, 0.0 }
 0x6b9   : > { %1636 = vadd.xlane.f32.xlu0 %v1635_v13 }
 0x6bb   : > { %v6576_v20 = vpop.eup %6575 }
 0x6bc   : > { %v1641_v22 = vsel %vm1185_vm0, %v6576_v20, 0.0  ;;  %v6578_v23 = vpop.eup %6577 }
 0x6bd   : > { %v1644_v25 = vsel %vm1185_vm0, %v6578_v23, 0.0 }
 0x6c9   : > { %6419 = vrot.lane.b32.xlu1 %v7822_v38, %s7270_s10 }
 0x6cd   : > { %6424 = vrot.lane.b32.xlu1 %v7812_v34, %s8559_s9 }
 0x6cf   : > { %6414 = vrot.lane.b32.xlu0 %v7812_v34, %s7270_s10 }
 0x6d1   : > { %6429 = vrot.lane.b32.xlu1 %v7822_v38, %s8559_s9  ;;  %s8632_s9 = sld [smem:[#allocation50_spill]] }
 0x6ee   : > { %1642 = vadd.xlane.f32.xlu0 %v1641_v22 }
 0x6f5   : > { %1645 = vadd.xlane.f32.xlu1 %v1644_v25 }
 0x704   : > { %1764 = vrot.lane.b32.xlu0 %v7806_v32, %s8557_s0 }
 0x706   : > { %1766 = vrot.lane.b32.xlu1 %v7804_v30, %s8557_s0 }
 0x708   : > { %1768 = vrot.lane.b32.xlu0 %v7816_v37, %s8557_s0 }
 0x70a   : > { %1770 = vrot.lane.b32.xlu1 %v7814_v35, %s8557_s0  ;;  %s8631_s0 = sld [smem:[#allocation48_spill]] }
 0x745   : > { %v1640_v26 = vpop.xlane.xlu1 %1639 }
 0x746   : > { %v1637_v29 = vpop.xlane.xlu0 %1636 }
 0x747   : > { %6579 = vrcp.f32 %v1637_v29 }
 0x748   : > { %6581 = vrcp.f32 %v1640_v26 }
 0x749   : > { %v6420_v31 = vpop.permute.xlu1 %6419 }
 0x74a   : > { %v6415_v33 = vpop.permute.xlu0 %6414  ;;  %v6422_v36 = vunpack.i.h.bf16 %v6420_v31  ;;  %v6421_v39 = vunpack.i.l.bf16 %v6420_v31 }
 0x74b   : > { %v6417_v40 = vunpack.i.h.bf16 %v6415_v33  ;;  %v6416_v41 = vunpack.i.l.bf16 %v6415_v33 }
 0x74c   : > { %v5961_v47 = vpack.c.bf16 %v6422_v36, %v6421_v39 }
 0x74d   : > { %v6425_v43 = vpop.permute.xlu1 %6424  ;;  %v5957_v44 = vpack.c.bf16 %v6417_v40, %v6416_v41 }
 0x74e   : > { %v6427_v45 = vunpack.i.h.bf16 %v6425_v43  ;;  %v6426_v46 = vunpack.i.l.bf16 %v6425_v43 }
 0x74f   : > { %5958 = vmatprep.subr.bf16.mxu1 %v5957_v44 }
 0x750   : > { %5960 = vmatpush3.bf16.msra.mxu1 %v5957_v44  ;;  %v5965_v54 = vpack.c.bf16 %v6427_v45, %v6426_v46 }
 0x751   : > { %v6580_v50 = vpop.eup %6579  ;;  %5962 = vmatprep.subr.bf16.mxu1 %v5961_v47  ;;  %v6430_v57 = vpop.permute.xlu1 %6429 }
 0x752   : > { %v6582_v51 = vpop.eup %6581  ;;  %v1648_v52 = vmul.f32 %v6580_v50, %v6574_v11  ;;  %v6432_v58 = vunpack.i.h.bf16 %v6430_v57  ;;  %v6431_v59 = vunpack.i.l.bf16 %v6430_v57 }
 0x753   : > { %v1650_v56 = vmul.f32 %v6582_v51, %v6572_v10 }
 0x754   : > { %5964 = vmatpush3.bf16.msra.mxu1 %v5961_v47  ;;  %5613 = vmatprep.mubr.msk.f32.mxu1 %vm1185_vm0, %v1648_v52  ;;  %v5971_v60 = vpack.c.bf16 %v6432_v58, %v6431_v59 }
 0x755   : > { %5967 = vmatprep.subr.msk.bf16.mxu1 %vm7828_vm2, %v5965_v54 }
 0x757   : > { %5614 = vmatmul.mubr.msk.f32.vlgmr.msra.gmra.mrb[4].mxu1 %vm1185_vm0, %v1650_v56 }
 0x75d   : > { %5970 = vmatpush3.bf16.xpose.msk.msra.mxu1 %vm7828_vm2, %v5965_v54 }
 0x75e   : > { %5973 = vmatprep.subr.msk.bf16.mxu1 %vm7828_vm2, %v5971_v60 }
 0x765   : > { %5976 = vmatpush3.bf16.xpose.msk.msra.mxu1 %vm7828_vm2, %v5971_v60 }
 0x77b   : > { %v1643_v61 = vpop.xlane.xlu0 %1642 }
 0x77c   : > { %6583 = vrcp.f32 %v1643_v61 }
 0x77f   : > { %v1765_v2 = vpop.permute.xlu0 %1764 }
 0x782   : > { %v1646_v62 = vpop.xlane.xlu1 %1645 }
 0x783   : > { %6585 = vrcp.f32 %v1646_v62  ;;  %v1769_v5 = vpop.permute.xlu0 %1768 }
 0x786   : > { %v6584_v63 = vpop.eup %6583  ;;  %v1767_v4 = vpop.permute.xlu1 %1766 }
 0x787   : > { %v1652_v0 = vmul.f32 %v6584_v63, %v6576_v20 }
 0x789   : > { %5616 = vmatprep.mubr.msk.f32.mxu1 %vm1185_vm0, %v1652_v0 }
 0x78a   : > { %v1771_v6 = vpop.permute.xlu1 %1770 }
 0x78d   : > { %v6586_v1 = vpop.eup %6585 }
 0x78e   : > { %v1654_v3 = vmul.f32 %v6586_v1, %v6578_v23 }
 0x790   : > { %5617 = vmatmul.mubr.msk.f32.gmra.mrb[6].mxu1 %vm1185_vm0, %v1654_v3 }
 0x791   : > { %5627 = vmatprep.mubr.msk.f32.mxu1 %vm1497_vm1, %v1765_v2 }
 0x794   : > { %5628 = vmatmul.mubr.msk.f32.vlgmr.msra.gmra.mrb[8].mxu1 %vm1497_vm1, %v1767_v4 }
 0x795   : > { %5630 = vmatprep.mubr.msk.f32.mxu1 %vm1497_vm1, %v1769_v5 }
 0x798   : > { %5631 = vmatmul.mubr.msk.f32.gmra.mrb[10].mxu1 %vm1497_vm1, %v1771_v6 }
 0x82a   : > { %v7910_v7 = vpop.f32.mrb[4].mxu1 }
 0x82b   : > { %v7912_v8 = vpop.f32.mrb[5].mxu1 }
 0x863   : > { %v7914_v9 = vpop.f32.mrb[6].mxu1 }
 0x864   : > { %v7916_v10 = vpop.f32.mrb[7].mxu1 }
 0x867   : > { %v5629_v11 = vpop.f32.mrb[8].mxu1 }
 0x868   : > { %v1882_v12 = vmul.f32 0.35355338, %v5629_v11  ;;  %v1862_v13 = vpop.f32.mrb[9].mxu1 }
 0x869   : > { %v1881_v14 = vmul.f32 0.35355338, %v1862_v13 }
 0x86a   : > { %v1886_v15 = vsel %vm1604_vm3, %v1882_v12, -1e+09 }
 0x86b   : > { %v5632_v16 = vpop.f32.mrb[10].mxu1  ;;  %v1892_v17 = vsel %vm1185_vm0, %v1886_v15, -inf  ;;  %v1885_v18 = vsel %vm1603_vm4, %v1881_v14, -1e+09 }
 0x86c   : > { %1893 = vmax.xlane.f32.xlu1 %v1892_v17  ;;  %v1872_v19 = vpop.f32.mrb[11].mxu1  ;;  %v1889_v20 = vsel %vm1185_vm0, %v1885_v18, -inf  ;;  %v1884_v22 = vmul.f32 0.35355338, %v5632_v16 }
 0x86d   : > { %v1883_v23 = vmul.f32 0.35355338, %v1872_v19  ;;  %1890 = vmax.xlane.f32.xlu0 %v1889_v20 }
 0x86e   : > { %v1888_v29 = vsel %vm1606_vm5, %v1884_v22, -1e+09 }
 0x86f   : > { %v1887_v25 = vsel %vm1605_vm6, %v1883_v23, -1e+09  ;;  %v1898_v31 = vsel %vm1185_vm0, %v1888_v29, -inf }
 0x870   : > { %v1895_v26 = vsel %vm1185_vm0, %v1887_v25, -inf }
 0x871   : > { %1896 = vmax.xlane.f32.xlu0 %v1895_v26 }
 0x875   : > { %1899 = vmax.xlane.f32.xlu0 %v1898_v31 }
 0x8f9   : > { %v1894_v33 = vpop.xlane.xlu1 %1893 }
 0x8fa   : > { %v1902_v36 = vsub.f32 %v1886_v15, %v1894_v33  ;;  %v1891_v39 = vpop.xlane.xlu0 %1890 }
 0x8fb   : > { %v1901_v40 = vsub.f32 %v1885_v18, %v1891_v39 }
 0x8fc   : > { %v1907_v41 = vmul.f32 1.442695, %v1902_v36 }
 0x8fd   : > { %v1905_v43 = vmul.f32 1.442695, %v1901_v40 }
 0x8fe   : > { %6587 = vpow2.f32 %v1907_v41  ;;  %v1897_v50 = vpop.xlane.xlu0 %1896 }
 0x8ff   : > { %6589 = vpow2.f32 %v1905_v43  ;;  %v1903_v51 = vsub.f32 %v1887_v25, %v1897_v50 }
 0x901   : > { %v1909_v52 = vmul.f32 1.442695, %v1903_v51 }
 0x902   : > { %v1900_v54 = vpop.xlane.xlu0 %1899 }
 0x903   : > { %v1904_v56 = vsub.f32 %v1888_v29, %v1900_v54  ;;  %6591 = vpow2.f32 %v1909_v52 }
 0x905   : > { %v1911_v57 = vmul.f32 1.442695, %v1904_v56 }
 0x907   : > { %6593 = vpow2.f32 %v1911_v57 }
 0x908   : > { %v6588_v44 = vpop.eup %6587 }
 0x909   : > { %v6590_v45 = vpop.eup %6589  ;;  %v1916_v46 = vsel %vm1185_vm0, %v6588_v44, 0.0 }
 0x90a   : > { %1917 = vadd.xlane.f32.xlu1 %v1916_v46  ;;  %v1913_v47 = vsel %vm1185_vm0, %v6590_v45, 0.0 }
 0x90b   : > { %1914 = vadd.xlane.f32.xlu0 %v1913_v47 }
 0x90d   : > { %v6592_v58 = vpop.eup %6591 }
 0x90e   : > { %v1919_v59 = vsel %vm1185_vm0, %v6592_v58, 0.0 }
 0x911   : > { %v6594_v60 = vpop.eup %6593 }
 0x912   : > { %v1922_v61 = vsel %vm1185_vm0, %v6594_v60, 0.0 }
 0x91b   : > { %6439 = vrot.lane.b32.xlu1 %v7822_v38, %s8547_s22 }
 0x91f   : > { %6444 = vrot.lane.b32.xlu1 %v7812_v34, %s8539_s23 }
 0x921   : > { %6434 = vrot.lane.b32.xlu0 %v7812_v34, %s8547_s22  ;;  %s8553_s22 = smov 16  }
 0x923   : > { %6449 = vrot.lane.b32.xlu1 %v7822_v38, %s8539_s23  ;;  %s8545_s23 = smov 72  }
 0x940   : > { %1920 = vadd.xlane.f32.xlu0 %v1919_v59 }
 0x947   : > { %1923 = vadd.xlane.f32.xlu1 %v1922_v61 }
 0x956   : > { %2042 = vrot.lane.b32.xlu0 %v7806_v32, %s8537_s14 }
 0x958   : > { %2044 = vrot.lane.b32.xlu1 %v7804_v30, %s8537_s14 }
 0x95a   : > { %2046 = vrot.lane.b32.xlu0 %v7816_v37, %s8537_s14 }
 0x95c   : > { %2048 = vrot.lane.b32.xlu1 %v7814_v35, %s8537_s14  ;;  %s8541_s14 = smov 48  }
 0x997   : > { %v1918_v62 = vpop.xlane.xlu1 %1917 }
 0x998   : > { %v1915_v63 = vpop.xlane.xlu0 %1914 }
 0x999   : > { %6595 = vrcp.f32 %v1915_v63 }
 0x99a   : > { %6597 = vrcp.f32 %v1918_v62 }
 0x99b   : > { %v6440_v0 = vpop.permute.xlu1 %6439 }
 0x99c   : > { %v6435_v1 = vpop.permute.xlu0 %6434  ;;  %v6442_v2 = vunpack.i.h.bf16 %v6440_v0  ;;  %v6441_v3 = vunpack.i.l.bf16 %v6440_v0 }
 0x99d   : > { %v6437_v4 = vunpack.i.h.bf16 %v6435_v1  ;;  %v6436_v5 = vunpack.i.l.bf16 %v6435_v1 }
 0x99e   : > { %v5981_v14 = vpack.c.bf16 %v6442_v2, %v6441_v3 }
 0x99f   : > { %v6445_v6 = vpop.permute.xlu1 %6444  ;;  %v5977_v11 = vpack.c.bf16 %v6437_v4, %v6436_v5 }
 0x9a0   : > { %v6447_v12 = vunpack.i.h.bf16 %v6445_v6  ;;  %v6446_v13 = vunpack.i.l.bf16 %v6445_v6 }
 0x9a1   : > { %5978 = vmatprep.subr.bf16.mxu0 %v5977_v11 }
 0x9a2   : > { %5980 = vmatpush3.bf16.msra.mxu0 %v5977_v11  ;;  %v5985_v18 = vpack.c.bf16 %v6447_v12, %v6446_v13 }
 0x9a3   : > { %v6596_v15 = vpop.eup %6595  ;;  %5982 = vmatprep.subr.bf16.mxu0 %v5981_v14  ;;  %v6450_v20 = vpop.permute.xlu1 %6449 }
 0x9a4   : > { %v6598_v16 = vpop.eup %6597  ;;  %v1926_v17 = vmul.f32 %v6596_v15, %v6590_v45  ;;  %v6452_v22 = vunpack.i.h.bf16 %v6450_v20  ;;  %v6451_v23 = vunpack.i.l.bf16 %v6450_v20 }
 0x9a5   : > { %v1928_v19 = vmul.f32 %v6598_v16, %v6588_v44 }
 0x9a6   : > { %5984 = vmatpush3.bf16.msra.mxu0 %v5981_v14  ;;  %5641 = vmatprep.mubr.msk.f32.mxu0 %vm1185_vm0, %v1926_v17  ;;  %v5991_v25 = vpack.c.bf16 %v6452_v22, %v6451_v23 }
 0x9a7   : > { %5987 = vmatprep.subr.msk.bf16.mxu0 %vm7828_vm2, %v5985_v18 }
 0x9a9   : > { %5642 = vmatmul.mubr.msk.f32.vlgmr.msra.gmra.mrb[8].mxu0 %vm1185_vm0, %v1928_v19 }
 0x9af   : > { %5990 = vmatpush3.bf16.xpose.msk.msra.mxu0 %vm7828_vm2, %v5985_v18 }
 0x9b0   : > { %5993 = vmatprep.subr.msk.bf16.mxu0 %vm7828_vm2, %v5991_v25 }
 0x9b7   : > { %5996 = vmatpush3.bf16.xpose.msk.msra.mxu0 %vm7828_vm2, %v5991_v25 }
 0x9cd   : > { %v1921_v26 = vpop.xlane.xlu0 %1920 }
 0x9ce   : > { %6599 = vrcp.f32 %v1921_v26 }
 0x9d1   : > { %v2043_v39 = vpop.permute.xlu0 %2042 }
 0x9d4   : > { %v1924_v29 = vpop.xlane.xlu1 %1923 }
 0x9d5   : > { %6601 = vrcp.f32 %v1924_v29  ;;  %v2047_v43 = vpop.permute.xlu0 %2046 }
 0x9d8   : > { %v6600_v31 = vpop.eup %6599  ;;  %v2045_v41 = vpop.permute.xlu1 %2044 }
 0x9d9   : > { %v1930_v33 = vmul.f32 %v6600_v31, %v6592_v58 }
 0x9db   : > { %5644 = vmatprep.mubr.msk.f32.mxu0 %vm1185_vm0, %v1930_v33 }
 0x9dc   : > { %v2049_v44 = vpop.permute.xlu1 %2048 }
 0x9df   : > { %v6602_v36 = vpop.eup %6601 }
 0x9e0   : > { %v1932_v40 = vmul.f32 %v6602_v36, %v6594_v60 }
 0x9e2   : > { %5645 = vmatmul.mubr.msk.f32.gmra.mrb[10].mxu0 %vm1185_vm0, %v1932_v40 }
 0x9e3   : > { %5655 = vmatprep.mubr.msk.f32.mxu0 %vm1497_vm1, %v2043_v39 }
 0x9e6   : > { %5656 = vmatmul.mubr.msk.f32.vlgmr.msra.gmra.mrb[12].mxu0 %vm1497_vm1, %v2045_v41 }
 0x9e7   : > { %5658 = vmatprep.mubr.msk.f32.mxu0 %vm1497_vm1, %v2047_v43 }
 0x9ea   : > { %5659 = vmatmul.mubr.msk.f32.gmra.mrb[14].mxu0 %vm1497_vm1, %v2049_v44 }
 0xa7c   : > { %v7966_v45 = vpop.f32.mrb[8].mxu0 }
 0xa7d   : > { %v7968_v46 = vpop.f32.mrb[9].mxu0 }
 0xab5   : > { %v7970_v47 = vpop.f32.mrb[10].mxu0 }
 0xab6   : > { %v7972_v50 = vpop.f32.mrb[11].mxu0 }
 0xab9   : > { %v5657_v51 = vpop.f32.mrb[12].mxu0 }
 0xaba   : > { %v2160_v52 = vmul.f32 0.35355338, %v5657_v51  ;;  %v2140_v54 = vpop.f32.mrb[13].mxu0 }
 0xabb   : > { %v2159_v56 = vmul.f32 0.35355338, %v2140_v54 }
 0xabc   : > { %v2164_v57 = vsel %vm1604_vm3, %v2160_v52, -1e+09 }
 0xabd   : > { %v5660_v58 = vpop.f32.mrb[14].mxu0  ;;  %v2170_v59 = vsel %vm1185_vm0, %v2164_v57, -inf  ;;  %v2163_v60 = vsel %vm1603_vm4, %v2159_v56, -1e+09 }
 0xabe   : > { %2171 = vmax.xlane.f32.xlu1 %v2170_v59  ;;  %v2150_v61 = vpop.f32.mrb[15].mxu0  ;;  %v2167_v62 = vsel %vm1185_vm0, %v2163_v60, -inf  ;;  %v2162_v63 = vmul.f32 0.35355338, %v5660_v58 }
 0xabf   : > { %v2161_v0 = vmul.f32 0.35355338, %v2150_v61  ;;  %2168 = vmax.xlane.f32.xlu0 %v2167_v62 }
 0xac0   : > { %v2166_v3 = vsel %vm1606_vm5, %v2162_v63, -1e+09 }
 0xac1   : > { %v2165_v1 = vsel %vm1605_vm6, %v2161_v0, -1e+09  ;;  %v2176_v4 = vsel %vm1185_vm0, %v2166_v3, -inf }
 0xac2   : > { %v2173_v2 = vsel %vm1185_vm0, %v2165_v1, -inf }
 0xac3   : > { %2174 = vmax.xlane.f32.xlu0 %v2173_v2 }
 0xac7   : > { %2177 = vmax.xlane.f32.xlu0 %v2176_v4 }
 0xb4b   : > { %v2172_v5 = vpop.xlane.xlu1 %2171 }
 0xb4c   : > { %v2180_v6 = vsub.f32 %v2164_v57, %v2172_v5  ;;  %v2169_v11 = vpop.xlane.xlu0 %2168 }
 0xb4d   : > { %v2179_v12 = vsub.f32 %v2163_v60, %v2169_v11 }
 0xb4e   : > { %v2185_v13 = vmul.f32 1.442695, %v2180_v6 }
 0xb4f   : > { %v2183_v14 = vmul.f32 1.442695, %v2179_v12 }
 0xb50   : > { %6603 = vpow2.f32 %v2185_v13  ;;  %v2175_v19 = vpop.xlane.xlu0 %2174 }
 0xb51   : > { %6605 = vpow2.f32 %v2183_v14  ;;  %v2181_v20 = vsub.f32 %v2165_v1, %v2175_v19 }
 0xb53   : > { %v2187_v22 = vmul.f32 1.442695, %v2181_v20 }
 0xb54   : > { %v2178_v23 = vpop.xlane.xlu0 %2177 }
 0xb55   : > { %v2182_v25 = vsub.f32 %v2166_v3, %v2178_v23  ;;  %6607 = vpow2.f32 %v2187_v22 }
 0xb57   : > { %v2189_v26 = vmul.f32 1.442695, %v2182_v25 }
 0xb59   : > { %6609 = vpow2.f32 %v2189_v26 }
 0xb5a   : > { %v6604_v15 = vpop.eup %6603 }
 0xb5b   : > { %v6606_v16 = vpop.eup %6605  ;;  %v2194_v17 = vsel %vm1185_vm0, %v6604_v15, 0.0 }
 0xb5c   : > { %2195 = vadd.xlane.f32.xlu1 %v2194_v17  ;;  %v2191_v18 = vsel %vm1185_vm0, %v6606_v16, 0.0 }
 0xb5d   : > { %2192 = vadd.xlane.f32.xlu0 %v2191_v18 }
 0xb5f   : > { %v6608_v29 = vpop.eup %6607 }
 0xb60   : > { %v2197_v31 = vsel %vm1185_vm0, %v6608_v29, 0.0 }
 0xb63   : > { %v6610_v33 = vpop.eup %6609 }
 0xb64   : > { %v2200_v36 = vsel %vm1185_vm0, %v6610_v33, 0.0 }
 0xb6d   : > { %6459 = vrot.lane.b32.xlu1 %v7822_v38, %s8541_s14 }
 0xb71   : > { %6464 = vrot.lane.b32.xlu1 %v7812_v34, %s8545_s23 }
 0xb73   : > { %6454 = vrot.lane.b32.xlu0 %v7812_v34, %s8541_s14  ;;  %s8543_s14 = smov 104  }
 0xb75   : > { %6469 = vrot.lane.b32.xlu1 %v7822_v38, %s8545_s23  ;;  %s8549_s23 = smov 8  }
 0xb92   : > { %2198 = vadd.xlane.f32.xlu0 %v2197_v31 }
 0xb99   : > { %2201 = vadd.xlane.f32.xlu1 %v2200_v36 }
 0xba8   : > { %2320 = vrot.lane.b32.xlu0 %v7806_v32, %s8543_s14 }
 0xbaa   : > { %2322 = vrot.lane.b32.xlu1 %v7804_v30, %s8543_s14 }
 0xbac   : > { %2324 = vrot.lane.b32.xlu0 %v7816_v37, %s8543_s14 }
 0xbae   : > { %2326 = vrot.lane.b32.xlu1 %v7814_v35, %s8543_s14  ;;  %s8555_s14 = smov 40  }
 0xbe9   : > { %v2196_v39 = vpop.xlane.xlu1 %2195 }
 0xbea   : > { %v2193_v40 = vpop.xlane.xlu0 %2192 }
 0xbeb   : > { %6611 = vrcp.f32 %v2193_v40 }
 0xbec   : > { %6613 = vrcp.f32 %v2196_v39 }
 0xbed   : > { %v6460_v41 = vpop.permute.xlu1 %6459 }
 0xbee   : > { %v6455_v43 = vpop.permute.xlu0 %6454  ;;  %v6462_v44 = vunpack.i.h.bf16 %v6460_v41  ;;  %v6461_v51 = vunpack.i.l.bf16 %v6460_v41 }
 0xbef   : > { %v6457_v52 = vunpack.i.h.bf16 %v6455_v43  ;;  %v6456_v54 = vunpack.i.l.bf16 %v6455_v43 }
 0xbf0   : > { %v6001_v58 = vpack.c.bf16 %v6462_v44, %v6461_v51 }
 0xbf1   : > { %v6465_v32 = vpop.permute.xlu1 %6464  ;;  %v5997_v56 = vpack.c.bf16 %v6457_v52, %v6456_v54 }
 0xbf2   : > { %v6467_v57 = vunpack.i.h.bf16 %v6465_v32  ;;  %v6466_v30 = vunpack.i.l.bf16 %v6465_v32 }
 0xbf3   : > { %5998 = vmatprep.subr.bf16.mxu1 %v5997_v56 }
 0xbf4   : > { %6000 = vmatpush3.bf16.msra.mxu1 %v5997_v56  ;;  %v6005_v60 = vpack.c.bf16 %v6467_v57, %v6466_v30 }
 0xbf5   : > { %v6612_v37 = vpop.eup %6611  ;;  %6002 = vmatprep.subr.bf16.mxu1 %v6001_v58  ;;  %v6470_v62 = vpop.permute.xlu1 %6469 }
 0xbf6   : > { %v6614_v35 = vpop.eup %6613  ;;  %v2204_v59 = vmul.f32 %v6612_v37, %v6606_v16  ;;  %v6472_v63 = vunpack.i.h.bf16 %v6470_v62  ;;  %v6471_v0 = vunpack.i.l.bf16 %v6470_v62 }
 0xbf7   : > { %v2206_v61 = vmul.f32 %v6614_v35, %v6604_v15 }
 0xbf8   : > { %6004 = vmatpush3.bf16.msra.mxu1 %v6001_v58  ;;  %5669 = vmatprep.mubr.msk.f32.mxu1 %vm1185_vm0, %v2204_v59  ;;  %v6011_v1 = vpack.c.bf16 %v6472_v63, %v6471_v0 }
 0xbf9   : > { %6007 = vmatprep.subr.msk.bf16.mxu1 %vm7828_vm2, %v6005_v60 }
 0xbfb   : > { %5670 = vmatmul.mubr.msk.f32.vlgmr.msra.gmra.mrb[12].mxu1 %vm1185_vm0, %v2206_v61 }
 0xc01   : > { %6010 = vmatpush3.bf16.xpose.msk.msra.mxu1 %vm7828_vm2, %v6005_v60 }
 0xc02   : > { %6013 = vmatprep.subr.msk.bf16.mxu1 %vm7828_vm2, %v6011_v1 }
 0xc09   : > { %6016 = vmatpush3.bf16.xpose.msk.msra.mxu1 %vm7828_vm2, %v6011_v1 }
 0xc1f   : > { %v2199_v2 = vpop.xlane.xlu0 %2198 }
 0xc20   : > { %6615 = vrcp.f32 %v2199_v2 }
 0xc23   : > { %v2321_v11 = vpop.permute.xlu0 %2320 }
 0xc26   : > { %v2202_v3 = vpop.xlane.xlu1 %2201 }
 0xc27   : > { %6617 = vrcp.f32 %v2202_v3  ;;  %v2325_v14 = vpop.permute.xlu0 %2324 }
 0xc2a   : > { %v6616_v4 = vpop.eup %6615  ;;  %v2323_v13 = vpop.permute.xlu1 %2322 }
 0xc2b   : > { %v2208_v5 = vmul.f32 %v6616_v4, %v6608_v29 }
 0xc2d   : > { %5672 = vmatprep.mubr.msk.f32.mxu1 %vm1185_vm0, %v2208_v5 }
 0xc2e   : > { %v2327_v15 = vpop.permute.xlu1 %2326 }
 0xc31   : > { %v6618_v6 = vpop.eup %6617 }
 0xc32   : > { %v2210_v12 = vmul.f32 %v6618_v6, %v6610_v33 }
 0xc34   : > { %5673 = vmatmul.mubr.msk.f32.gmra.mrb[14].mxu1 %vm1185_vm0, %v2210_v12 }
 0xc35   : > { %5683 = vmatprep.mubr.msk.f32.mxu1 %vm1497_vm1, %v2321_v11 }
 0xc38   : > { %5684 = vmatmul.mubr.msk.f32.vlgmr.msra.gmra.mrb[16].mxu1 %vm1497_vm1, %v2323_v13 }
 0xc39   : > { %5686 = vmatprep.mubr.msk.f32.mxu1 %vm1497_vm1, %v2325_v14 }
 0xc3c   : > { %5687 = vmatmul.mubr.msk.f32.gmra.mrb[18].mxu1 %vm1497_vm1, %v2327_v15 }
 0xcce   : > { %v5671_v16 = vpop.f32.mrb[12].mxu1 }
 0xccf   : > { %v2301_v17 = vpop.f32.mrb[13].mxu1 }
 0xd07   : > { %v8022_v18 = vpop.f32.mrb[14].mxu1 }
 0xd08   : > { %v8024_v19 = vpop.f32.mrb[15].mxu1 }
 0xd0b   : > { %v5685_v20 = vpop.f32.mrb[16].mxu1 }
 0xd0c   : > { %v2438_v22 = vmul.f32 0.35355338, %v5685_v20  ;;  %v2418_v23 = vpop.f32.mrb[17].mxu1 }
 0xd0d   : > { %v2437_v25 = vmul.f32 0.35355338, %v2418_v23 }
 0xd0e   : > { %v2442_v26 = vsel %vm1604_vm3, %v2438_v22, -1e+09 }
 0xd0f   : > { %v5688_v29 = vpop.f32.mrb[18].mxu1  ;;  %v2448_v31 = vsel %vm1185_vm0, %v2442_v26, -inf  ;;  %v2441_v33 = vsel %vm1603_vm4, %v2437_v25, -1e+09  ;;  %v2660_v25 = vld [vmem:[#allocation11] sm:$0xff] }
 0xd10   : > { %2449 = vmax.xlane.f32.xlu1 %v2448_v31  ;;  %v2428_v36 = vpop.f32.mrb[19].mxu1  ;;  %v2445_v39 = vsel %vm1185_vm0, %v2441_v33, -inf  ;;  %v2440_v40 = vmul.f32 0.35355338, %v5688_v29  ;;  %v2662_v29 = vld [vmem:[#allocation11 + $0x10] sm:$0xff] }
 0xd11   : > { %v2439_v41 = vmul.f32 0.35355338, %v2428_v36  ;;  %2446 = vmax.xlane.f32.xlu0 %v2445_v39  ;;  %v2772_v39 = vld [vmem:[#allocation14] sm:$0xff] }
 0xd12   : > { %v2444_v48 = vsel %vm1606_vm5, %v2440_v40, -1e+09  ;;  %v2773_v40 = vld [vmem:[#allocation14 + $0x8] sm:$0xff] }
 0xd13   : > { %v2443_v43 = vsel %vm1605_vm6, %v2439_v41, -1e+09  ;;  %v2454_v51 = vsel %vm1185_vm0, %v2444_v48, -inf }
 0xd14   : > { %v2451_v44 = vsel %vm1185_vm0, %v2443_v43, -inf }
 0xd15   : > { %2452 = vmax.xlane.f32.xlu0 %v2451_v44 }
 0xd19   : > { %2455 = vmax.xlane.f32.xlu0 %v2454_v51 }
 0xd9d   : > { %v2450_v49 = vpop.xlane.xlu1 %2449 }
 0xd9e   : > { %v2458_v52 = vsub.f32 %v2442_v26, %v2450_v49  ;;  %v2447_v54 = vpop.xlane.xlu0 %2446  ;;  %v2661_v26 = vld [vmem:[#allocation11 + $0x8] sm:$0xff] }
 0xd9f   : > { %v2457_v32 = vsub.f32 %v2441_v33, %v2447_v54  ;;  %v6025_v31 = vpack.c.bf16 %v2661_v26, %v2660_v25  ;;  %v2663_v33 = vld [vmem:[#allocation11 + $0x18] sm:$0xff] }
 0xda0   : > { %v2463_v56 = vmul.f32 1.442695, %v2458_v52  ;;  %v6029_v36 = vpack.c.bf16 %v2663_v33, %v2662_v29 }
 0xda1   : > { %v2461_v57 = vmul.f32 1.442695, %v2457_v32 }
 0xda2   : > { %6619 = vpow2.f32 %v2463_v56  ;;  %v2453_v30 = vpop.xlane.xlu0 %2452 }
 0xda3   : > { %6621 = vpow2.f32 %v2461_v57  ;;  %v2459_v55 = vsub.f32 %v2443_v43, %v2453_v30  ;;  %v6033_v43 = vpack.c.bf16 %v2773_v40, %v2772_v39 }
 0xda5   : > { %v2465_v58 = vmul.f32 1.442695, %v2459_v55  ;;  %6034 = vmatprep.subr.bf16.mxu1 %v6033_v43 }
 0xda6   : > { %v2456_v37 = vpop.xlane.xlu0 %2455  ;;  %6036 = vmatpush3.bf16.msra.mxu1 %v6033_v43 }
 0xda7   : > { %6623 = vpow2.f32 %v2465_v58  ;;  %v2460_v35 = vsub.f32 %v2444_v48, %v2456_v37 }
 0xda9   : > { %v2467_v59 = vmul.f32 1.442695, %v2460_v35 }
 0xdab   : > { %6625 = vpow2.f32 %v2467_v59 }
 0xdac   : > { %v6620_v53 = vpop.eup %6619 }
 0xdad   : > { %v6622_v60 = vpop.eup %6621  ;;  %v2472_v61 = vsel %vm1185_vm0, %v6620_v53, 0.0 }
 0xdae   : > { %2473 = vadd.xlane.f32.xlu1 %v2472_v61  ;;  %v2469_v62 = vsel %vm1185_vm0, %v6622_v60, 0.0 }
 0xdaf   : > { %2470 = vadd.xlane.f32.xlu0 %v2469_v62 }
 0xdb1   : > { %v6624_v63 = vpop.eup %6623 }
 0xdb2   : > { %v2475_v0 = vsel %vm1185_vm0, %v6624_v63, 0.0 }
 0xdb3   : > { %2476 = vadd.xlane.f32.xlu0 %v2475_v0 }
 0xdb5   : > { %v6626_v1 = vpop.eup %6625 }
 0xdb6   : > { %v2478_v2 = vsel %vm1185_vm0, %v6626_v1, 0.0 }
 0xdb7   : > { %2479 = vadd.xlane.f32.xlu1 %v2478_v2 }
 0xdc8   : > { %6479 = vrot.lane.b32.xlu1 %v7822_v38, %s8555_s14 }
 0xdc9   : > { %6474 = vrot.lane.b32.xlu0 %v7812_v34, %s8555_s14  ;;  %s8630_s14 = sld [smem:[#allocation47_spill]] }
 0xdcc   : > { %2602 = vrot.lane.b32.xlu1 %v7968_v46, %s8549_s23 }
 0xdcd   : > { %2618 = vrot.lane.b32.xlu0 %v2301_v17, %s8553_s22 }
 0xdd0   : > { %2604 = vrot.lane.b32.xlu1 %v7966_v45, %s8549_s23 }
 0xdd1   : > { %2606 = vrot.lane.b32.xlu0 %v7972_v50, %s8549_s23 }
 0xdd4   : > { %2620 = vrot.lane.b32.xlu1 %v5671_v16, %s8553_s22 }
 0xdd8   : > { %2608 = vrot.lane.b32.xlu1 %v7970_v47, %s8549_s23  ;;  %s8551_s23 = smov 24  }
 0xe3b   : > { %v2474_v34 = vpop.xlane.xlu1 %2473 }
 0xe3c   : > { %v2471_v38 = vpop.xlane.xlu0 %2470 }
 0xe3d   : > { %6627 = vrcp.f32 %v2471_v38  ;;  %v2775_v38 = vld [vmem:[#allocation14 + $0x18] sm:$0xff] }
 0xe3e   : > { %6629 = vrcp.f32 %v2474_v34 }
 0xe40   : > { %v2477_v3 = vpop.xlane.xlu0 %2476 }
 0xe41   : > { %6631 = vrcp.f32 %v2477_v3 }
 0xe44   : > { %v2480_v46 = vpop.xlane.xlu1 %2479  ;;  %v6475_v4 = vpop.permute.xlu0 %6474 }
 0xe45   : > { %v6477_v5 = vunpack.i.h.bf16 %v6475_v4  ;;  %v6476_v6 = vunpack.i.l.bf16 %v6475_v4  ;;  %6633 = vrcp.f32 %v2480_v46 }
 0xe47   : > { %v6628_v45 = vpop.eup %6627  ;;  %v6017_v11 = vpack.c.bf16 %v6477_v5, %v6476_v6 }
 0xe48   : > { %v6480_v12 = vpop.permute.xlu1 %6479  ;;  %v2482_v50 = vmul.f32 %v6628_v45, %v6622_v60  ;;  %v6630_v15 = vpop.eup %6629 }
 0xe49   : > { %v6482_v13 = vunpack.i.h.bf16 %v6480_v12  ;;  %v6481_v14 = vunpack.i.l.bf16 %v6480_v12  ;;  %6018 = vmatprep.subr.bf16.mxu0 %v6017_v11  ;;  %v2484_v17 = vmul.f32 %v6630_v15, %v6620_v53  ;;  %v2619_v32 = vpop.permute.xlu0 %2618 }
 0xe4a   : > { %6020 = vmatpush3.bf16.msra.mxu0 %v6017_v11  ;;  %5697 = vmatprep.mubr.msk.f32.mxu0 %vm1185_vm0, %v2482_v50  ;;  %v5258_v50 = vld [vmem:[#allocation13] ss:$0 sm:$0xff] }
 0xe4b   : > { %v6021_v47 = vpack.c.bf16 %v6482_v13, %v6481_v14  ;;  %v6632_v16 = vpop.eup %6631 }
 0xe4c   : > { %v2486_v22 = vmul.f32 %v6632_v16, %v6624_v63  ;;  %v2603_v49 = vpop.permute.xlu1 %2602 }
 0xe4d   : > { %6022 = vmatprep.subr.bf16.mxu0 %v6021_v47  ;;  %v2607_v57 = vpop.permute.xlu0 %2606  ;;  %v2646_v30 = vsel %vm1497_vm1, %v7912_v8, %v2603_v49 }
 0xe4e   : > { %6024 = vmatpush3.bf16.msra.mxu0 %v6021_v47  ;;  %v2648_v60 = vsel %vm1497_vm1, %v7916_v10, %v2607_v57  ;;  %v2774_v10 = vld [vmem:[#allocation14 + $0x10] sm:$0xff] }
 0xe4f   : > { %v6634_v20 = vpop.eup %6633  ;;  %6026 = vmatprep.subr.bf16.mxu0 %v6025_v31  ;;  %v6037_v34 = vpack.c.bf16 %v2775_v38, %v2774_v10 }
 0xe50   : > { %v2488_v23 = vmul.f32 %v6634_v20, %v6626_v1  ;;  %v2605_v52 = vpop.permute.xlu1 %2604 }
 0xe51   : > { %5698 = vmatmul.mubr.msk.f32.vlgmr.msra.gmra.mrb[16].mxu0 %vm1185_vm0, %v2484_v17  ;;  %v2647_v55 = vsel %vm1497_vm1, %v7910_v7, %v2605_v52  ;;  %6038 = vmatprep.subr.bf16.mxu1 %v6037_v34 }
 0xe52   : > { %5700 = vmatprep.mubr.msk.f32.mxu0 %vm1185_vm0, %v2486_v22  ;;  %6028 = vmatpush3.bf16.msra.mxu0 %v6025_v31 }
 0xe53   : > { %6030 = vmatprep.subr.bf16.mxu0 %v6029_v36  ;;  %6040 = vmatpush3.bf16.msra.mxu1 %v6037_v34 }
 0xe54   : > { %v2621_v54 = vpop.permute.xlu1 %2620 }
 0xe55   : > { %5701 = vmatmul.mubr.msk.f32.gmra.mrb[18].mxu0 %vm1185_vm0, %v2488_v23  ;;  %v2652_v37 = vsel %vm2650_vm7, %v2647_v55, %v2621_v54  ;;  %v5268_v54 = vld [vmem:[#allocation17] ss:$0 sm:$0xff] }
 0xe56   : > { %6032 = vmatpush3.bf16.msra.mxu0 %v6029_v36 }
 0xe58   : > { %v2609_v56 = vpop.permute.xlu1 %2608 }
 0xe59   : > { %v2649_v61 = vsel %vm1497_vm1, %v7914_v9, %v2609_v56 }
 0xf24   : > { %v5699_v41 = vpop.f32.mrb[16].mxu0 }
 0xf25   : > { %2636 = vrot.lane.b32.xlu1 %v5699_v41, %s8551_s23  ;;  %v2579_v44 = vpop.f32.mrb[17].mxu0 }
 0xf26   : > { %2634 = vrot.lane.b32.xlu0 %v2579_v44, %s8551_s23 }
 0xf28   : > { %v5702_v48 = vpop.f32.mrb[18].mxu0 }
 0xf29   : > { %2624 = vrot.lane.b32.xlu1 %v8022_v18, %s8553_s22  ;;  %v2589_v51 = vpop.f32.mrb[19].mxu0 }
 0xf2a   : > { %2622 = vrot.lane.b32.xlu0 %v8024_v19, %s8553_s22  ;;  %v2651_v19 = vsel %vm2650_vm7, %v2646_v30, %v2619_v32  ;;  %s8629_s22 = sld [smem:[#allocation49_spill]] }
 0xf2d   : > { %2640 = vrot.lane.b32.xlu1 %v5702_v48, %s8551_s23 }
 0xf2e   : > { %2638 = vrot.lane.b32.xlu0 %v2589_v51, %s8551_s23  ;;  %s8628_s23 = sld [smem:[#allocation45_spill]] }
 0xf34   : > { %v2884_v9 = vld [vmem:[%s8628_s23] sm:$0xff]  ;;  %v2885_v3 = vld [vmem:[%s8628_s23 + $0x8] sm:$0xff]  ;;  %v2886_v46 = vld [vmem:[%s8628_s23 + $0x10] sm:$0xff] }
 0xf35   : > { %v6041_v4 = vpack.c.bf16 %v2885_v3, %v2884_v9  ;;  %v2887_v5 = vld [vmem:[%s8628_s23 + $0x18] sm:$0xff]  ;;  %v2888_v45 = vld [vmem:[%s8628_s23 + $0x20] sm:$0xff]  ;;  %v2889_v11 = vld [vmem:[%s8628_s23 + $0x28] sm:$0xff] }
 0xf36   : > { %v6045_v6 = vpack.c.bf16 %v2887_v5, %v2886_v46  ;;  %v6049_v12 = vpack.c.bf16 %v2889_v11, %v2888_v45  ;;  %v2890_v31 = vld [vmem:[%s8628_s23 + $0x30] sm:$0xff] }
 0xf37   : > { %6042 = vmatprep.subr.bf16.mxu0 %v6041_v4 }
 0xf97   : > { %v2637_v18 = vpop.permute.xlu1 %2636 }
 0xf98   : > { %v2635_v58 = vpop.permute.xlu0 %2634  ;;  %v2657_v59 = vsel %vm2655_vm8, %v2652_v37, %v2637_v18 }
 0xf99   : > { %v2656_v35 = vsel %vm2655_vm8, %v2651_v19, %v2635_v58 }
 0xf9a   : > { %5711 = vmatprep.mubr.msk.f32.mxu0 %vm1185_vm0, %v2656_v35 }
 0xf9b   : > { %v2625_v53 = vpop.permute.xlu1 %2624  ;;  %5712 = vmatmul.mubr.msk.f32.vlgmr.msra.gmra.mrb[20].mxu0 %vm1185_vm0, %v2657_v59 }
 0xf9c   : > { %v2623_v8 = vpop.permute.xlu0 %2622  ;;  %v2654_v0 = vsel %vm2650_vm7, %v2649_v61, %v2625_v53  ;;  %6044 = vmatpush3.bf16.msra.mxu0 %v6041_v4 }
 0xf9d   : > { %v2653_v62 = vsel %vm2650_vm7, %v2648_v60, %v2623_v8  ;;  %6046 = vmatprep.subr.bf16.mxu0 %v6045_v6 }
 0xf9f   : > { %v2641_v7 = vpop.permute.xlu1 %2640 }
 0xfa0   : > { %v2639_v63 = vpop.permute.xlu0 %2638  ;;  %v2659_v2 = vsel %vm2655_vm8, %v2654_v0, %v2641_v7  ;;  %6048 = vmatpush3.bf16.msra.mxu0 %v6045_v6 }
 0xfa1   : > { %v2658_v1 = vsel %vm2655_vm8, %v2653_v62, %v2639_v63  ;;  %6050 = vmatprep.subr.bf16.mxu0 %v6049_v12 }
 0xfa2   : > { %5714 = vmatprep.mubr.msk.f32.mxu0 %vm1185_vm0, %v2658_v1 }
 0xfa3   : > { %5715 = vmatmul.mubr.msk.f32.gmra.mrb[22].mxu0 %vm1185_vm0, %v2659_v2 }
 0xfa4   : > { %6052 = vmatpush3.bf16.msra.mxu0 %v6049_v12 }
0x106e   : > { %v5713_v13 = vpop.f32.mrb[20].mxu0 }
0x106f   : > { %v2755_v14 = vadd.f32 %v5713_v13, %v5258_v50  ;;  %v2749_v47 = vpop.f32.mrb[21].mxu0 }
0x1070   : > { %v2750_v15 = vadd.f32 %v5258_v50, %v2749_v47 }
0x1071   : > { %v2769_v17 = vadd.f32 %v2755_v14, %v7774_v24  ;;  %v5263_v24 = vld [vmem:[#allocation16] ss:$0 sm:$0xff] }
0x1072   : > { %v2768_v16 = vadd.f32 %v2750_v15, %v7772_v21  ;;  %v2891_v21 = vld [vmem:[%s8628_s23 + $0x38] sm:$0xff] }
0x1073   : > { %v6053_v33 = vpack.c.bf16 %v2891_v21, %v2890_v31 }
0x1074   : > { %5725 = vmatprep.mubr.msk.f32.mxu1 %vm1185_vm0, %v2768_v16 }
0x1075   : > { %5726 = vmatmul.mubr.msk.f32.vlgmr.msra.gmra.mrb[20].mxu1 %vm1185_vm0, %v2769_v17  ;;  %6054 = vmatprep.subr.bf16.mxu0 %v6053_v33 }
0x1076   : > { %v5716_v20 = vpop.f32.mrb[22].mxu0  ;;  %6056 = vmatpush3.bf16.msra.mxu0 %v6053_v33  ;;  %v5273_v33 = vld [vmem:[#allocation19] ss:$0 sm:$0xff] }
0x1077   : > { %v2765_v22 = vadd.f32 %v5716_v20, %v5258_v50  ;;  %v2759_v23 = vpop.f32.mrb[23].mxu0 }
0x1078   : > { %v2760_v25 = vadd.f32 %v5258_v50, %v2759_v23 }
0x1079   : > { %v2771_v29 = vadd.f32 %v2765_v22, %v7778_v27 }
0x107a   : > { %v2770_v26 = vadd.f32 %v2760_v25, %v7780_v28 }
0x107c   : > { %5728 = vmatprep.mubr.msk.f32.mxu1 %vm1185_vm0, %v2770_v26 }
0x107d   : > { %5729 = vmatmul.mubr.msk.f32.gmra.mrb[22].mxu1 %vm1185_vm0, %v2771_v29 }
0x1148   : > { %v5727_v36 = vpop.f32.mrb[20].mxu1 }
0x1149   : > { %v2867_v39 = vadd.f32 %v5727_v36, %v5263_v24  ;;  %v2861_v40 = vpop.f32.mrb[21].mxu1 }
0x114a   : > { %v2862_v41 = vadd.f32 %v5263_v24, %v2861_v40  ;;  %v5274_v40 = vld [vmem:[#allocation20] ss:$0 sm:$0xff] }
0x114b   : > { %v2881_v44 = vmax.f32 %v2867_v39, 0.0 }
0x114c   : > { %v2880_v43 = vmax.f32 %v2862_v41, 0.0 }
0x114e   : > { %5747 = vmatprep.mubr.msk.f32.mxu0 %vm2899_vm9, %v2880_v43 }
0x114f   : > { %5748 = vmatmul.mubr.msk.f32.vlgmr.msra.gmra.mrb[24].mxu0 %vm2899_vm9, %v2881_v44 }
0x1150   : > { %v5730_v27 = vpop.f32.mrb[22].mxu1 }
0x1151   : > { %v2877_v28 = vadd.f32 %v5730_v27, %v5263_v24  ;;  %v2871_v48 = vpop.f32.mrb[23].mxu1 }
0x1152   : > { %v2872_v51 = vadd.f32 %v5263_v24, %v2871_v48 }
0x1153   : > { %v2883_v52 = vmax.f32 %v2877_v28, 0.0 }
0x1154   : > { %v2882_v49 = vmax.f32 %v2872_v51, 0.0 }
0x1156   : > { %5750 = vmatprep.mubr.msk.f32.mxu0 %vm2899_vm9, %v2882_v49 }
0x1157   : > { %5751 = vmatmul.mubr.msk.f32.gmra.mrb[26].mxu0 %vm2899_vm9, %v2883_v52 }
0x1222   : > { %v5749_v32 = vpop.f32.mrb[24].mxu0 }
0x1223   : > { %v2984_v56 = vadd.f32 %v5749_v32, %v5268_v54  ;;  %v2978_v57 = vpop.f32.mrb[25].mxu0 }
0x1224   : > { %v2979_v30 = vadd.f32 %v5268_v54, %v2978_v57 }
0x1225   : > { %v2998_v18 = vadd.f32 %v2984_v56, %v2769_v17 }
0x1226   : > { %v2997_v55 = vadd.f32 %v2979_v30, %v2768_v16 }
0x1227   : > { %v3004_v19 = vsel %vm1185_vm0, %v2998_v18, 0.0 }
0x1228   : > { %3005 = vadd.xlane.f32.xlu1 %v3004_v19  ;;  %v3001_v58 = vsel %vm1185_vm0, %v2997_v55, 0.0 }
0x1229   : > { %3002 = vadd.xlane.f32.xlu0 %v3001_v58 }
0x122a   : > { %v5752_v37 = vpop.f32.mrb[26].mxu0 }
0x122b   : > { %v2988_v35 = vpop.f32.mrb[27].mxu0  ;;  %v2994_v59 = vadd.f32 %v5752_v37, %v5268_v54 }
0x122c   : > { %v2989_v53 = vadd.f32 %v5268_v54, %v2988_v35 }
0x122d   : > { %v3000_v7 = vadd.f32 %v2994_v59, %v2771_v29 }
0x122e   : > { %v2999_v8 = vadd.f32 %v2989_v53, %v2770_v26 }
0x122f   : > { %v3010_v61 = vsel %vm1185_vm0, %v3000_v7, 0.0 }
0x1230   : > { %v3007_v60 = vsel %vm1185_vm0, %v2999_v8, 0.0 }
0x1231   : > { %3008 = vadd.xlane.f32.xlu0 %v3007_v60 }
0x1235   : > { %3011 = vadd.xlane.f32.xlu0 %v3010_v61 }
0x12b5   : > { %v3006_v62 = vpop.xlane.xlu1 %3005 }
0x12b6   : > { %v3014_v63 = vmul.f32 0.03125, %v3006_v62  ;;  %v3003_v0 = vpop.xlane.xlu0 %3002 }
0x12b7   : > { %v3013_v1 = vmul.f32 0.03125, %v3003_v0 }
0x12b8   : > { %v3018_v2 = vsub.f32 %v2998_v18, %v3014_v63 }
0x12b9   : > { %v3017_v10 = vsub.f32 %v2997_v55, %v3013_v1 }
0x12ba   : > { %v3022_v38 = vmul.f32 %v3018_v2, %v3018_v2 }
0x12bb   : > { %v3021_v34 = vmul.f32 %v3017_v10, %v3017_v10 }
0x12bc   : > { %v3028_v9 = vsel %vm1185_vm0, %v3022_v38, 0.0 }
0x12bd   : > { %3029 = vadd.xlane.f32.xlu1 %v3028_v9  ;;  %v3025_v3 = vsel %vm1185_vm0, %v3021_v34, 0.0 }
0x12be   : > { %3026 = vadd.xlane.f32.xlu0 %v3025_v3  ;;  %v3009_v46 = vpop.xlane.xlu0 %3008 }
0x12bf   : > { %v3015_v4 = vmul.f32 0.03125, %v3009_v46 }
0x12c1   : > { %v3019_v5 = vsub.f32 %v2999_v8, %v3015_v4  ;;  %v3153_v4 = vld [vmem:[%s8629_s22] sm:$0xff] }
0x12c2   : > { %v3012_v6 = vpop.xlane.xlu0 %3011 }
0x12c3   : > { %v3016_v45 = vmul.f32 0.03125, %v3012_v6  ;;  %v3023_v11 = vmul.f32 %v3019_v5, %v3019_v5 }
0x12c5   : > { %v3020_v12 = vsub.f32 %v3000_v7, %v3016_v45  ;;  %v3031_v50 = vsel %vm1185_vm0, %v3023_v11, 0.0  ;;  %v3155_v45 = vld [vmem:[%s8629_s22 + $0x10] sm:$0xff]  ;;  %v3156_v11 = vld [vmem:[%s8629_s22 + $0x18] sm:$0xff] }
0x12c6   : > { %3032 = vadd.xlane.f32.xlu0 %v3031_v50 }
0x12c7   : > { %v3024_v13 = vmul.f32 %v3020_v12, %v3020_v12 }
0x12c9   : > { %v3034_v14 = vsel %vm1185_vm0, %v3024_v13, 0.0 }
0x12ca   : > { %3035 = vadd.xlane.f32.xlu1 %v3034_v14 }
0x134a   : > { %v3030_v47 = vpop.xlane.xlu1 %3029 }
0x134b   : > { %v3038_v15 = vmul.f32 0.03125, %v3030_v47  ;;  %v3027_v16 = vpop.xlane.xlu0 %3026 }
0x134c   : > { %v3037_v17 = vmul.f32 0.03125, %v3027_v16 }
0x134d   : > { %v3042_v20 = vadd.f32 1e-05, %v3038_v15 }
0x134e   : > { %v3041_v22 = vadd.f32 1e-05, %v3037_v17 }
0x134f   : > { %6635 = vrsqrt.f32 %v3042_v20 }
0x1350   : > { %6637 = vrsqrt.f32 %v3041_v22 }
0x1353   : > { %v3033_v23 = vpop.xlane.xlu0 %3032 }
0x1354   : > { %v3039_v25 = vmul.f32 0.03125, %v3033_v23 }
0x1356   : > { %v3043_v26 = vadd.f32 1e-05, %v3039_v25 }
0x1357   : > { %v3036_v29 = vpop.xlane.xlu1 %3035 }
0x1358   : > { %6639 = vrsqrt.f32 %v3043_v26  ;;  %v3040_v31 = vmul.f32 0.03125, %v3036_v29  ;;  %v5275_v29 = vld [vmem:[%s8630_s14] ss:$0 sm:$0xff]  ;;  %s8637_s14 = smov 80  }
0x1359   : > { %v6636_v21 = vpop.eup %6635 }
0x135a   : > { %v6638_v24 = vpop.eup %6637  ;;  %v3044_v36 = vadd.f32 1e-05, %v3040_v31  ;;  %v3050_v39 = vmul.f32 %v6636_v21, %v3018_v2 }
0x135b   : > { %v3049_v41 = vmul.f32 %v6638_v24, %v3017_v10 }
0x135c   : > { %6641 = vrsqrt.f32 %v3044_v36  ;;  %v3061_v43 = vmul.f32 %v5273_v33, %v3050_v39  ;;  %v5276_v39 = vld [vmem:[%s8631_s0] ss:$0 sm:$0xff]  ;;  %s8636_s0 = smov 56  }
0x135d   : > { %v3060_v44 = vmul.f32 %v5273_v33, %v3049_v41 }
0x135e   : > { %v8116_v27 = vadd.f32 %v5274_v40, %v3061_v43 }
0x135f   : > { %v8118_v28 = vadd.f32 %v5274_v40, %v3060_v44 }
0x1360   : > { %v3082_v48 = vsel %vm1185_vm0, %v8116_v27, 0.0 }
0x1361   : > { %3083 = vadd.xlane.f32.xlu1 %v3082_v48  ;;  %v3079_v51 = vsel %vm1185_vm0, %v8118_v28, 0.0 }
0x1362   : > { %v6640_v49 = vpop.eup %6639  ;;  %3080 = vadd.xlane.f32.xlu0 %v3079_v51 }
0x1363   : > { %v3051_v52 = vmul.f32 %v6640_v49, %v3019_v5  ;;  %v3154_v5 = vld [vmem:[%s8629_s22 + $0x8] sm:$0xff] }
0x1364   : > { %v6057_v6 = vpack.c.bf16 %v3154_v5, %v3153_v4 }
0x1365   : > { %v3062_v54 = vmul.f32 %v5273_v33, %v3051_v52 }
0x1366   : > { %v6642_v32 = vpop.eup %6641  ;;  %6058 = vmatprep.subr.bf16.mxu1 %v6057_v6 }
0x1367   : > { %v8124_v56 = vadd.f32 %v5274_v40, %v3062_v54  ;;  %v3052_v57 = vmul.f32 %v6642_v32, %v3020_v12  ;;  %6060 = vmatpush3.bf16.msra.mxu1 %v6057_v6  ;;  %v6061_v12 = vpack.c.bf16 %v3156_v11, %v3155_v45 }
0x1369   : > { %v3085_v30 = vsel %vm1185_vm0, %v8124_v56, 0.0  ;;  %v3063_v18 = vmul.f32 %v5273_v33, %v3052_v57  ;;  %6062 = vmatprep.subr.bf16.mxu1 %v6061_v12 }
0x136a   : > { %3086 = vadd.xlane.f32.xlu0 %v3085_v30  ;;  %v5277_v30 = vld [vmem:[%s8632_s9] ss:$0 sm:$0xff]  ;;  %s8633_s9 = sld [smem:[#allocation40_spill]] }
0x136b   : > { %v8128_v55 = vadd.f32 %v5274_v40, %v3063_v18  ;;  %6064 = vmatpush3.bf16.msra.mxu1 %v6061_v12 }
0x136d   : > { %v3088_v19 = vsel %vm1185_vm0, %v8128_v55, 0.0 }
0x136e   : > { %3089 = vadd.xlane.f32.xlu1 %v3088_v19 }
0x1370   : > { %v8196_v5 = vld [vmem:[%s8633_s9 + $0x18] sm:$0xff]  ;;  %v8199_v45 = vld [vmem:[%s8633_s9 + $0x10] sm:$0xff] }
0x1371   : > { %vm3381_vm12 = vcmp.gt.f32.partialorder %v8196_v5, 0.5  ;;  %vm3380_vm13 = vcmp.gt.f32.partialorder %v8199_v45, 0.5 }
0x13ee   : > { %v3084_v58 = vpop.xlane.xlu1 %3083 }
0x13ef   : > { %v3092_v37 = vmul.f32 0.03125, %v3084_v58  ;;  %v3081_v35 = vpop.xlane.xlu0 %3080 }
0x13f0   : > { %v3091_v59 = vmul.f32 0.03125, %v3081_v35 }
0x13f1   : > { %v3096_v53 = vsub.f32 %v8116_v27, %v3092_v37 }
0x13f2   : > { %v3095_v8 = vsub.f32 %v8118_v28, %v3091_v59 }
0x13f3   : > { %v3100_v60 = vmul.f32 %v3096_v53, %v3096_v53 }
0x13f4   : > { %v3099_v7 = vmul.f32 %v3095_v8, %v3095_v8 }
0x13f5   : > { %v3106_v61 = vsel %vm1185_vm0, %v3100_v60, 0.0 }
0x13f6   : > { %3107 = vadd.xlane.f32.xlu1 %v3106_v61  ;;  %v3103_v62 = vsel %vm1185_vm0, %v3099_v7, 0.0 }
0x13f7   : > { %3104 = vadd.xlane.f32.xlu0 %v3103_v62  ;;  %v3087_v63 = vpop.xlane.xlu0 %3086 }
0x13f8   : > { %v3093_v0 = vmul.f32 0.03125, %v3087_v63 }
0x13fa   : > { %v3097_v1 = vsub.f32 %v8124_v56, %v3093_v0 }
0x13fb   : > { %v3090_v2 = vpop.xlane.xlu1 %3089 }
0x13fc   : > { %v3094_v10 = vmul.f32 0.03125, %v3090_v2  ;;  %v3101_v38 = vmul.f32 %v3097_v1, %v3097_v1 }
0x13fe   : > { %v3098_v34 = vsub.f32 %v8128_v55, %v3094_v10  ;;  %v3109_v9 = vsel %vm1185_vm0, %v3101_v38, 0.0 }
0x13ff   : > { %3110 = vadd.xlane.f32.xlu0 %v3109_v9  ;;  %v8191_v9 = vld [vmem:[%s8633_s9] sm:$0xff] }
0x1400   : > { %v3102_v3 = vmul.f32 %v3098_v34, %v3098_v34  ;;  %vm3378_vm11 = vcmp.gt.f32.partialorder %v8191_v9, 0.5 }
0x1402   : > { %v3112_v46 = vsel %vm1185_vm0, %v3102_v3, 0.0 }
0x1403   : > { %3113 = vadd.xlane.f32.xlu1 %v3112_v46 }
0x1483   : > { %v3108_v50 = vpop.xlane.xlu1 %3107 }
0x1484   : > { %v3116_v13 = vmul.f32 0.03125, %v3108_v50  ;;  %v3105_v14 = vpop.xlane.xlu0 %3104 }
0x1485   : > { %v3115_v47 = vmul.f32 0.03125, %v3105_v14 }
0x1486   : > { %v3120_v15 = vadd.f32 1e-05, %v3116_v13 }
0x1487   : > { %v3119_v16 = vadd.f32 1e-05, %v3115_v47 }
0x1488   : > { %6643 = vrsqrt.f32 %v3120_v15 }
0x1489   : > { %6645 = vrsqrt.f32 %v3119_v16 }
0x148c   : > { %v3111_v17 = vpop.xlane.xlu0 %3110 }
0x148d   : > { %v3117_v20 = vmul.f32 0.03125, %v3111_v17 }
0x148f   : > { %v3121_v22 = vadd.f32 1e-05, %v3117_v20 }
0x1490   : > { %v3114_v23 = vpop.xlane.xlu1 %3113 }
0x1491   : > { %6647 = vrsqrt.f32 %v3121_v22  ;;  %v3118_v25 = vmul.f32 0.03125, %v3114_v23 }
0x1492   : > { %v6644_v26 = vpop.eup %6643 }
0x1493   : > { %v6646_v31 = vpop.eup %6645  ;;  %v3128_v21 = vmul.f32 %v6644_v26, %v3096_v53  ;;  %v3122_v33 = vadd.f32 1e-05, %v3118_v25 }
0x1494   : > { %v3127_v24 = vmul.f32 %v6646_v31, %v3095_v8 }
0x1495   : > { %6649 = vrsqrt.f32 %v3122_v33  ;;  %v3139_v36 = vmul.f32 %v5275_v29, %v3128_v21 }
0x1496   : > { %v3138_v40 = vmul.f32 %v5275_v29, %v3127_v24 }
0x1497   : > { %v3150_v43 = vadd.f32 %v5276_v39, %v3139_v36 }
0x1498   : > { %v3149_v41 = vadd.f32 %v5276_v39, %v3138_v40 }
0x149a   : > { %5761 = vmatprep.mubr.msk.f32.mxu1 %vm1185_vm0, %v3149_v41 }
0x149b   : > { %v6648_v44 = vpop.eup %6647  ;;  %5762 = vmatmul.mubr.msk.f32.vlgmr.msra.gmra.mrb[24].mxu1 %vm1185_vm0, %v3150_v43 }
0x149c   : > { %v3129_v48 = vmul.f32 %v6648_v44, %v3097_v1 }
0x149e   : > { %v3140_v51 = vmul.f32 %v5275_v29, %v3129_v48 }
0x149f   : > { %v6650_v49 = vpop.eup %6649 }
0x14a0   : > { %v3151_v52 = vadd.f32 %v5276_v39, %v3140_v51  ;;  %v3130_v54 = vmul.f32 %v6650_v49, %v3098_v34  ;;  %v8188_v34 = vld [vmem:[%s8633_s9 + $0x8] sm:$0xff] }
0x14a1   : > { %vm3379_vm10 = vcmp.gt.f32.partialorder %v8188_v34, 0.5 }
0x14a2   : > { %5764 = vmatprep.mubr.msk.f32.mxu1 %vm1185_vm0, %v3151_v52  ;;  %v3141_v32 = vmul.f32 %v5275_v29, %v3130_v54 }
0x14a4   : > { %v3152_v57 = vadd.f32 %v5276_v39, %v3141_v32 }
0x14a6   : > { %5765 = vmatmul.mubr.msk.f32.gmra.mrb[26].mxu1 %vm1185_vm0, %v3152_v57 }
0x156e   : > { %v5763_v18 = vpop.f32.mrb[24].mxu1 }
0x156f   : > { %v8151_v19 = vadd.f32 %v5763_v18, %v5277_v30  ;;  %v3242_v58 = vpop.f32.mrb[25].mxu1 }
0x1570   : > { %v8153_v37 = vadd.f32 %v5277_v30, %v3242_v58 }
0x1572   : > { %5775 = vmatprep.mubr.msk.f32.mxu1 %vm1497_vm1, %v8153_v37  ;;  %v8159_v35 = vpack.i.bf16 %v8151_v19, %v8153_v37 }
0x1574   : > { %6484 = vrot.lane.b32.xlu0 %v8159_v35, %s7269_s16 }
0x1579   : > { %v5766_v59 = vpop.f32.mrb[26].mxu1 }
0x157a   : > { %v8163_v53 = vadd.f32 %v5766_v59, %v5277_v30  ;;  %v3252_v8 = vpop.f32.mrb[27].mxu1 }
0x157b   : > { %v8165_v60 = vadd.f32 %v5277_v30, %v3252_v8 }
0x157d   : > { %v8169_v7 = vpack.i.bf16 %v8163_v53, %v8165_v60 }
0x157f   : > { %6489 = vrot.lane.b32.xlu1 %v8169_v7, %s7269_s16  ;;  %s8634_s16 = smov 88  }
0x15e6   : > { %v6485_v61 = vpop.permute.xlu0 %6484 }
0x15e7   : > { %v6487_v62 = vunpack.i.h.bf16 %v6485_v61  ;;  %v6486_v63 = vunpack.i.l.bf16 %v6485_v61 }
0x15e9   : > { %v6065_v0 = vpack.c.bf16 %v6487_v62, %v6486_v63 }
0x15eb   : > { %6067 = vmatprep.subr.msk.bf16.mxu1 %vm7828_vm2, %v6065_v0 }
0x15ec   : > { %6070 = vmatpush3.bf16.xpose.msk.msra.mxu1 %vm7828_vm2, %v6065_v0 }
0x15f1   : > { %v6490_v1 = vpop.permute.xlu1 %6489 }
0x15f2   : > { %v6492_v2 = vunpack.i.h.bf16 %v6490_v1  ;;  %v6491_v10 = vunpack.i.l.bf16 %v6490_v1 }
0x15f4   : > { %v6071_v38 = vpack.c.bf16 %v6492_v2, %v6491_v10 }
0x15f6   : > { %6073 = vmatprep.subr.msk.bf16.mxu1 %vm7828_vm2, %v6071_v38 }
0x15f7   : > { %6076 = vmatpush3.bf16.xpose.msk.msra.mxu1 %vm7828_vm2, %v6071_v38 }
0x15fe   : > { %5776 = vmatmul.mubr.msk.f32.vlgmr.msra.gmra.mrb[28].mxu1 %vm1497_vm1, %v8151_v19 }
0x15ff   : > { %5778 = vmatprep.mubr.msk.f32.mxu1 %vm1497_vm1, %v8165_v60 }
0x1602   : > { %5779 = vmatmul.mubr.msk.f32.gmra.mrb[30].mxu1 %vm1497_vm1, %v8163_v53 }
0x16d1   : > { %v5777_v3 = vpop.f32.mrb[28].mxu1 }
0x16d2   : > { %v3375_v46 = vmul.f32 0.35355338, %v5777_v3  ;;  %v3355_v4 = vpop.f32.mrb[29].mxu1 }
0x16d3   : > { %v3374_v6 = vmul.f32 0.35355338, %v3355_v4 }
0x16d4   : > { %v3383_v11 = vsel %vm3379_vm10, %v3375_v46, -1e+09 }
0x16d5   : > { %v3382_v12 = vsel %vm3378_vm11, %v3374_v6, -1e+09  ;;  %v5780_v50 = vpop.f32.mrb[30].mxu1  ;;  %v3389_v13 = vsel %vm1185_vm0, %v3383_v11, -inf }
0x16d6   : > { %v3377_v14 = vmul.f32 0.35355338, %v5780_v50  ;;  %3390 = vmax.xlane.f32.xlu0 %v3389_v13  ;;  %v3365_v47 = vpop.f32.mrb[31].mxu1  ;;  %v3386_v15 = vsel %vm1185_vm0, %v3382_v12, -inf }
0x16d7   : > { %v3376_v16 = vmul.f32 0.35355338, %v3365_v47  ;;  %3387 = vmax.xlane.f32.xlu1 %v3386_v15 }
0x16d8   : > { %v3385_v17 = vsel %vm3381_vm12, %v3377_v14, -1e+09 }
0x16d9   : > { %v3384_v20 = vsel %vm3380_vm13, %v3376_v16, -1e+09  ;;  %v3395_v22 = vsel %vm1185_vm0, %v3385_v17, -inf }
0x16da   : > { %v3392_v23 = vsel %vm1185_vm0, %v3384_v20, -inf }
0x16db   : > { %3396 = vmax.xlane.f32.xlu1 %v3395_v22  ;;  %3393 = vmax.xlane.f32.xlu0 %v3392_v23 }
0x1763   : > { %v3391_v25 = vpop.xlane.xlu0 %3390 }
0x1764   : > { %v3399_v26 = vsub.f32 %v3383_v11, %v3391_v25  ;;  %v3388_v29 = vpop.xlane.xlu1 %3387 }
0x1765   : > { %v3398_v31 = vsub.f32 %v3382_v12, %v3388_v29 }
0x1766   : > { %v3404_v21 = vmul.f32 1.442695, %v3399_v26 }
0x1767   : > { %v3402_v33 = vmul.f32 1.442695, %v3398_v31 }
0x1768   : > { %6651 = vpow2.f32 %v3404_v21  ;;  %v3394_v41 = vpop.xlane.xlu0 %3393  ;;  %v3397_v44 = vpop.xlane.xlu1 %3396 }
0x1769   : > { %6653 = vpow2.f32 %v3402_v33  ;;  %v3400_v43 = vsub.f32 %v3384_v20, %v3394_v41  ;;  %v3401_v51 = vsub.f32 %v3385_v17, %v3397_v44 }
0x176b   : > { %v3406_v48 = vmul.f32 1.442695, %v3400_v43  ;;  %v3408_v49 = vmul.f32 1.442695, %v3401_v51 }
0x176d   : > { %6655 = vpow2.f32 %v3406_v48 }
0x176e   : > { %6657 = vpow2.f32 %v3408_v49 }
0x1772   : > { %v6652_v24 = vpop.eup %6651 }
0x1773   : > { %v6654_v36 = vpop.eup %6653  ;;  %v3413_v39 = vsel %vm1185_vm0, %v6652_v24, 0.0 }
0x1774   : > { %3414 = vadd.xlane.f32.xlu1 %v3413_v39  ;;  %v3410_v40 = vsel %vm1185_vm0, %v6654_v36, 0.0 }
0x1775   : > { %3411 = vadd.xlane.f32.xlu0 %v3410_v40 }
0x1777   : > { %v6656_v52 = vpop.eup %6655 }
0x1778   : > { %v3416_v54 = vsel %vm1185_vm0, %v6656_v52, 0.0  ;;  %v6658_v32 = vpop.eup %6657 }
0x1779   : > { %v3419_v57 = vsel %vm1185_vm0, %v6658_v32, 0.0 }
0x1785   : > { %6499 = vrot.lane.b32.xlu1 %v8169_v7, %s7270_s10 }
0x1789   : > { %6504 = vrot.lane.b32.xlu1 %v8159_v35, %s8634_s16 }
0x178b   : > { %6494 = vrot.lane.b32.xlu0 %v8159_v35, %s7270_s10  ;;  %s8635_s10 = smov 120  }
0x178d   : > { %6509 = vrot.lane.b32.xlu1 %v8169_v7, %s8634_s16  ;;  %s8638_s16 = smov 112  }
0x17aa   : > { %3417 = vadd.xlane.f32.xlu0 %v3416_v54 }
0x17b1   : > { %3420 = vadd.xlane.f32.xlu1 %v3419_v57 }
0x17c0   : > { %3539 = vrot.lane.b32.xlu0 %v8153_v37, %s8635_s10 }
0x17c2   : > { %3541 = vrot.lane.b32.xlu1 %v8151_v19, %s8635_s10 }
0x17c4   : > { %3543 = vrot.lane.b32.xlu0 %v8165_v60, %s8635_s10 }
0x17c6   : > { %3545 = vrot.lane.b32.xlu1 %v8163_v53, %s8635_s10  ;;  %s8639_s10 = smov 48  }
0x1801   : > { %v3415_v30 = vpop.xlane.xlu1 %3414 }
0x1802   : > { %v3412_v18 = vpop.xlane.xlu0 %3411 }
0x1803   : > { %6659 = vrcp.f32 %v3412_v18 }
0x1804   : > { %6661 = vrcp.f32 %v3415_v30 }
0x1805   : > { %v6500_v58 = vpop.permute.xlu1 %6499 }
0x1806   : > { %v6495_v59 = vpop.permute.xlu0 %6494  ;;  %v6502_v8 = vunpack.i.h.bf16 %v6500_v58  ;;  %v6501_v61 = vunpack.i.l.bf16 %v6500_v58 }
0x1807   : > { %v6497_v62 = vunpack.i.h.bf16 %v6495_v59  ;;  %v6496_v63 = vunpack.i.l.bf16 %v6495_v59 }
0x1808   : > { %v6081_v2 = vpack.c.bf16 %v6502_v8, %v6501_v61 }
0x1809   : > { %v6077_v0 = vpack.c.bf16 %v6497_v62, %v6496_v63  ;;  %v6505_v1 = vpop.permute.xlu1 %6504 }
0x180a   : > { %v6507_v10 = vunpack.i.h.bf16 %v6505_v1  ;;  %v6506_v38 = vunpack.i.l.bf16 %v6505_v1 }
0x180b   : > { %6078 = vmatprep.subr.bf16.mxu0 %v6077_v0 }
0x180c   : > { %6080 = vmatpush3.bf16.msra.mxu0 %v6077_v0  ;;  %v6085_v6 = vpack.c.bf16 %v6507_v10, %v6506_v38 }
0x180d   : > { %v6660_v3 = vpop.eup %6659  ;;  %6082 = vmatprep.subr.bf16.mxu0 %v6081_v2  ;;  %v6510_v12 = vpop.permute.xlu1 %6509 }
0x180e   : > { %v6662_v46 = vpop.eup %6661  ;;  %v3423_v4 = vmul.f32 %v6660_v3, %v6654_v36  ;;  %v6512_v50 = vunpack.i.h.bf16 %v6510_v12  ;;  %v6511_v13 = vunpack.i.l.bf16 %v6510_v12 }
0x180f   : > { %v3425_v11 = vmul.f32 %v6662_v46, %v6652_v24 }
0x1810   : > { %6084 = vmatpush3.bf16.msra.mxu0 %v6081_v2  ;;  %5789 = vmatprep.mubr.msk.f32.mxu0 %vm1185_vm0, %v3423_v4  ;;  %v6091_v14 = vpack.c.bf16 %v6512_v50, %v6511_v13 }
0x1811   : > { %6087 = vmatprep.subr.msk.bf16.mxu0 %vm7828_vm2, %v6085_v6 }
0x1813   : > { %5790 = vmatmul.mubr.msk.f32.vlgmr.msra.gmra.mrb[28].mxu0 %vm1185_vm0, %v3425_v11 }
0x1819   : > { %6090 = vmatpush3.bf16.xpose.msk.msra.mxu0 %vm7828_vm2, %v6085_v6 }
0x181a   : > { %6093 = vmatprep.subr.msk.bf16.mxu0 %vm7828_vm2, %v6091_v14 }
0x1821   : > { %6096 = vmatpush3.bf16.xpose.msk.msra.mxu0 %vm7828_vm2, %v6091_v14 }
0x1837   : > { %v3418_v47 = vpop.xlane.xlu0 %3417 }
0x1838   : > { %6663 = vrcp.f32 %v3418_v47 }
0x183b   : > { %v3540_v22 = vpop.permute.xlu0 %3539 }
0x183e   : > { %v3421_v15 = vpop.xlane.xlu1 %3420 }
0x183f   : > { %6665 = vrcp.f32 %v3421_v15  ;;  %v3544_v26 = vpop.permute.xlu0 %3543 }
0x1842   : > { %v6664_v16 = vpop.eup %6663  ;;  %v3542_v25 = vpop.permute.xlu1 %3541 }
0x1843   : > { %v3427_v17 = vmul.f32 %v6664_v16, %v6656_v52 }
0x1845   : > { %5792 = vmatprep.mubr.msk.f32.mxu0 %vm1185_vm0, %v3427_v17 }
0x1846   : > { %v3546_v29 = vpop.permute.xlu1 %3545 }
0x1849   : > { %v6666_v20 = vpop.eup %6665 }
0x184a   : > { %v3429_v23 = vmul.f32 %v6666_v20, %v6658_v32 }
0x184c   : > { %5793 = vmatmul.mubr.msk.f32.gmra.mrb[30].mxu0 %vm1185_vm0, %v3429_v23 }
0x184d   : > { %5803 = vmatprep.mubr.msk.f32.mxu0 %vm1497_vm1, %v3540_v22 }
0x1850   : > { %5804 = vmatmul.mubr.msk.f32.vlgmr.msra.gmra.mrb[32].mxu0 %vm1497_vm1, %v3542_v25 }
0x1851   : > { %5806 = vmatprep.mubr.msk.f32.mxu0 %vm1497_vm1, %v3544_v26 }
0x1854   : > { %5807 = vmatmul.mubr.msk.f32.gmra.mrb[34].mxu0 %vm1497_vm1, %v3546_v29 }
0x18e6   : > { %v8251_v31 = vpop.f32.mrb[28].mxu0 }
0x18e7   : > { %v8253_v21 = vpop.f32.mrb[29].mxu0 }
0x191f   : > { %v8255_v33 = vpop.f32.mrb[30].mxu0 }
0x1920   : > { %v8257_v24 = vpop.f32.mrb[31].mxu0 }
0x1923   : > { %v5805_v36 = vpop.f32.mrb[32].mxu0 }
0x1924   : > { %v3657_v39 = vmul.f32 0.35355338, %v5805_v36  ;;  %v3637_v40 = vpop.f32.mrb[33].mxu0 }
0x1925   : > { %v3656_v41 = vmul.f32 0.35355338, %v3637_v40 }
0x1926   : > { %v3661_v43 = vsel %vm3379_vm10, %v3657_v39, -1e+09 }
0x1927   : > { %v3660_v44 = vsel %vm3378_vm11, %v3656_v41, -1e+09  ;;  %v5808_v48 = vpop.f32.mrb[34].mxu0  ;;  %v3667_v51 = vsel %vm1185_vm0, %v3661_v43, -inf }
0x1928   : > { %3668 = vmax.xlane.f32.xlu1 %v3667_v51  ;;  %v3647_v49 = vpop.f32.mrb[35].mxu0  ;;  %v3664_v52 = vsel %vm1185_vm0, %v3660_v44, -inf  ;;  %v3659_v54 = vmul.f32 0.35355338, %v5808_v48 }
0x1929   : > { %v3658_v32 = vmul.f32 0.35355338, %v3647_v49  ;;  %3665 = vmax.xlane.f32.xlu0 %v3664_v52 }
0x192a   : > { %v3663_v18 = vsel %vm3381_vm12, %v3659_v54, -1e+09 }
0x192b   : > { %v3662_v57 = vsel %vm3380_vm13, %v3658_v32, -1e+09  ;;  %v3673_v58 = vsel %vm1185_vm0, %v3663_v18, -inf }
0x192c   : > { %v3670_v30 = vsel %vm1185_vm0, %v3662_v57, -inf }
0x192d   : > { %3671 = vmax.xlane.f32.xlu0 %v3670_v30 }
0x1931   : > { %3674 = vmax.xlane.f32.xlu0 %v3673_v58 }
0x19b5   : > { %v3669_v59 = vpop.xlane.xlu1 %3668 }
0x19b6   : > { %v3677_v8 = vsub.f32 %v3661_v43, %v3669_v59  ;;  %v3666_v61 = vpop.xlane.xlu0 %3665 }
0x19b7   : > { %v3676_v62 = vsub.f32 %v3660_v44, %v3666_v61 }
0x19b8   : > { %v3682_v63 = vmul.f32 1.442695, %v3677_v8 }
0x19b9   : > { %v3680_v0 = vmul.f32 1.442695, %v3676_v62 }
0x19ba   : > { %6667 = vpow2.f32 %v3682_v63  ;;  %v3672_v3 = vpop.xlane.xlu0 %3671 }
0x19bb   : > { %6669 = vpow2.f32 %v3680_v0  ;;  %v3678_v46 = vsub.f32 %v3662_v57, %v3672_v3 }
0x19bd   : > { %v3684_v4 = vmul.f32 1.442695, %v3678_v46 }
0x19be   : > { %v3675_v6 = vpop.xlane.xlu0 %3674 }
0x19bf   : > { %v3679_v11 = vsub.f32 %v3663_v18, %v3675_v6  ;;  %6671 = vpow2.f32 %v3684_v4 }
0x19c1   : > { %v3686_v12 = vmul.f32 1.442695, %v3679_v11 }
0x19c3   : > { %6673 = vpow2.f32 %v3686_v12 }
0x19c4   : > { %v6668_v1 = vpop.eup %6667 }
0x19c5   : > { %v6670_v2 = vpop.eup %6669  ;;  %v3691_v10 = vsel %vm1185_vm0, %v6668_v1, 0.0 }
0x19c6   : > { %3692 = vadd.xlane.f32.xlu1 %v3691_v10  ;;  %v3688_v38 = vsel %vm1185_vm0, %v6670_v2, 0.0 }
0x19c7   : > { %3689 = vadd.xlane.f32.xlu0 %v3688_v38 }
0x19c9   : > { %v6672_v50 = vpop.eup %6671 }
0x19ca   : > { %v3694_v13 = vsel %vm1185_vm0, %v6672_v50, 0.0 }
0x19cd   : > { %v6674_v14 = vpop.eup %6673 }
0x19ce   : > { %v3697_v47 = vsel %vm1185_vm0, %v6674_v14, 0.0 }
0x19d7   : > { %6519 = vrot.lane.b32.xlu1 %v8169_v7, %s8636_s0 }
0x19db   : > { %6524 = vrot.lane.b32.xlu1 %v8159_v35, %s8637_s14 }
0x19dd   : > { %6514 = vrot.lane.b32.xlu0 %v8159_v35, %s8636_s0  ;;  %s8640_s0 = smov 72  }
0x19df   : > { %6529 = vrot.lane.b32.xlu1 %v8169_v7, %s8637_s14  ;;  %s8641_s14 = smov 104  }
0x19fc   : > { %3695 = vadd.xlane.f32.xlu0 %v3694_v13 }
0x1a03   : > { %3698 = vadd.xlane.f32.xlu1 %v3697_v47 }
0x1a12   : > { %3817 = vrot.lane.b32.xlu0 %v8153_v37, %s8638_s16 }
0x1a14   : > { %3819 = vrot.lane.b32.xlu1 %v8151_v19, %s8638_s16 }
0x1a16   : > { %3821 = vrot.lane.b32.xlu0 %v8165_v60, %s8638_s16 }
0x1a18   : > { %3823 = vrot.lane.b32.xlu1 %v8163_v53, %s8638_s16  ;;  %s8642_s16 = smov 40  }
0x1a53   : > { %v3693_v15 = vpop.xlane.xlu1 %3692 }
0x1a54   : > { %v3690_v16 = vpop.xlane.xlu0 %3689 }
0x1a55   : > { %6675 = vrcp.f32 %v3690_v16 }
0x1a56   : > { %6677 = vrcp.f32 %v3693_v15 }
0x1a57   : > { %v6520_v17 = vpop.permute.xlu1 %6519 }
0x1a58   : > { %v6515_v20 = vpop.permute.xlu0 %6514  ;;  %v6522_v22 = vunpack.i.h.bf16 %v6520_v17  ;;  %v6521_v23 = vunpack.i.l.bf16 %v6520_v17 }
0x1a59   : > { %v6517_v25 = vunpack.i.h.bf16 %v6515_v20  ;;  %v6516_v26 = vunpack.i.l.bf16 %v6515_v20 }
0x1a5a   : > { %v6101_v39 = vpack.c.bf16 %v6522_v22, %v6521_v23 }
0x1a5b   : > { %v6097_v29 = vpack.c.bf16 %v6517_v25, %v6516_v26  ;;  %v6525_v36 = vpop.permute.xlu1 %6524 }
0x1a5c   : > { %v6527_v40 = vunpack.i.h.bf16 %v6525_v36  ;;  %v6526_v41 = vunpack.i.l.bf16 %v6525_v36 }
0x1a5d   : > { %6098 = vmatprep.subr.bf16.mxu1 %v6097_v29 }
0x1a5e   : > { %6100 = vmatpush3.bf16.msra.mxu1 %v6097_v29  ;;  %v6105_v51 = vpack.c.bf16 %v6527_v40, %v6526_v41 }
0x1a5f   : > { %v6676_v43 = vpop.eup %6675  ;;  %6102 = vmatprep.subr.bf16.mxu1 %v6101_v39  ;;  %v6530_v52 = vpop.permute.xlu1 %6529 }
0x1a60   : > { %v6678_v44 = vpop.eup %6677  ;;  %v3701_v48 = vmul.f32 %v6676_v43, %v6670_v2  ;;  %v6532_v54 = vunpack.i.h.bf16 %v6530_v52  ;;  %v6531_v32 = vunpack.i.l.bf16 %v6530_v52 }
0x1a61   : > { %v3703_v49 = vmul.f32 %v6678_v44, %v6668_v1 }
0x1a62   : > { %6104 = vmatpush3.bf16.msra.mxu1 %v6101_v39  ;;  %5817 = vmatprep.mubr.msk.f32.mxu1 %vm1185_vm0, %v3701_v48  ;;  %v6111_v57 = vpack.c.bf16 %v6532_v54, %v6531_v32 }
0x1a63   : > { %6107 = vmatprep.subr.msk.bf16.mxu1 %vm7828_vm2, %v6105_v51 }
0x1a65   : > { %5818 = vmatmul.mubr.msk.f32.vlgmr.msra.gmra.mrb[32].mxu1 %vm1185_vm0, %v3703_v49 }
0x1a6b   : > { %6110 = vmatpush3.bf16.xpose.msk.msra.mxu1 %vm7828_vm2, %v6105_v51 }
0x1a6c   : > { %6113 = vmatprep.subr.msk.bf16.mxu1 %vm7828_vm2, %v6111_v57 }
0x1a73   : > { %6116 = vmatpush3.bf16.xpose.msk.msra.mxu1 %vm7828_vm2, %v6111_v57 }
0x1a89   : > { %v3696_v30 = vpop.xlane.xlu0 %3695 }
0x1a8a   : > { %6679 = vrcp.f32 %v3696_v30 }
0x1a8d   : > { %v3818_v61 = vpop.permute.xlu0 %3817 }
0x1a90   : > { %v3699_v18 = vpop.xlane.xlu1 %3698 }
0x1a91   : > { %6681 = vrcp.f32 %v3699_v18  ;;  %v3822_v0 = vpop.permute.xlu0 %3821 }
0x1a94   : > { %v6680_v58 = vpop.eup %6679  ;;  %v3820_v63 = vpop.permute.xlu1 %3819 }
0x1a95   : > { %v3705_v59 = vmul.f32 %v6680_v58, %v6672_v50 }
0x1a97   : > { %5820 = vmatprep.mubr.msk.f32.mxu1 %vm1185_vm0, %v3705_v59 }
0x1a98   : > { %v3824_v1 = vpop.permute.xlu1 %3823 }
0x1a9b   : > { %v6682_v8 = vpop.eup %6681 }
0x1a9c   : > { %v3707_v62 = vmul.f32 %v6682_v8, %v6674_v14 }
0x1a9e   : > { %5821 = vmatmul.mubr.msk.f32.gmra.mrb[34].mxu1 %vm1185_vm0, %v3707_v62 }
0x1a9f   : > { %5831 = vmatprep.mubr.msk.f32.mxu1 %vm1497_vm1, %v3818_v61 }
0x1aa2   : > { %5832 = vmatmul.mubr.msk.f32.vlgmr.msra.gmra.mrb[36].mxu1 %vm1497_vm1, %v3820_v63 }
0x1aa3   : > { %5834 = vmatprep.mubr.msk.f32.mxu1 %vm1497_vm1, %v3822_v0 }
0x1aa6   : > { %5835 = vmatmul.mubr.msk.f32.gmra.mrb[38].mxu1 %vm1497_vm1, %v3824_v1 }
0x1b38   : > { %v8307_v2 = vpop.f32.mrb[32].mxu1 }
0x1b39   : > { %v8309_v10 = vpop.f32.mrb[33].mxu1 }
0x1b71   : > { %v8311_v38 = vpop.f32.mrb[34].mxu1 }
0x1b72   : > { %v8313_v3 = vpop.f32.mrb[35].mxu1 }
0x1b75   : > { %v5833_v46 = vpop.f32.mrb[36].mxu1 }
0x1b76   : > { %v3935_v4 = vmul.f32 0.35355338, %v5833_v46  ;;  %v3915_v6 = vpop.f32.mrb[37].mxu1 }
0x1b77   : > { %v3934_v11 = vmul.f32 0.35355338, %v3915_v6 }
0x1b78   : > { %v3939_v12 = vsel %vm3379_vm10, %v3935_v4, -1e+09 }
0x1b79   : > { %v3938_v50 = vsel %vm3378_vm11, %v3934_v11, -1e+09  ;;  %v5836_v13 = vpop.f32.mrb[38].mxu1  ;;  %v3945_v14 = vsel %vm1185_vm0, %v3939_v12, -inf }
0x1b7a   : > { %3946 = vmax.xlane.f32.xlu1 %v3945_v14  ;;  %v3925_v47 = vpop.f32.mrb[39].mxu1  ;;  %v3942_v15 = vsel %vm1185_vm0, %v3938_v50, -inf  ;;  %v3937_v16 = vmul.f32 0.35355338, %v5836_v13 }
0x1b7b   : > { %v3936_v17 = vmul.f32 0.35355338, %v3925_v47  ;;  %3943 = vmax.xlane.f32.xlu0 %v3942_v15 }
0x1b7c   : > { %v3941_v23 = vsel %vm3381_vm12, %v3937_v16, -1e+09 }
0x1b7d   : > { %v3940_v20 = vsel %vm3380_vm13, %v3936_v17, -1e+09  ;;  %v3951_v25 = vsel %vm1185_vm0, %v3941_v23, -inf }
0x1b7e   : > { %v3948_v22 = vsel %vm1185_vm0, %v3940_v20, -inf }
0x1b7f   : > { %3949 = vmax.xlane.f32.xlu0 %v3948_v22 }
0x1b83   : > { %3952 = vmax.xlane.f32.xlu0 %v3951_v25 }
0x1c07   : > { %v3947_v26 = vpop.xlane.xlu1 %3946 }
0x1c08   : > { %v3955_v29 = vsub.f32 %v3939_v12, %v3947_v26  ;;  %v3944_v36 = vpop.xlane.xlu0 %3943 }
0x1c09   : > { %v3954_v39 = vsub.f32 %v3938_v50, %v3944_v36 }
0x1c0a   : > { %v3960_v40 = vmul.f32 1.442695, %v3955_v29 }
0x1c0b   : > { %v3958_v41 = vmul.f32 1.442695, %v3954_v39 }
0x1c0c   : > { %6683 = vpow2.f32 %v3960_v40  ;;  %v3950_v49 = vpop.xlane.xlu0 %3949 }
0x1c0d   : > { %6685 = vpow2.f32 %v3958_v41  ;;  %v3956_v52 = vsub.f32 %v3940_v20, %v3950_v49 }
0x1c0f   : > { %v3962_v54 = vmul.f32 1.442695, %v3956_v52 }
0x1c10   : > { %v3953_v32 = vpop.xlane.xlu0 %3952 }
0x1c11   : > { %v3957_v57 = vsub.f32 %v3941_v23, %v3953_v32  ;;  %6687 = vpow2.f32 %v3962_v54 }
0x1c13   : > { %v3964_v30 = vmul.f32 1.442695, %v3957_v57 }
0x1c15   : > { %6689 = vpow2.f32 %v3964_v30 }
0x1c16   : > { %v6684_v43 = vpop.eup %6683 }
0x1c17   : > { %v6686_v44 = vpop.eup %6685  ;;  %v3969_v48 = vsel %vm1185_vm0, %v6684_v43, 0.0 }
0x1c18   : > { %3970 = vadd.xlane.f32.xlu1 %v3969_v48  ;;  %v3966_v51 = vsel %vm1185_vm0, %v6686_v44, 0.0 }
0x1c19   : > { %3967 = vadd.xlane.f32.xlu0 %v3966_v51 }
0x1c1b   : > { %v6688_v18 = vpop.eup %6687 }
0x1c1c   : > { %v3972_v58 = vsel %vm1185_vm0, %v6688_v18, 0.0 }
0x1c1f   : > { %v6690_v59 = vpop.eup %6689 }
0x1c20   : > { %v3975_v8 = vsel %vm1185_vm0, %v6690_v59, 0.0 }
0x1c29   : > { %6539 = vrot.lane.b32.xlu1 %v8169_v7, %s8639_s10 }
0x1c2d   : > { %6544 = vrot.lane.b32.xlu1 %v8159_v35, %s8640_s0 }
0x1c2f   : > { %6534 = vrot.lane.b32.xlu0 %v8159_v35, %s8639_s10  ;;  %s8643_s10 = smov 8  }
0x1c31   : > { %6549 = vrot.lane.b32.xlu1 %v8169_v7, %s8640_s0  ;;  %s8644_s0 = smov 16  }
0x1c4e   : > { %3973 = vadd.xlane.f32.xlu0 %v3972_v58 }
0x1c55   : > { %3976 = vadd.xlane.f32.xlu1 %v3975_v8 }
0x1c64   : > { %4095 = vrot.lane.b32.xlu0 %v8153_v37, %s8641_s14 }
0x1c66   : > { %4097 = vrot.lane.b32.xlu1 %v8151_v19, %s8641_s14 }
0x1c68   : > { %4099 = vrot.lane.b32.xlu0 %v8165_v60, %s8641_s14 }
0x1c6a   : > { %4101 = vrot.lane.b32.xlu1 %v8163_v53, %s8641_s14  ;;  %s8645_s14 = smov 24  }
0x1ca5   : > { %v3971_v61 = vpop.xlane.xlu1 %3970 }
0x1ca6   : > { %v3968_v62 = vpop.xlane.xlu0 %3967 }
0x1ca7   : > { %6691 = vrcp.f32 %v3968_v62 }
0x1ca8   : > { %6693 = vrcp.f32 %v3971_v61 }
0x1ca9   : > { %v6540_v63 = vpop.permute.xlu1 %6539 }
0x1caa   : > { %v6535_v0 = vpop.permute.xlu0 %6534  ;;  %v6542_v1 = vunpack.i.h.bf16 %v6540_v63  ;;  %v6541_v46 = vunpack.i.l.bf16 %v6540_v63 }
0x1cab   : > { %v6537_v4 = vunpack.i.h.bf16 %v6535_v0  ;;  %v6536_v6 = vunpack.i.l.bf16 %v6535_v0 }
0x1cac   : > { %v6121_v12 = vpack.c.bf16 %v6542_v1, %v6541_v46 }
0x1cad   : > { %v6117_v37 = vpack.c.bf16 %v6537_v4, %v6536_v6  ;;  %v6545_v11 = vpop.permute.xlu1 %6544 }
0x1cae   : > { %v6547_v19 = vunpack.i.h.bf16 %v6545_v11  ;;  %v6546_v50 = vunpack.i.l.bf16 %v6545_v11 }
0x1caf   : > { %6118 = vmatprep.subr.bf16.mxu0 %v6117_v37 }
0x1cb0   : > { %6120 = vmatpush3.bf16.msra.mxu0 %v6117_v37  ;;  %v6125_v14 = vpack.c.bf16 %v6547_v19, %v6546_v50 }
0x1cb1   : > { %v6692_v60 = vpop.eup %6691  ;;  %6122 = vmatprep.subr.bf16.mxu0 %v6121_v12  ;;  %v6550_v15 = vpop.permute.xlu1 %6549 }
0x1cb2   : > { %v6694_v53 = vpop.eup %6693  ;;  %v3979_v13 = vmul.f32 %v6692_v60, %v6686_v44  ;;  %v6552_v16 = vunpack.i.h.bf16 %v6550_v15  ;;  %v6551_v17 = vunpack.i.l.bf16 %v6550_v15 }
0x1cb3   : > { %v3981_v47 = vmul.f32 %v6694_v53, %v6684_v43 }
0x1cb4   : > { %6124 = vmatpush3.bf16.msra.mxu0 %v6121_v12  ;;  %5845 = vmatprep.mubr.msk.f32.mxu0 %vm1185_vm0, %v3979_v13  ;;  %v6131_v20 = vpack.c.bf16 %v6552_v16, %v6551_v17 }
0x1cb5   : > { %6127 = vmatprep.subr.msk.bf16.mxu0 %vm7828_vm2, %v6125_v14 }
0x1cb7   : > { %5846 = vmatmul.mubr.msk.f32.vlgmr.msra.gmra.mrb[36].mxu0 %vm1185_vm0, %v3981_v47 }
0x1cbd   : > { %6130 = vmatpush3.bf16.xpose.msk.msra.mxu0 %vm7828_vm2, %v6125_v14 }
0x1cbe   : > { %6133 = vmatprep.subr.msk.bf16.mxu0 %vm7828_vm2, %v6131_v20 }
0x1cc5   : > { %6136 = vmatpush3.bf16.xpose.msk.msra.mxu0 %vm7828_vm2, %v6131_v20 }
0x1cdb   : > { %v3974_v22 = vpop.xlane.xlu0 %3973 }
0x1cdc   : > { %6695 = vrcp.f32 %v3974_v22 }
0x1cdf   : > { %v4096_v36 = vpop.permute.xlu0 %4095 }
0x1ce2   : > { %v3977_v23 = vpop.xlane.xlu1 %3976 }
0x1ce3   : > { %6697 = vrcp.f32 %v3977_v23  ;;  %v4100_v41 = vpop.permute.xlu0 %4099 }
0x1ce6   : > { %v6696_v25 = vpop.eup %6695  ;;  %v4098_v40 = vpop.permute.xlu1 %4097 }
0x1ce7   : > { %v3983_v26 = vmul.f32 %v6696_v25, %v6688_v18 }
0x1ce9   : > { %5848 = vmatprep.mubr.msk.f32.mxu0 %vm1185_vm0, %v3983_v26 }
0x1cea   : > { %v4102_v42 = vpop.permute.xlu1 %4101 }
0x1ced   : > { %v6698_v29 = vpop.eup %6697 }
0x1cee   : > { %v3985_v39 = vmul.f32 %v6698_v29, %v6690_v59 }
0x1cf0   : > { %5849 = vmatmul.mubr.msk.f32.gmra.mrb[38].mxu0 %vm1185_vm0, %v3985_v39 }
0x1cf1   : > { %5859 = vmatprep.mubr.msk.f32.mxu0 %vm1497_vm1, %v4096_v36 }
0x1cf4   : > { %5860 = vmatmul.mubr.msk.f32.vlgmr.msra.gmra.mrb[40].mxu0 %vm1497_vm1, %v4098_v40 }
0x1cf5   : > { %5862 = vmatprep.mubr.msk.f32.mxu0 %vm1497_vm1, %v4100_v41 }
0x1cf8   : > { %5863 = vmatmul.mubr.msk.f32.gmra.mrb[42].mxu0 %vm1497_vm1, %v4102_v42 }
0x1d8a   : > { %v5847_v43 = vpop.f32.mrb[36].mxu0 }
0x1d8b   : > { %v4076_v44 = vpop.f32.mrb[37].mxu0 }
0x1dc3   : > { %v5850_v48 = vpop.f32.mrb[38].mxu0 }
0x1dc4   : > { %v4086_v51 = vpop.f32.mrb[39].mxu0 }
0x1dc7   : > { %v5861_v49 = vpop.f32.mrb[40].mxu0 }
0x1dc8   : > { %v4213_v52 = vmul.f32 0.35355338, %v5861_v49  ;;  %v4193_v54 = vpop.f32.mrb[41].mxu0  ;;  %v4433_v49 = vld [vmem:[#allocation22] sm:$0xff] }
0x1dc9   : > { %v4212_v32 = vmul.f32 0.35355338, %v4193_v54  ;;  %v4435_v54 = vld [vmem:[#allocation22 + $0x10] sm:$0xff] }
0x1dca   : > { %v4217_v57 = vsel %vm3379_vm10, %v4213_v52, -1e+09  ;;  %v4434_v52 = vld [vmem:[#allocation22 + $0x8] sm:$0xff] }
0x1dcb   : > { %v4216_v30 = vsel %vm3378_vm11, %v4212_v32, -1e+09  ;;  %v5864_v18 = vpop.f32.mrb[42].mxu0  ;;  %v4223_v58 = vsel %vm1185_vm0, %v4217_v57, -inf  ;;  %v6145_v32 = vpack.c.bf16 %v4434_v52, %v4433_v49 }
0x1dcc   : > { %4224 = vmax.xlane.f32.xlu1 %v4223_v58  ;;  %v4203_v59 = vpop.f32.mrb[43].mxu0  ;;  %v4220_v8 = vsel %vm1185_vm0, %v4216_v30, -inf  ;;  %v4215_v61 = vmul.f32 0.35355338, %v5864_v18  ;;  %v4545_v18 = vld [vmem:[#allocation23] sm:$0xff]  ;;  %v4546_v58 = vld [vmem:[#allocation23 + $0x8] sm:$0xff] }
0x1dcd   : > { %v4214_v62 = vmul.f32 0.35355338, %v4203_v59  ;;  %4221 = vmax.xlane.f32.xlu0 %v4220_v8  ;;  %v6153_v59 = vpack.c.bf16 %v4546_v58, %v4545_v18 }
0x1dce   : > { %v4219_v34 = vsel %vm3381_vm12, %v4215_v61, -1e+09 }
0x1dcf   : > { %v4218_v63 = vsel %vm3380_vm13, %v4214_v62, -1e+09  ;;  %v4229_v9 = vsel %vm1185_vm0, %v4219_v34, -inf  ;;  %6154 = vmatprep.subr.bf16.mxu0 %v6153_v59 }
0x1dd0   : > { %v4226_v0 = vsel %vm1185_vm0, %v4218_v63, -inf  ;;  %6156 = vmatpush3.bf16.msra.mxu0 %v6153_v59 }
0x1dd1   : > { %4227 = vmax.xlane.f32.xlu0 %v4226_v0 }
0x1dd5   : > { %4230 = vmax.xlane.f32.xlu0 %v4229_v9 }
0x1e59   : > { %v4225_v1 = vpop.xlane.xlu1 %4224 }
0x1e5a   : > { %v4233_v46 = vsub.f32 %v4217_v57, %v4225_v1  ;;  %v4222_v4 = vpop.xlane.xlu0 %4221  ;;  %v4436_v57 = vld [vmem:[#allocation22 + $0x18] sm:$0xff] }
0x1e5b   : > { %v4232_v6 = vsub.f32 %v4216_v30, %v4222_v4  ;;  %v6149_v30 = vpack.c.bf16 %v4436_v57, %v4435_v54 }
0x1e5c   : > { %v4238_v37 = vmul.f32 1.442695, %v4233_v46 }
0x1e5d   : > { %v4236_v11 = vmul.f32 1.442695, %v4232_v6 }
0x1e5e   : > { %6699 = vpow2.f32 %v4238_v37  ;;  %v4228_v12 = vpop.xlane.xlu0 %4227 }
0x1e5f   : > { %6701 = vpow2.f32 %v4236_v11  ;;  %v4234_v45 = vsub.f32 %v4218_v63, %v4228_v12 }
0x1e61   : > { %v4240_v19 = vmul.f32 1.442695, %v4234_v45 }
0x1e62   : > { %v4231_v50 = vpop.xlane.xlu0 %4230 }
0x1e63   : > { %6703 = vpow2.f32 %v4240_v19  ;;  %v4235_v60 = vsub.f32 %v4219_v34, %v4231_v50 }
0x1e65   : > { %v4242_v5 = vmul.f32 1.442695, %v4235_v60 }
0x1e67   : > { %6705 = vpow2.f32 %v4242_v5 }
0x1e68   : > { %v6700_v53 = vpop.eup %6699 }
0x1e69   : > { %v6702_v13 = vpop.eup %6701  ;;  %v4247_v14 = vsel %vm1185_vm0, %v6700_v53, 0.0 }
0x1e6a   : > { %4248 = vadd.xlane.f32.xlu1 %v4247_v14  ;;  %v4244_v47 = vsel %vm1185_vm0, %v6702_v13, 0.0 }
0x1e6b   : > { %4245 = vadd.xlane.f32.xlu0 %v4244_v47 }
0x1e6d   : > { %v6704_v15 = vpop.eup %6703 }
0x1e6e   : > { %v4250_v16 = vsel %vm1185_vm0, %v6704_v15, 0.0 }
0x1e6f   : > { %4251 = vadd.xlane.f32.xlu0 %v4250_v16 }
0x1e71   : > { %v6706_v17 = vpop.eup %6705 }
0x1e72   : > { %v4253_v20 = vsel %vm1185_vm0, %v6706_v17, 0.0 }
0x1e73   : > { %4254 = vadd.xlane.f32.xlu1 %v4253_v20  ;;  %v4548_v20 = vld [vmem:[#allocation23 + $0x18] sm:$0xff] }
0x1e84   : > { %6559 = vrot.lane.b32.xlu1 %v8169_v7, %s8642_s16 }
0x1e85   : > { %6554 = vrot.lane.b32.xlu0 %v8159_v35, %s8642_s16  ;;  %s8646_s16 = sld [smem:[#allocation53_spill]] }
0x1e88   : > { %4377 = vrot.lane.b32.xlu1 %v8309_v10, %s8643_s10 }
0x1e89   : > { %4393 = vrot.lane.b32.xlu0 %v4076_v44, %s8644_s0 }
0x1e8b   : > { %v4664_v54 = vld [vmem:[%s8646_s16 + $0x38] sm:$0xff] }
0x1e8c   : > { %4379 = vrot.lane.b32.xlu1 %v8307_v2, %s8643_s10 }
0x1e8d   : > { %4381 = vrot.lane.b32.xlu0 %v8313_v3, %s8643_s10 }
0x1e90   : > { %4395 = vrot.lane.b32.xlu1 %v5847_v43, %s8644_s0 }
0x1e91   : > { %4397 = vrot.lane.b32.xlu0 %v4086_v51, %s8644_s0 }
0x1e94   : > { %4383 = vrot.lane.b32.xlu1 %v8311_v38, %s8643_s10 }
0x1e98   : > { %4399 = vrot.lane.b32.xlu1 %v5850_v48, %s8644_s0  ;;  %s8647_s0 = sld [smem:[#allocation51_spill]] }
0x1ef7   : > { %v4249_v7 = vpop.xlane.xlu1 %4248 }
0x1ef8   : > { %v4246_v35 = vpop.xlane.xlu0 %4245 }
0x1ef9   : > { %6707 = vrcp.f32 %v4246_v35 }
0x1efa   : > { %6709 = vrcp.f32 %v4249_v7  ;;  %v4658_v7 = vld [vmem:[%s8646_s16 + $0x8] sm:$0xff] }
0x1efc   : > { %v4252_v10 = vpop.xlane.xlu0 %4251 }
0x1efd   : > { %6711 = vrcp.f32 %v4252_v10  ;;  %v4659_v10 = vld [vmem:[%s8646_s16 + $0x10] sm:$0xff] }
0x1f00   : > { %v4255_v22 = vpop.xlane.xlu1 %4254  ;;  %v6555_v2 = vpop.permute.xlu0 %6554 }
0x1f01   : > { %v6557_v23 = vunpack.i.h.bf16 %v6555_v2  ;;  %v6556_v25 = vunpack.i.l.bf16 %v6555_v2  ;;  %6713 = vrcp.f32 %v4255_v22  ;;  %v4660_v2 = vld [vmem:[%s8646_s16 + $0x18] sm:$0xff] }
0x1f03   : > { %v6708_v3 = vpop.eup %6707  ;;  %v6137_v26 = vpack.c.bf16 %v6557_v23, %v6556_v25  ;;  %v6165_v23 = vpack.c.bf16 %v4660_v2, %v4659_v10  ;;  %v4661_v25 = vld [vmem:[%s8646_s16 + $0x20] sm:$0xff] }
0x1f04   : > { %v6560_v29 = vpop.permute.xlu1 %6559  ;;  %v4257_v36 = vmul.f32 %v6708_v3, %v6702_v13  ;;  %v6710_v41 = vpop.eup %6709  ;;  %v4662_v3 = vld [vmem:[%s8646_s16 + $0x28] sm:$0xff] }
0x1f05   : > { %v6562_v39 = vunpack.i.h.bf16 %v6560_v29  ;;  %v6561_v40 = vunpack.i.l.bf16 %v6560_v29  ;;  %6138 = vmatprep.subr.bf16.mxu1 %v6137_v26  ;;  %v4259_v43 = vmul.f32 %v6710_v41, %v6700_v53  ;;  %v4394_v1 = vpop.permute.xlu0 %4393  ;;  %v5330_v29 = vld [vmem:[%s8647_s0] ss:$0 sm:$0xff]  ;;  %s8649_s0 = sld [smem:[#allocation54_spill]] }
0x1f06   : > { %6140 = vmatpush3.bf16.msra.mxu1 %v6137_v26  ;;  %5873 = vmatprep.mubr.msk.f32.mxu1 %vm1185_vm0, %v4257_v36  ;;  %v6169_v26 = vpack.c.bf16 %v4662_v3, %v4661_v25 }
0x1f07   : > { %v6141_v38 = vpack.c.bf16 %v6562_v39, %v6561_v40  ;;  %v6712_v42 = vpop.eup %6711 }
0x1f08   : > { %v4261_v48 = vmul.f32 %v6712_v42, %v6704_v15  ;;  %v4378_v0 = vpop.permute.xlu1 %4377 }
0x1f09   : > { %6142 = vmatprep.subr.bf16.mxu1 %v6141_v38  ;;  %v4382_v4 = vpop.permute.xlu0 %4381  ;;  %v4421_v11 = vsel %vm1497_vm1, %v8253_v21, %v4378_v0 }
0x1f0a   : > { %6144 = vmatpush3.bf16.msra.mxu1 %v6141_v38  ;;  %v4425_v19 = vsel %vm2650_vm7, %v4421_v11, %v4394_v1  ;;  %v4423_v13 = vsel %vm1497_vm1, %v8257_v24, %v4382_v4 }
0x1f0b   : > { %v6714_v44 = vpop.eup %6713  ;;  %6146 = vmatprep.subr.bf16.mxu1 %v6145_v32 }
0x1f0c   : > { %v4263_v51 = vmul.f32 %v6714_v44, %v6706_v17  ;;  %v4380_v34 = vpop.permute.xlu1 %4379  ;;  %v4547_v17 = vld [vmem:[#allocation23 + $0x10] sm:$0xff] }
0x1f0d   : > { %5874 = vmatmul.mubr.msk.f32.vlgmr.msra.gmra.mrb[40].mxu1 %vm1185_vm0, %v4259_v43  ;;  %v4398_v37 = vpop.permute.xlu0 %4397  ;;  %v4422_v45 = vsel %vm1497_vm1, %v8251_v31, %v4380_v34  ;;  %v6157_v35 = vpack.c.bf16 %v4548_v20, %v4547_v17  ;;  %v5340_v34 = vld [vmem:[%s8649_s0] ss:$0 sm:$0xff]  ;;  %s8653_s0 = sld [smem:[#allocation58_spill]] }
0x1f0e   : > { %5876 = vmatprep.mubr.msk.f32.mxu1 %vm1185_vm0, %v4261_v48  ;;  %6148 = vmatpush3.bf16.msra.mxu1 %v6145_v32  ;;  %v4427_v31 = vsel %vm2650_vm7, %v4423_v13, %v4398_v37 }
0x1f0f   : > { %6150 = vmatprep.subr.bf16.mxu1 %v6149_v30  ;;  %6158 = vmatprep.subr.bf16.mxu0 %v6157_v35 }
0x1f10   : > { %v4396_v9 = vpop.permute.xlu1 %4395  ;;  %6160 = vmatpush3.bf16.msra.mxu0 %v6157_v35 }
0x1f11   : > { %5877 = vmatmul.mubr.msk.f32.gmra.mrb[42].mxu1 %vm1185_vm0, %v4263_v51  ;;  %v4426_v60 = vsel %vm2650_vm7, %v4422_v45, %v4396_v9 }
0x1f12   : > { %6152 = vmatpush3.bf16.msra.mxu1 %v6149_v30 }
0x1f14   : > { %v4384_v46 = vpop.permute.xlu1 %4383 }
0x1f15   : > { %v4424_v14 = vsel %vm1497_vm1, %v8255_v33, %v4384_v46  ;;  %v4657_v33 = vld [vmem:[%s8646_s16] sm:$0xff] }
0x1f16   : > { %v6161_v22 = vpack.c.bf16 %v4658_v7, %v4657_v33 }
0x1f18   : > { %v4400_v6 = vpop.permute.xlu1 %4399  ;;  %6162 = vmatprep.subr.bf16.mxu1 %v6161_v22 }
0x1f19   : > { %v4428_v15 = vsel %vm2650_vm7, %v4424_v14, %v4400_v6 }
0x1fe0   : > { %v5875_v8 = vpop.f32.mrb[40].mxu1 }
0x1fe1   : > { %4411 = vrot.lane.b32.xlu1 %v5875_v8, %s8645_s14  ;;  %v4354_v61 = vpop.f32.mrb[41].mxu1 }
0x1fe2   : > { %4409 = vrot.lane.b32.xlu0 %v4354_v61, %s8645_s14 }
0x1fe4   : > { %v5878_v62 = vpop.f32.mrb[42].mxu1 }
0x1fe5   : > { %4415 = vrot.lane.b32.xlu1 %v5878_v62, %s8645_s14  ;;  %v4364_v63 = vpop.f32.mrb[43].mxu1 }
0x1fe6   : > { %4413 = vrot.lane.b32.xlu0 %v4364_v63, %s8645_s14  ;;  %s8648_s14 = sld [smem:[#allocation52_spill]] }
0x2053   : > { %v4412_v12 = vpop.permute.xlu1 %4411 }
0x2054   : > { %v4410_v50 = vpop.permute.xlu0 %4409  ;;  %v4430_v53 = vsel %vm2655_vm8, %v4426_v60, %v4412_v12 }
0x2055   : > { %v4429_v5 = vsel %vm2655_vm8, %v4425_v19, %v4410_v50 }
0x2056   : > { %5887 = vmatprep.mubr.msk.f32.mxu1 %vm1185_vm0, %v4429_v5 }
0x2057   : > { %5888 = vmatmul.mubr.msk.f32.vlgmr.msra.gmra.mrb[44].mxu1 %vm1185_vm0, %v4430_v53  ;;  %v4416_v21 = vpop.permute.xlu1 %4415 }
0x2058   : > { %v4414_v47 = vpop.permute.xlu0 %4413  ;;  %v4432_v24 = vsel %vm2655_vm8, %v4428_v15, %v4416_v21  ;;  %6164 = vmatpush3.bf16.msra.mxu1 %v6161_v22 }
0x2059   : > { %v4431_v16 = vsel %vm2655_vm8, %v4427_v31, %v4414_v47  ;;  %6166 = vmatprep.subr.bf16.mxu1 %v6165_v23 }
0x205a   : > { %5890 = vmatprep.mubr.msk.f32.mxu1 %vm1185_vm0, %v4431_v16 }
0x205b   : > { %5891 = vmatmul.mubr.msk.f32.gmra.mrb[46].mxu1 %vm1185_vm0, %v4432_v24 }
0x205c   : > { %6168 = vmatpush3.bf16.msra.mxu1 %v6165_v23 }
0x205d   : > { %6170 = vmatprep.subr.bf16.mxu1 %v6169_v26 }
0x2060   : > { %6172 = vmatpush3.bf16.msra.mxu1 %v6169_v26 }
0x212a   : > { %v5889_v36 = vpop.f32.mrb[44].mxu1 }
0x212b   : > { %v4528_v39 = vadd.f32 %v5889_v36, %v5330_v29  ;;  %v4522_v40 = vpop.f32.mrb[45].mxu1 }
0x212c   : > { %v4523_v38 = vadd.f32 %v5330_v29, %v4522_v40 }
0x212d   : > { %v4542_v43 = vadd.f32 %v4528_v39, %v8116_v27  ;;  %v5335_v27 = vld [vmem:[%s8648_s14] ss:$0 sm:$0xff]  ;;  %s8650_s14 = sld [smem:[#allocation55_spill]] }
0x212e   : > { %v4541_v41 = vadd.f32 %v4523_v38, %v8118_v28  ;;  %v5892_v42 = vpop.f32.mrb[46].mxu1  ;;  %v4663_v28 = vld [vmem:[%s8646_s16 + $0x30] sm:$0xff] }
0x212f   : > { %v4538_v44 = vadd.f32 %v5892_v42, %v5330_v29  ;;  %v4532_v48 = vpop.f32.mrb[47].mxu1  ;;  %v6173_v32 = vpack.c.bf16 %v4664_v54, %v4663_v28 }
0x2130   : > { %v4533_v51 = vadd.f32 %v5330_v29, %v4532_v48  ;;  %5901 = vmatprep.mubr.msk.f32.mxu0 %vm1185_vm0, %v4541_v41 }
0x2131   : > { %5902 = vmatmul.mubr.msk.f32.vlgmr.msra.gmra.mrb[44].mxu0 %vm1185_vm0, %v4542_v43  ;;  %v4544_v52 = vadd.f32 %v4538_v44, %v8128_v55  ;;  %6174 = vmatprep.subr.bf16.mxu1 %v6173_v32 }
0x2132   : > { %v4543_v49 = vadd.f32 %v4533_v51, %v8124_v56  ;;  %6176 = vmatpush3.bf16.msra.mxu1 %v6173_v32 }
0x2133   : > { %v5345_v32 = vld [vmem:[%s8650_s14] ss:$0 sm:$0xff]  ;;  %s5196_s14 = sshll.u32 %s7722_s6, 5 }
0x2134   : > { %5904 = vmatprep.mubr.msk.f32.mxu0 %vm1185_vm0, %v4543_v49 }
0x2135   : > { %5905 = vmatmul.mubr.msk.f32.gmra.mrb[46].mxu0 %vm1185_vm0, %v4544_v52 }
0x2204   : > { %v5903_v57 = vpop.f32.mrb[44].mxu0 }
0x2205   : > { %v4640_v30 = vadd.f32 %v5903_v57, %v5335_v27  ;;  %v4634_v18 = vpop.f32.mrb[45].mxu0 }
0x2206   : > { %v4635_v58 = vadd.f32 %v5335_v27, %v4634_v18 }
0x2207   : > { %v4654_v56 = vmax.f32 %v4640_v30, 0.0  ;;  %v5346_v30 = vld [vmem:[%s8651_s8] ss:$0 sm:$0xff]  ;;  %s1169_s8 = scalar_lea.vmem [#allocation25], %s5196_s14  ;;  %s4926_s14 = scalar_lea.sflag [#allocation4], %s7722_s6 }
0x2208   : > { %v4653_v59 = vmax.f32 %v4635_v58, 0.0  ;;  %v5906_v8 = vpop.f32.mrb[46].mxu0 }
0x2209   : > { %v4650_v61 = vadd.f32 %v5906_v8, %v5335_v27  ;;  %v4644_v55 = vpop.f32.mrb[47].mxu0 }
0x220a   : > { %v4645_v62 = vadd.f32 %v5335_v27, %v4644_v55  ;;  %5923 = vmatprep.mubr.msk.f32.mxu1 %vm2899_vm9, %v4653_v59 }
0x220b   : > { %5924 = vmatmul.mubr.msk.f32.vlgmr.msra.gmra.mrb[48].mxu1 %vm2899_vm9, %v4654_v56  ;;  %v4656_v0 = vmax.f32 %v4650_v61, 0.0 }
0x220c   : > { %v4655_v63 = vmax.f32 %v4645_v62, 0.0 }
0x220e   : > { %5926 = vmatprep.mubr.msk.f32.mxu1 %vm2899_vm9, %v4655_v63 }
0x220f   : > { %5927 = vmatmul.mubr.msk.f32.gmra.mrb[50].mxu1 %vm2899_vm9, %v4656_v0 }
0x22de   : > { %v5925_v9 = vpop.f32.mrb[48].mxu1 }
0x22df   : > { %v4756_v1 = vadd.f32 %v5925_v9, %v5340_v34  ;;  %v4750_v46 = vpop.f32.mrb[49].mxu1 }
0x22e0   : > { %v4751_v4 = vadd.f32 %v5340_v34, %v4750_v46 }
0x22e1   : > { %v4770_v6 = vadd.f32 %v4756_v1, %v4542_v43 }
0x22e2   : > { %v4769_v37 = vadd.f32 %v4751_v4, %v4541_v41  ;;  %v5928_v11 = vpop.f32.mrb[50].mxu1 }
0x22e3   : > { %v4760_v12 = vpop.f32.mrb[51].mxu1  ;;  %v4776_v45 = vsel %vm1185_vm0, %v4770_v6, 0.0  ;;  %v4766_v19 = vadd.f32 %v5928_v11, %v5340_v34 }
0x22e4   : > { %v4761_v50 = vadd.f32 %v5340_v34, %v4760_v12  ;;  %4777 = vadd.xlane.f32.xlu1 %v4776_v45  ;;  %v4773_v60 = vsel %vm1185_vm0, %v4769_v37, 0.0 }
0x22e5   : > { %4774 = vadd.xlane.f32.xlu0 %v4773_v60  ;;  %v4772_v53 = vadd.f32 %v4766_v19, %v4544_v52 }
0x22e6   : > { %v4771_v5 = vadd.f32 %v4761_v50, %v4543_v49 }
0x22e7   : > { %v4782_v21 = vsel %vm1185_vm0, %v4772_v53, 0.0 }
0x22e8   : > { %v4779_v13 = vsel %vm1185_vm0, %v4771_v5, 0.0 }
0x22e9   : > { %4780 = vadd.xlane.f32.xlu0 %v4779_v13 }
0x22ed   : > { %4783 = vadd.xlane.f32.xlu0 %v4782_v21 }
0x2371   : > { %v4778_v31 = vpop.xlane.xlu1 %4777 }
0x2372   : > { %v4786_v14 = vmul.f32 0.03125, %v4778_v31  ;;  %v4775_v47 = vpop.xlane.xlu0 %4774 }
0x2373   : > { %v4785_v15 = vmul.f32 0.03125, %v4775_v47 }
0x2374   : > { %v4790_v16 = vsub.f32 %v4770_v6, %v4786_v14 }
0x2375   : > { %v4789_v24 = vsub.f32 %v4769_v37, %v4785_v15 }
0x2376   : > { %v4781_v17 = vpop.xlane.xlu0 %4780  ;;  %v4794_v20 = vmul.f32 %v4790_v16, %v4790_v16 }
0x2377   : > { %v4787_v35 = vmul.f32 0.03125, %v4781_v17  ;;  %v4793_v33 = vmul.f32 %v4789_v24, %v4789_v24 }
0x2378   : > { %v4800_v7 = vsel %vm1185_vm0, %v4794_v20, 0.0 }
0x2379   : > { %v4791_v10 = vsub.f32 %v4771_v5, %v4787_v35  ;;  %4801 = vadd.xlane.f32.xlu1 %v4800_v7  ;;  %v4797_v22 = vsel %vm1185_vm0, %v4793_v33, 0.0 }
0x237a   : > { %4798 = vadd.xlane.f32.xlu0 %v4797_v22  ;;  %v4784_v2 = vpop.xlane.xlu0 %4783 }
0x237b   : > { %v4788_v23 = vmul.f32 0.03125, %v4784_v2  ;;  %v4795_v25 = vmul.f32 %v4791_v10, %v4791_v10 }
0x237d   : > { %v4792_v3 = vsub.f32 %v4772_v53, %v4788_v23  ;;  %v4803_v26 = vsel %vm1185_vm0, %v4795_v25, 0.0 }
0x237e   : > { %4804 = vadd.xlane.f32.xlu0 %v4803_v26 }
0x237f   : > { %v4796_v29 = vmul.f32 %v4792_v3, %v4792_v3 }
0x2381   : > { %v4806_v36 = vsel %vm1185_vm0, %v4796_v29, 0.0 }
0x2382   : > { %4807 = vadd.xlane.f32.xlu1 %v4806_v36 }
0x2406   : > { %v4802_v39 = vpop.xlane.xlu1 %4801 }
0x2407   : > { %v4810_v40 = vmul.f32 0.03125, %v4802_v39  ;;  %v4799_v38 = vpop.xlane.xlu0 %4798 }
0x2408   : > { %v4809_v41 = vmul.f32 0.03125, %v4799_v38 }
0x2409   : > { %v4814_v42 = vadd.f32 1e-05, %v4810_v40 }
0x240a   : > { %v4813_v43 = vadd.f32 1e-05, %v4809_v41  ;;  %v5347_v41 = vld [vmem:[%s8652_s5] ss:$0 sm:$0xff]  ;;  %s4939_s5 = sshll.u32 %s1169_s8, 4  ;;  %s8474_s5 = int_to_ptr.vmem [resolvable:$true] %s4939_s5 }
0x240b   : > { %6715 = vrsqrt.f32 %v4814_v42  ;;  %v4805_v44 = vpop.xlane.xlu0 %4804  ;;  %s7125_s13 = scalar_lea.vmem %s8474_s5, 512 }
0x240c   : > { %6717 = vrsqrt.f32 %v4813_v43  ;;  %v4811_v48 = vmul.f32 0.03125, %v4805_v44  ;;  %v5348_v44 = vld [vmem:[%s8653_s0] ss:$0 sm:$0xff]  ;;  %s5354_s0 = sshll.u32 %s7476_s11, 9  ;;  %p7126_p3 = scmp.ne.s32.totalorder %s8474_s5, %s7125_s13 }
0x240d   : > { %s8472_s9 = scalar_lea.hbm %s8654_s4, %s5354_s0  ;;  %s7283_s11 = smov [#allocation25]  }
0x240e   : > { %v4815_v51 = vadd.f32 1e-05, %v4811_v48  ;;  %p7127_p2 = pnand %p7126_p3, %p8655_p0  ;;  %s7129_s15 = sshll.u32 %s7283_s11, 4  ;;  %s7130_s15 = int_to_ptr.vmem [resolvable:$false] %s7129_s15 }
0x240f   : > { %v4808_v49 = vpop.xlane.xlu1 %4807  ;;  %s7131_s16 = scalar_lea.vmem %s7130_s15, 1024  ;;  %p7132_p1 = scmp.lt.s32.totalorder %s8474_s5, %s7130_s15 }
0x2410   : > { %6719 = vrsqrt.f32 %v4815_v51  ;;  %v4812_v52 = vmul.f32 0.03125, %v4808_v49  ;;  %p7128_p7 = pneg %p7127_p2  ;;  %p7133_p12 = scmp.lt.s32.totalorder %s7131_s16, %s7125_s13 }
0x2412   : > { %v4816_v28 = vadd.f32 1e-05, %v4812_v52  ;;  %p7134_p11 = por %p7133_p12, %p7132_p1 }
0x2414   : > { %6721 = vrsqrt.f32 %v4816_v28  ;;  %p7135_p13 = pnand %p7134_p11, %p7128_p7 }
0x2415   : > { %v6716_v54 = vpop.eup %6715 }
0x2416   : > { %v6718_v27 = vpop.eup %6717  ;;  %v4822_v57 = vmul.f32 %v6716_v54, %v4790_v16 }
0x2417   : > { %v4821_v18 = vmul.f32 %v6718_v27, %v4789_v24 }
0x2418   : > { %v4833_v58 = vmul.f32 %v5345_v32, %v4822_v57 }
0x2419   : > { %v4832_v59 = vmul.f32 %v5345_v32, %v4821_v18 }
0x241a   : > { %v6720_v8 = vpop.eup %6719  ;;  %v4844_v56 = vadd.f32 %v5346_v30, %v4833_v58 }
0x241b   : > { %v4843_v61 = vadd.f32 %v5346_v30, %v4832_v59  ;;  %v4823_v55 = vmul.f32 %v6720_v8, %v4791_v10 }
0x241c   : > { %v4850_v62 = vsel %vm1185_vm0, %v4844_v56, 0.0 }
0x241d   : > { %4851 = vadd.xlane.f32.xlu1 %v4850_v62  ;;  %v4847_v63 = vsel %vm1185_vm0, %v4843_v61, 0.0  ;;  %v4834_v0 = vmul.f32 %v5345_v32, %v4823_v55 }
0x241e   : > { %v6722_v34 = vpop.eup %6721  ;;  %4848 = vadd.xlane.f32.xlu0 %v4847_v63 }
0x241f   : > { %v4845_v9 = vadd.f32 %v5346_v30, %v4834_v0  ;;  %v4824_v1 = vmul.f32 %v6722_v34, %v4792_v3 }
0x2421   : > { %v4853_v46 = vsel %vm1185_vm0, %v4845_v9, 0.0  ;;  %v4835_v4 = vmul.f32 %v5345_v32, %v4824_v1 }
0x2422   : > { %4854 = vadd.xlane.f32.xlu0 %v4853_v46 }
0x2423   : > { %v4846_v6 = vadd.f32 %v5346_v30, %v4835_v4 }
0x2425   : > { %v4856_v37 = vsel %vm1185_vm0, %v4846_v6, 0.0 }
0x2426   : > { %4857 = vadd.xlane.f32.xlu1 %v4856_v37 }
0x24aa   : > { %v4852_v11 = vpop.xlane.xlu1 %4851 }
0x24ab   : > { %v4860_v12 = vmul.f32 0.03125, %v4852_v11  ;;  %v4849_v45 = vpop.xlane.xlu0 %4848 }
0x24ac   : > { %v4859_v19 = vmul.f32 0.03125, %v4849_v45 }
0x24ad   : > { %v4864_v50 = vsub.f32 %v4844_v56, %v4860_v12 }
0x24ae   : > { %v4863_v60 = vsub.f32 %v4843_v61, %v4859_v19 }
0x24af   : > { %v4855_v5 = vpop.xlane.xlu0 %4854  ;;  %v4868_v53 = vmul.f32 %v4864_v50, %v4864_v50 }
0x24b0   : > { %v4861_v13 = vmul.f32 0.03125, %v4855_v5  ;;  %v4867_v21 = vmul.f32 %v4863_v60, %v4863_v60 }
0x24b1   : > { %v4874_v31 = vsel %vm1185_vm0, %v4868_v53, 0.0 }
0x24b2   : > { %v4865_v14 = vsub.f32 %v4845_v9, %v4861_v13  ;;  %4875 = vadd.xlane.f32.xlu1 %v4874_v31  ;;  %v4871_v47 = vsel %vm1185_vm0, %v4867_v21, 0.0 }
0x24b3   : > { %v4858_v15 = vpop.xlane.xlu1 %4857  ;;  %4872 = vadd.xlane.f32.xlu0 %v4871_v47 }
0x24b4   : > { %v4862_v16 = vmul.f32 0.03125, %v4858_v15  ;;  %v4869_v24 = vmul.f32 %v4865_v14, %v4865_v14 }
0x24b6   : > { %v4866_v17 = vsub.f32 %v4846_v6, %v4862_v16  ;;  %v4877_v20 = vsel %vm1185_vm0, %v4869_v24, 0.0 }
0x24b7   : > { %4878 = vadd.xlane.f32.xlu0 %v4877_v20 }
0x24b8   : > { %v4870_v35 = vmul.f32 %v4866_v17, %v4866_v17 }
0x24ba   : > { %v4880_v33 = vsel %vm1185_vm0, %v4870_v35, 0.0 }
0x24bb   : > { %4881 = vadd.xlane.f32.xlu1 %v4880_v33 }
0x253f   : > { %v4876_v7 = vpop.xlane.xlu1 %4875 }
0x2540   : > { %v4884_v10 = vmul.f32 0.03125, %v4876_v7  ;;  %v4873_v22 = vpop.xlane.xlu0 %4872 }
0x2541   : > { %v4883_v2 = vmul.f32 0.03125, %v4873_v22 }
0x2542   : > { %v4888_v23 = vadd.f32 1e-05, %v4884_v10 }
0x2543   : > { %v4887_v25 = vadd.f32 1e-05, %v4883_v2 }
0x2544   : > { %6723 = vrsqrt.f32 %v4888_v23  ;;  %v4879_v3 = vpop.xlane.xlu0 %4878 }
0x2545   : > { %6725 = vrsqrt.f32 %v4887_v25  ;;  %v4885_v26 = vmul.f32 0.03125, %v4879_v3 }
0x2547   : > { %v4889_v29 = vadd.f32 1e-05, %v4885_v26 }
0x2548   : > { %v4882_v36 = vpop.xlane.xlu1 %4881 }
0x2549   : > { %6727 = vrsqrt.f32 %v4889_v29  ;;  %v4886_v39 = vmul.f32 0.03125, %v4882_v36 }
0x254b   : > { %v4890_v40 = vadd.f32 1e-05, %v4886_v39 }
0x254d   : > { %6729 = vrsqrt.f32 %v4890_v40 }
0x254e   : > { %v6724_v38 = vpop.eup %6723 }
0x254f   : > { %v6726_v42 = vpop.eup %6725  ;;  %v4896_v43 = vmul.f32 %v6724_v38, %v4864_v50 }
0x2550   : > { %v4895_v48 = vmul.f32 %v6726_v42, %v4863_v60 }
0x2551   : > { %v4907_v51 = vmul.f32 %v5347_v41, %v4896_v43 }
0x2552   : > { %v4906_v49 = vmul.f32 %v5347_v41, %v4895_v48 }
0x2553   : > { %v6728_v52 = vpop.eup %6727  ;;  %v4918_v28 = vadd.f32 %v5348_v44, %v4907_v51 }
0x2554   : > { %v4917_v54 = vadd.f32 %v5348_v44, %v4906_v49  ;;  %v4897_v32 = vmul.f32 %v6728_v52, %v4865_v14 }
0x2555   : > { %4922 = vst.msk [vmem:[%s1169_s8 + $0x8] sm:$0xff] %vm1185_vm0, %v4918_v28 }
0x2556   : > { %v4908_v27 = vmul.f32 %v5347_v41, %v4897_v32  ;;  %4921 = vst.msk [vmem:[%s1169_s8] sm:$0xff] %vm1185_vm0, %v4917_v54 }
0x2557   : > { %v6730_v57 = vpop.eup %6729 }
0x2558   : > { %v4919_v30 = vadd.f32 %v5348_v44, %v4908_v27  ;;  %v4898_v18 = vmul.f32 %v6730_v57, %v4866_v17 }
0x255a   : > { %4923 = vst.msk [vmem:[%s1169_s8 + $0x10] sm:$0xff] %vm1185_vm0, %v4919_v30  ;;  %v4909_v58 = vmul.f32 %v5347_v41, %v4898_v18 }
0x255c   : > { %v4920_v59 = vadd.f32 %v5348_v44, %v4909_v58 }
0x255e   : > { %4924 = vst.msk [vmem:[%s1169_s8 + $0x18] sm:$0xff] %vm1185_vm0, %v4920_v59 }
0x255f   : > { %7138 = shalt.err (!%p7135_p13)
}
0x2560   : > { %s7139_s8 = scalar_lea.hbm %s8472_s9, 512  ;;  %s7143_s0 = scalar_lea.hbm %s8654_s4, 3072 }
0x2561   : > { %p7140_p4 = scmp.ne.s32.totalorder %s8472_s9, %s7139_s8  ;;  %p7144_p10 = scmp.lt.u32.totalorder %s8472_s9, %s8654_s4 }
0x2562   : > { %p7145_p8 = scmp.lt.u32.totalorder %s7143_s0, %s7139_s8  ;;  %p7147_p3 = scmp.lt.u32.totalorder %s7139_s8, %s8472_s9 }
0x2563   : > { %p7141_p6 = pnand %p7140_p4, %p8655_p0 }
0x2564   : > { %p7146_p5 = por %p7145_p8, %p7144_p10 }
0x2565   : > { %p7142_p9 = pneg %p7141_p6 }
0x2566   : > { %p7148_p2 = por %p7147_p3, %p7146_p5 }
0x2568   : > { %p7149_p7 = pnand %p7148_p2, %p7142_p9 }
0x256a   : > { %7152 = shalt.err (!%p7149_p7)
}
0x256b   : > { %s7284_s13 = smov 128  }
0x256c   : > { %6231 = dma.vmem_to_hbm [thread:$0]  (%p8655_p0), %s8474_s5, 512, %s8472_s9, %s4926_s14, %s7284_s13, %s7284_s13, %s8643_s10  }
0x256d PF: > { %p6308_p1 = scmp.ge.s32.totalorder %s7219_s7, 2  ;;  %s4954_s15 = sand.u32 1, %s7207_s28  }
0x256e   : > { %p8656_p12 = scmp.ne.s32.totalorder %s8604_s17, 0  ;;  %s4955_s16 = scalar_lea.sflag [#allocation4], %s4954_s15 }
0x2570   : > { %p6278_p11 = pnand %p6308_p1, %p8656_p12 }
0x2572   : > { %7202 = dma.done.wait (!%p6278_p11), %s4955_s16, 512  }
0x2573   : > { %7204 = vsyncadd (!%p6278_p11), %s4955_s16, 4294966784  ;;  %p85_p13 = scmp.ge.s32.totalorder %s7658_s26, 8   ;;  %s8657_s28 = smov %s7211_s1 }
0x2574   : > { %s8658_s1 = smov %s7215_s2  ;;  %s8659_s2 = smov %s7670_s12 }
0x2575   : > { %s8660_s7 = smov %s7658_s26  ;;  %87 = sbr.rel (!%p85_p13) target bundleno = 74 (0x4a), region = 277 }
0x257c   :  { %4960 = vsyncpa [#allocation3], 1 }
0x257d   :  { %4962 = vsyncpa [#allocation3 + $0x1], 1 }
0x257e   :  { %4963 = vsyncpa [#allocation6], 1 }
0x257f   :  { %4964 = vsyncpa [#allocation9], 1 }
0x2580   :  { %4965 = vsyncpa [#allocation12], 1 }
0x2581   :  { %4966 = vsyncpa [#allocation15], 1 }
0x2582   :  { %4967 = vsyncpa [#allocation18], 1 }
0x2583   :  { %4968 = vsyncpa [#allocation21], 1 }
0x2584   :  { %4969 = vsyncpa [#allocation24], 1 }
0x2585   :  { %4970 = vsyncpa [#allocation4], 1 }
0x2586   :  { %4972 = vsyncpa [#allocation4 + $0x1], 1 }

</bundles_post_ra>
